<compile_context>
chip_gen: v5e
topology: v5e:2x2
jax: 0.10.0
libtpu: 0.0.40
codegen_flags: <defaults>
</compile_context>

<pallas_src>
import numpy as np
import jax
import jax.numpy as jnp
from jax.experimental import pallas as pl
from jax.experimental.pallas import tpu as pltpu


# -----------------------------------------------------------------------------
# Config (mirrors AlignerHead.__init__ shapes)
# -----------------------------------------------------------------------------
NUM_INSTANCE_FEATURES = 25          # local feat dim = 25 + 7 = 32
EMBED_DIM = 32
LOCAL_NUM_HEADS = 4
LOCAL_NUM_LAYERS = 2
GLOBAL_NUM_HEADS = 4
GLOBAL_NUM_LAYERS = 2
TRAJECTORY_NUM_WAYPOINTS = 8        # traj decoder out = 8 * 4 = 32
NUM_SWEEPS = 8


# -----------------------------------------------------------------------------
# Fused Pallas kernel: the entire AlignerHead forward in one invocation
# -----------------------------------------------------------------------------
def _aligner_fused_kernel(*refs):
    """All instances, all layers, in one kernel invocation (VMEM-resident).

    Attention layout: for Nq query tokens and H heads, queries are tiled along
    rows so row r = h*Nq + tq.  `qsel` (H*Nq, E) is a 0/1 mask selecting head
    h's channels on row r; scores S = (tile(Q)*qsel*scale) @ K^T + mask is
    (H*Nq, Nk) and softmax is a plain row softmax.  The per-head outputs are
    folded back to (Nq, E) with one matmul against the constant `fold` matrix:
    O[tq, d] = (P @ V)[head(d)*Nq + tq, d].
    """
    (x_ref, g_ref, mask_l_ref, mask_g_ref,
     qsel_l_ref, fold_l_ref, qsel_g_ref, fold_g_ref,
     w_el_ref, b_el_ref, w_eg_ref, b_eg_ref) = refs[:12]
    i = 12
    local_layers = [refs[i + 4 * j:i + 4 * (j + 1)] for j in range(LOCAL_NUM_LAYERS)]
    i += 4 * LOCAL_NUM_LAYERS
    global_layers = [refs[i + 6 * j:i + 6 * (j + 1)] for j in range(GLOBAL_NUM_LAYERS)]
    i += 6 * GLOBAL_NUM_LAYERS
    w_dec_ref, b_dec_ref, obj_ref, traj_ref = refs[i:i + 4]

    E = EMBED_DIM
    f32 = jnp.float32

    qsel_l = qsel_l_ref[...]
    fold_l = fold_l_ref[...]
    mask_l = mask_l_ref[...]
    qsel_g = qsel_g_ref[...]
    fold_g = fold_g_ref[...]
    mask_g = mask_g_ref[...]

    scale_l = 1.0 / float(E // LOCAL_NUM_HEADS) ** 0.5
    scale_g = 1.0 / float(E // GLOBAL_NUM_HEADS) ** 0.5

    def attention(q2d, k2d, v2d, qsel, fold, mask, scale):
        # q2d: (Nq, E), k2d/v2d: (Nk, E)
        # qsel: (H*Nq, E), fold: (Nq, H*Nq), mask: (H*Nq, Nk) additive (0 / -1e9)
        n_heads = qsel.shape[0] // q2d.shape[0]
        # heads tiled along rows: row r = h*Nq + tq
        qb = jnp.concatenate([q2d] * n_heads, axis=0) * qsel * scale       # (H*Nq, E)
        s = jnp.dot(qb, k2d.T, preferred_element_type=f32) + mask          # (H*Nq, Nk)
        s = s - jnp.max(s, axis=-1, keepdims=True)                         # per-(head,q) max
        p = jnp.exp(s)
        p = p / jnp.sum(p, axis=-1, keepdims=True)
        o2 = jnp.dot(p, v2d, preferred_element_type=f32)                   # (H*Nq, E)
        # select head(d)'s channels on each row, then fold the H row-blocks back
        return jnp.dot(fold, o2 * qsel, preferred_element_type=f32)        # (Nq, E)

    # embed_local_feat
    h = jnp.dot(x_ref[...], w_el_ref[...], preferred_element_type=f32) + b_el_ref[...]

    # local self-attention stack (bare stacked MHA, no residual/LayerNorm; matches torch)
    for (wqkv, bqkv, wo, bo) in local_layers:
        qkv = jnp.dot(h, wqkv[...], preferred_element_type=f32) + bqkv[...]   # (NL, 3E)
        att = attention(qkv[:, :E], qkv[:, E:2 * E], qkv[:, 2 * E:],
                        qsel_l, fold_l, mask_l, scale_l)
        h = jnp.dot(att, wo[...], preferred_element_type=f32) + bo[...]

    # embed_global_feat
    qg = jnp.dot(g_ref[...], w_eg_ref[...], preferred_element_type=f32) + b_eg_ref[...]

    # global cross-attention stack (1 query token per instance)
    for (wq, bq, wkv, bkv, wo, bo) in global_layers:
        qp = jnp.dot(qg, wq[...], preferred_element_type=f32) + bq[...]       # (N, E)
        kv = jnp.dot(h, wkv[...], preferred_element_type=f32) + bkv[...]      # (NL, 2E)
        att = attention(qp, kv[:, :E], kv[:, E:], qsel_g, fold_g, mask_g, scale_g)
        qg = jnp.dot(att, wo[...], preferred_element_type=f32) + bo[...]

    # fused decoders: columns [:8] = obj_decoder, [8:] = traj_decoder
    dec = jnp.dot(qg, w_dec_ref[...], preferred_element_type=f32) + b_dec_ref[...]
    obj_ref[...] = dec[:, :8]
    traj_ref[...] = dec[:, 8:]


def _make_head_constants(n_q, num_heads, embed_dim):
    """0/1 selection (H*Nq, E) + fold (Nq, H*Nq) matrices for row-tiled heads."""
    dh = embed_dim // num_heads
    head_of_ch = np.arange(embed_dim) // dh                       # (E,)
    head_of_row = np.repeat(np.arange(num_heads), n_q)            # (H*Nq,)
    tok_of_row = np.tile(np.arange(n_q), num_heads)               # (H*Nq,)
    qsel = (head_of_row[:, None] == head_of_ch[None, :]).astype(np.float32)
    fold = (np.arange(n_q)[:, None] == tok_of_row[None, :]).astype(np.float32)
    return qsel, fold


def aligner_head_forward(params, batch_local_feat, key_padding_mask, global_features):
    """Single fused pallas_call for the whole AlignerHead forward."""
    n_inst, l_max, _ = batch_local_feat.shape
    nl = n_inst * l_max
    x = jnp.asarray(batch_local_feat, jnp.float32).reshape(nl, -1)   # (NL, 32)
    g = jnp.asarray(global_features, jnp.float32)                     # (N, 25)

    kpm = np.asarray(key_padding_mask, bool)                          # (N, L)
    pad_flat = kpm.reshape(-1)                                        # (NL,)
    inst_of_tok = np.repeat(np.arange(n_inst), l_max)                 # (NL,)

    # additive masks: block-diagonal instance structure + key padding, tiled over heads
    base_l = np.where((inst_of_tok[:, None] == inst_of_tok[None, :]) & ~pad_flat[None, :],
                      0.0, -1e9).astype(np.float32)                   # (NL, NL)
    mask_l = np.tile(base_l, (LOCAL_NUM_HEADS, 1))                    # (H*NL, NL)
    base_g = np.where((np.arange(n_inst)[:, None] == inst_of_tok[None, :]) & ~pad_flat[None, :],
                      0.0, -1e9).astype(np.float32)                   # (N, NL)
    mask_g = np.tile(base_g, (GLOBAL_NUM_HEADS, 1))                   # (H*N, NL)

    qsel_l, fold_l = _make_head_constants(nl, LOCAL_NUM_HEADS, EMBED_DIM)
    qsel_g, fold_g = _make_head_constants(n_inst, GLOBAL_NUM_HEADS, EMBED_DIM)

    args = [x, g,
            jnp.asarray(mask_l), jnp.asarray(mask_g),
            jnp.asarray(qsel_l), jnp.asarray(fold_l),
            jnp.asarray(qsel_g), jnp.asarray(fold_g),
            params["embed_local_w"], params["embed_local_b"],
            params["embed_global_w"], params["embed_global_b"]]
    for layer in params["local_attn"]:
        args.extend(layer)          # (wqkv, bqkv, wo, bo)
    for layer in params["global_attn"]:
        args.extend(layer)          # (wq, bq, wkv, bkv, wo, bo)
    args.extend([params["dec_w"], params["dec_b"]])

    # Everything (activations + weights, a few 100 KB) fits in VMEM, so a single
    # grid-less invocation is best.  At production N_inst, replace with a grid
    # over instance tiles (rows multiple of 8, weights at constant index maps,
    # "parallel" semantics so v7x's 2 TensorCores both get work; size tiles
    # against v7x's 64 MiB VMEM).
    vmem = pl.BlockSpec(memory_space=pltpu.MemorySpace.VMEM)
    boxes_refine, way_points = pl.pallas_call(
        _aligner_fused_kernel,
        out_shape=(jax.ShapeDtypeStruct((n_inst, 8), jnp.float32),
                   jax.ShapeDtypeStruct((n_inst, TRAJECTORY_NUM_WAYPOINTS * 4), jnp.float32)),
        in_specs=[vmem] * len(args),
        out_specs=(vmem, vmem),
    )(*args)
    return boxes_refine, way_points


# -----------------------------------------------------------------------------
# Plain-JAX reference (torch-equivalent math) for a correctness check
# -----------------------------------------------------------------------------
def _mha_reference(q_in, kv_in, kpm, wq, bq, wk, bk, wv, bv, wo, bo, num_heads):
    n, lq, e = q_in.shape
    lk = kv_in.shape[1]
    dh = e // num_heads
    scale = 1.0 / float(dh) ** 0.5
    q = (q_in @ wq + bq) * scale
    k = kv_in @ wk + bk
    v = kv_in @ wv + bv
    q = q.reshape(n, lq, num_heads, dh).transpose(0, 2, 1, 3)
    k = k.reshape(n, lk, num_heads, dh).transpose(0, 2, 1, 3)
    v = v.reshape(n, lk, num_heads, dh).transpose(0, 2, 1, 3)
    s = jnp.einsum('nhqd,nhkd->nhqk', q, k)
    s = s + jnp.where(kpm[:, None, None, :], -1e9, 0.0)
    p = jax.nn.softmax(s, axis=-1)
    o = jnp.einsum('nhqk,nhkd->nhqd', p, v).transpose(0, 2, 1, 3).reshape(n, lq, e)
    return o @ wo + bo


def aligner_head_reference(params, batch_local_feat, key_padding_mask, global_features):
    e = EMBED_DIM
    x = jnp.asarray(batch_local_feat, jnp.float32)
    g = jnp.asarray(global_features, jnp.float32)
    kpm = jnp.asarray(key_padding_mask)
    h = x @ params["embed_local_w"] + params["embed_local_b"]
    for (wqkv, bqkv, wo, bo) in params["local_attn"]:
        h = _mha_reference(h, h, kpm,
                           wqkv[:, :e], bqkv[:, :e],
                           wqkv[:, e:2 * e], bqkv[:, e:2 * e],
                           wqkv[:, 2 * e:], bqkv[:, 2 * e:],
                           wo, bo, LOCAL_NUM_HEADS)
    q = (g @ params["embed_global_w"] + params["embed_global_b"])[:, None, :]
    for (wq, bq, wkv, bkv, wo, bo) in params["global_attn"]:
        q = _mha_reference(q, h, kpm, wq, bq,
                           wkv[:, :e], bkv[:, :e], wkv[:, e:], bkv[:, e:],
                           wo, bo, GLOBAL_NUM_HEADS)
    dec = q[:, 0, :] @ params["dec_w"] + params["dec_b"]
    return dec[:, :8], dec[:, 8:]


# -----------------------------------------------------------------------------
# Parameter initialization (deterministic, synthetic; packed for the fused kernel)
# -----------------------------------------------------------------------------
def init_linear(key, cin, cout, scale=0.1):
    kw, kb = jax.random.split(key)
    w = jax.random.normal(kw, (cin, cout), jnp.float32) * scale
    b = jax.random.normal(kb, (1, cout), jnp.float32) * scale
    return w, b


def init_local_attn_layer(key, embed_dim, scale=0.1):
    keys = jax.random.split(key, 4)
    wq, bq = init_linear(keys[0], embed_dim, embed_dim, scale)
    wk, bk = init_linear(keys[1], embed_dim, embed_dim, scale)
    wv, bv = init_linear(keys[2], embed_dim, embed_dim, scale)
    wo, bo = init_linear(keys[3], embed_dim, embed_dim, scale)
    wqkv = jnp.concatenate([wq, wk, wv], axis=1)     # packed [q | k | v]
    bqkv = jnp.concatenate([bq, bk, bv], axis=1)
    return (wqkv, bqkv, wo, bo)


def init_global_attn_layer(key, embed_dim, scale=0.1):
    keys = jax.random.split(key, 4)
    wq, bq = init_linear(keys[0], embed_dim, embed_dim, scale)
    wk, bk = init_linear(keys[1], embed_dim, embed_dim, scale)
    wv, bv = init_linear(keys[2], embed_dim, embed_dim, scale)
    wo, bo = init_linear(keys[3], embed_dim, embed_dim, scale)
    wkv = jnp.concatenate([wk, wv], axis=1)          # packed [k | v]
    bkv = jnp.concatenate([bk, bv], axis=1)
    return (wq, bq, wkv, bkv, wo, bo)


# -----------------------------------------------------------------------------
# Host-side preprocessing glue (mirrors AlignerHead.forward preamble, numpy)
# -----------------------------------------------------------------------------
def build_batched_local_feat(pred_boxes, local_features, local_transl, local_rot,
                             idx_inst2local, num_locals, local_bisw,
                             inst_max_sweep_idx, num_sweeps):
    n_inst = pred_boxes.shape[0]
    l_max = int(num_locals.max())
    yaw = pred_boxes[:, 6]

    # gen_instances_past_trajectory
    local_rot_angle = np.arctan2(local_rot[:, 1, 0], local_rot[:, 0, 0])
    local_yaw = -local_rot_angle + yaw[idx_inst2local]
    offset = pred_boxes[idx_inst2local, :3] - local_transl
    c, s = np.cos(-local_rot_angle), np.sin(-local_rot_angle)
    local_xyz = np.stack(
        [c * offset[:, 0] - s * offset[:, 1],
         s * offset[:, 0] + c * offset[:, 1],
         offset[:, 2]], axis=1)
    local_pose4 = np.concatenate([local_xyz, local_yaw[:, None]], axis=1)

    # select x, y, yaw then express in current-box frame
    local_pose = local_pose4[:, [0, 1, 3]].astype(np.float32).copy()
    local_pose[:, :2] -= pred_boxes[idx_inst2local, :2]
    c2, s2 = np.cos(yaw[idx_inst2local]), np.sin(yaw[idx_inst2local])
    l_x = c2 * local_pose[:, 0] + s2 * local_pose[:, 1]
    l_y = -s2 * local_pose[:, 0] + c2 * local_pose[:, 1]
    local_pose[:, 2] -= yaw[idx_inst2local]
    local_pose[:, 0], local_pose[:, 1] = l_x, l_y
    local_pose[:, 2] = np.arctan2(np.sin(local_pose[:, 2]), np.cos(local_pose[:, 2]))

    # velocities
    local_sweep_idx = local_bisw % num_sweeps
    local_time = ((inst_max_sweep_idx[idx_inst2local] - local_sweep_idx)
                  .astype(np.float32) * 0.05)
    assert np.all(local_time > -1e-5)
    local_velo = np.zeros_like(local_pose)
    mask_valid = local_time > 1e-5
    local_velo[mask_valid] = local_pose[mask_valid] / local_time[mask_valid, None]
    inst_velo = np.zeros((n_inst, 3), np.float32)
    np.add.at(inst_velo, idx_inst2local, local_velo)
    inst_velo = inst_velo / np.maximum(num_locals.astype(np.float32) - 1.0, 1.0)[:, None]
    local_velo = (local_velo
                  + inst_velo[idx_inst2local] * (~mask_valid).astype(np.float32)[:, None])

    local_feat = np.concatenate([local_features, local_pose, local_velo], axis=1)

    c_tot = local_feat.shape[1] + 1
    batch_local_feat = np.zeros((n_inst, l_max, c_tot), np.float32)
    key_padding_mask = np.zeros((n_inst, l_max), bool)
    for i in range(n_inst):
        m = idx_inst2local == i
        sweep_i = local_sweep_idx[m]
        feat_i = np.concatenate(
            [local_feat[m],
             sweep_i[:, None].astype(np.float32)
             / max(float(inst_max_sweep_idx[i]), 1.0)], axis=1)
        order = np.argsort(sweep_i)
        n_i = int(num_locals[i])
        batch_local_feat[i, :n_i] = feat_i[order]
        key_padding_mask[i, n_i:] = True
    return batch_local_feat, key_padding_mask


# -----------------------------------------------------------------------------
# Main
# -----------------------------------------------------------------------------
if __name__ == "__main__":
    key = jax.random.PRNGKey(0)
    k_par, k_dat = jax.random.split(key)

    # ---- parameters ----
    pk = jax.random.split(k_par, 8)
    params = {}
    params["embed_local_w"], params["embed_local_b"] = init_linear(
        pk[0], NUM_INSTANCE_FEATURES + 7, EMBED_DIM)
    params["embed_global_w"], params["embed_global_b"] = init_linear(
        pk[1], NUM_INSTANCE_FEATURES, EMBED_DIM)
    params["local_attn"] = [init_local_attn_layer(pk[2 + i], EMBED_DIM)
                            for i in range(LOCAL_NUM_LAYERS)]
    params["global_attn"] = [init_global_attn_layer(pk[4 + i], EMBED_DIM)
                             for i in range(GLOBAL_NUM_LAYERS)]
    obj_w, obj_b = init_linear(pk[6], EMBED_DIM, 8)
    traj_w, traj_b = init_linear(pk[7], EMBED_DIM, TRAJECTORY_NUM_WAYPOINTS * 4)
    params["dec_w"] = jnp.concatenate([obj_w, traj_w], axis=1)    # (E, 40) = [obj | traj]
    params["dec_b"] = jnp.concatenate([obj_b, traj_b], axis=1)

    # ---- synthetic inputs (small, deterministic) ----
    n_inst = 4
    locals_per_inst = np.array([4, 6, 3, 8], np.int64)
    n_local = int(locals_per_inst.sum())
    idx_inst2local = np.repeat(np.arange(n_inst), locals_per_inst)

    dk = jax.random.split(k_dat, 6)
    pred_boxes = np.array(jax.random.normal(dk[0], (n_inst, 7), jnp.float32))
    pred_boxes[:, 3:6] = np.abs(pred_boxes[:, 3:6]) + 0.5      # positive sizes
    local_features = np.array(
        jax.random.normal(dk[1], (n_local, NUM_INSTANCE_FEATURES), jnp.float32))
    global_features = np.array(
        jax.random.normal(dk[2], (n_inst, NUM_INSTANCE_FEATURES), jnp.float32))
    local_transl = np.array(jax.random.normal(dk[3], (n_local, 3), jnp.float32))
    rot_ang = np.array(jax.random.normal(dk[4], (n_local,), jnp.float32))
    cz, sz = np.cos(rot_ang), np.sin(rot_ang)
    zeros, ones = np.zeros_like(cz), np.ones_like(cz)
    local_rot = np.stack(
        [cz, -sz, zeros, sz, cz, zeros, zeros, zeros, ones],
        axis=1).reshape(n_local, 3, 3).astype(np.float32)

    # unique sweep indices per instance (deterministic)
    base_perm = np.array([3, 0, 5, 2, 7, 1, 6, 4], np.int64)
    local_sweep = np.concatenate(
        [base_perm[:n] for n in locals_per_inst]).astype(np.int64)
    local_bisw = idx_inst2local * NUM_SWEEPS + local_sweep
    inst_max_sweep_idx = np.array(
        [local_sweep[idx_inst2local == i].max() for i in range(n_inst)], np.int64)

    # ---- host glue: build padded local features + key padding mask ----
    batch_local_feat, key_padding_mask = build_batched_local_feat(
        pred_boxes, local_features, local_transl, local_rot,
        idx_inst2local, locals_per_inst, local_bisw,
        inst_max_sweep_idx, NUM_SWEEPS)

    # ---- run the fused Pallas forward ----
    boxes_refine, way_points = aligner_head_forward(
        params, batch_local_feat, key_padding_mask, global_features)
    jax.block_until_ready((boxes_refine, way_points))

    # ---- check against a plain-JAX reference of the same math ----
    ref_boxes, ref_way = aligner_head_reference(
        params, batch_local_feat, key_padding_mask, global_features)
    np.testing.assert_allclose(np.asarray(boxes_refine), np.asarray(ref_boxes),
                               rtol=5e-2, atol=1e-2)
    np.testing.assert_allclose(np.asarray(way_points), np.asarray(ref_way),
                               rtol=5e-2, atol=1e-2)

    assert boxes_refine.shape == (n_inst, 8)
    assert way_points.shape == (n_inst, TRAJECTORY_NUM_WAYPOINTS * 4)
    print("KERNEL_OK")
</pallas_src>

<mosaic_0001>
module attributes {stable_mosaic.version = 11 : i64} {
  func.func @_aligner_fused_kernel(%arg0: memref<32x32xf32, #tpu.memory_space<vmem>>, %arg1: memref<4x25xf32, #tpu.memory_space<vmem>>, %arg2: memref<128x32xf32, #tpu.memory_space<vmem>>, %arg3: memref<16x32xf32, #tpu.memory_space<vmem>>, %arg4: memref<128x32xf32, #tpu.memory_space<vmem>>, %arg5: memref<32x128xf32, #tpu.memory_space<vmem>>, %arg6: memref<16x32xf32, #tpu.memory_space<vmem>>, %arg7: memref<4x16xf32, #tpu.memory_space<vmem>>, %arg8: memref<32x32xf32, #tpu.memory_space<vmem>>, %arg9: memref<1x32xf32, #tpu.memory_space<vmem>>, %arg10: memref<25x32xf32, #tpu.memory_space<vmem>>, %arg11: memref<1x32xf32, #tpu.memory_space<vmem>>, %arg12: memref<32x96xf32, #tpu.memory_space<vmem>>, %arg13: memref<1x96xf32, #tpu.memory_space<vmem>>, %arg14: memref<32x32xf32, #tpu.memory_space<vmem>>, %arg15: memref<1x32xf32, #tpu.memory_space<vmem>>, %arg16: memref<32x96xf32, #tpu.memory_space<vmem>>, %arg17: memref<1x96xf32, #tpu.memory_space<vmem>>, %arg18: memref<32x32xf32, #tpu.memory_space<vmem>>, %arg19: memref<1x32xf32, #tpu.memory_space<vmem>>, %arg20: memref<32x32xf32, #tpu.memory_space<vmem>>, %arg21: memref<1x32xf32, #tpu.memory_space<vmem>>, %arg22: memref<32x64xf32, #tpu.memory_space<vmem>>, %arg23: memref<1x64xf32, #tpu.memory_space<vmem>>, %arg24: memref<32x32xf32, #tpu.memory_space<vmem>>, %arg25: memref<1x32xf32, #tpu.memory_space<vmem>>, %arg26: memref<32x32xf32, #tpu.memory_space<vmem>>, %arg27: memref<1x32xf32, #tpu.memory_space<vmem>>, %arg28: memref<32x64xf32, #tpu.memory_space<vmem>>, %arg29: memref<1x64xf32, #tpu.memory_space<vmem>>, %arg30: memref<32x32xf32, #tpu.memory_space<vmem>>, %arg31: memref<1x32xf32, #tpu.memory_space<vmem>>, %arg32: memref<32x40xf32, #tpu.memory_space<vmem>>, %arg33: memref<1x40xf32, #tpu.memory_space<vmem>>, %arg34: memref<4x8xf32, #tpu.memory_space<vmem>>, %arg35: memref<4x32xf32, #tpu.memory_space<vmem>>) attributes {dimension_semantics = [], scalar_prefetch = 0 : i64, scratch_operands = 0 : i64, tpu.core_type = #tpu.core_type<tc>} {
    %c0 = arith.constant 0 : index
    %c0_0 = arith.constant 0 : index
    %0 = vector.load %arg4[%c0, %c0_0] : memref<128x32xf32, #tpu.memory_space<vmem>>, vector<128x32xf32>
    %c0_1 = arith.constant 0 : index
    %c0_2 = arith.constant 0 : index
    %1 = vector.load %arg5[%c0_1, %c0_2] : memref<32x128xf32, #tpu.memory_space<vmem>>, vector<32x128xf32>
    %c0_3 = arith.constant 0 : index
    %c0_4 = arith.constant 0 : index
    %2 = vector.load %arg2[%c0_3, %c0_4] : memref<128x32xf32, #tpu.memory_space<vmem>>, vector<128x32xf32>
    %c0_5 = arith.constant 0 : index
    %c0_6 = arith.constant 0 : index
    %3 = vector.load %arg6[%c0_5, %c0_6] : memref<16x32xf32, #tpu.memory_space<vmem>>, vector<16x32xf32>
    %c0_7 = arith.constant 0 : index
    %c0_8 = arith.constant 0 : index
    %4 = vector.load %arg7[%c0_7, %c0_8] : memref<4x16xf32, #tpu.memory_space<vmem>>, vector<4x16xf32>
    %c0_9 = arith.constant 0 : index
    %c0_10 = arith.constant 0 : index
    %5 = vector.load %arg3[%c0_9, %c0_10] : memref<16x32xf32, #tpu.memory_space<vmem>>, vector<16x32xf32>
    %c0_11 = arith.constant 0 : index
    %c0_12 = arith.constant 0 : index
    %6 = vector.load %arg0[%c0_11, %c0_12] : memref<32x32xf32, #tpu.memory_space<vmem>>, vector<32x32xf32>
    %c0_13 = arith.constant 0 : index
    %c0_14 = arith.constant 0 : index
    %7 = vector.load %arg8[%c0_13, %c0_14] : memref<32x32xf32, #tpu.memory_space<vmem>>, vector<32x32xf32>
    %cst = arith.constant dense<0.000000e+00> : vector<32x32xf32>
    %8 = tpu.matmul %6, %7, %cst {dimension_numbers = #tpu.dot_dimension_numbers<[1], [0], [0], [1], [0, 0, 1, 1], [], []>} : vector<32x32xf32>, vector<32x32xf32>, vector<32x32xf32> -> vector<32x32xf32>
    %c0_15 = arith.constant 0 : index
    %c0_16 = arith.constant 0 : index
    %9 = vector.load %arg9[%c0_15, %c0_16] : memref<1x32xf32, #tpu.memory_space<vmem>>, vector<1x32xf32>
    %10 = vector.broadcast %9 : vector<1x32xf32> to vector<32x32xf32>
    %11 = arith.addf %8, %10 : vector<32x32xf32>
    %c0_17 = arith.constant 0 : index
    %c0_18 = arith.constant 0 : index
    %12 = vector.load %arg12[%c0_17, %c0_18] : memref<32x96xf32, #tpu.memory_space<vmem>>, vector<32x96xf32>
    %cst_19 = arith.constant dense<0.000000e+00> : vector<32x96xf32>
    %13 = tpu.matmul %11, %12, %cst_19 {dimension_numbers = #tpu.dot_dimension_numbers<[1], [0], [0], [1], [0, 0, 1, 1], [], []>} : vector<32x32xf32>, vector<32x96xf32>, vector<32x96xf32> -> vector<32x96xf32>
    %c0_20 = arith.constant 0 : index
    %c0_21 = arith.constant 0 : index
    %14 = vector.load %arg13[%c0_20, %c0_21] : memref<1x96xf32, #tpu.memory_space<vmem>>, vector<1x96xf32>
    %15 = vector.broadcast %14 : vector<1x96xf32> to vector<32x96xf32>
    %16 = arith.addf %13, %15 : vector<32x96xf32>
    %17 = vector.extract_strided_slice %16 {offsets = [0, 0], sizes = [32, 32], strides = [1, 1]} : vector<32x96xf32> to vector<32x32xf32>
    %18 = vector.extract_strided_slice %16 {offsets = [0, 32], sizes = [32, 32], strides = [1, 1]} : vector<32x96xf32> to vector<32x32xf32>
    %19 = vector.extract_strided_slice %16 {offsets = [0, 64], sizes = [32, 32], strides = [1, 1]} : vector<32x96xf32> to vector<32x32xf32>
    %20 = tpu.concatenate %17, %17, %17, %17 in 0 : vector<32x32xf32>, vector<32x32xf32>, vector<32x32xf32>, vector<32x32xf32> -> vector<128x32xf32>
    %21 = arith.mulf %20, %0 : vector<128x32xf32>
    %cst_22 = arith.constant 0.353553385 : f32
    %22 = vector.broadcast %cst_22 : f32 to vector<128x32xf32>
    %23 = arith.mulf %21, %22 : vector<128x32xf32>
    %24 = tpu.transpose %18, [1, 0] : vector<32x32xf32> -> vector<32x32xf32>
    %cst_23 = arith.constant dense<0.000000e+00> : vector<128x32xf32>
    %25 = tpu.matmul %23, %24, %cst_23 {dimension_numbers = #tpu.dot_dimension_numbers<[1], [0], [0], [1], [0, 0, 1, 1], [], []>} : vector<128x32xf32>, vector<32x32xf32>, vector<128x32xf32> -> vector<128x32xf32>
    %26 = arith.addf %25, %2 : vector<128x32xf32>
    %cst_24 = arith.constant dense<0xFF800000> : vector<128xf32>
    %27 = vector.multi_reduction <maximumf>, %26, %cst_24 [1] : vector<128x32xf32> to vector<128xf32>
    %28 = vector.shape_cast %27 : vector<128xf32> to vector<128x1xf32>
    %29 = vector.broadcast %28 : vector<128x1xf32> to vector<128x32xf32>
    %30 = arith.subf %26, %29 : vector<128x32xf32>
    %31 = math.exp %30 : vector<128x32xf32>
    %cst_25 = arith.constant dense<0.000000e+00> : vector<128xf32>
    %32 = vector.multi_reduction <add>, %31, %cst_25 [1] : vector<128x32xf32> to vector<128xf32>
    %33 = vector.shape_cast %32 : vector<128xf32> to vector<128x1xf32>
    %34 = vector.broadcast %33 : vector<128x1xf32> to vector<128x32xf32>
    %35 = arith.divf %31, %34 : vector<128x32xf32>
    %cst_26 = arith.constant dense<0.000000e+00> : vector<128x32xf32>
    %36 = tpu.matmul %35, %19, %cst_26 {dimension_numbers = #tpu.dot_dimension_numbers<[1], [0], [0], [1], [0, 0, 1, 1], [], []>} : vector<128x32xf32>, vector<32x32xf32>, vector<128x32xf32> -> vector<128x32xf32>
    %37 = arith.mulf %36, %0 : vector<128x32xf32>
    %cst_27 = arith.constant dense<0.000000e+00> : vector<32x32xf32>
    %38 = tpu.matmul %1, %37, %cst_27 {dimension_numbers = #tpu.dot_dimension_numbers<[1], [0], [0], [1], [0, 0, 1, 1], [], []>} : vector<32x128xf32>, vector<128x32xf32>, vector<32x32xf32> -> vector<32x32xf32>
    %c0_28 = arith.constant 0 : index
    %c0_29 = arith.constant 0 : index
    %39 = vector.load %arg14[%c0_28, %c0_29] : memref<32x32xf32, #tpu.memory_space<vmem>>, vector<32x32xf32>
    %cst_30 = arith.constant dense<0.000000e+00> : vector<32x32xf32>
    %40 = tpu.matmul %38, %39, %cst_30 {dimension_numbers = #tpu.dot_dimension_numbers<[1], [0], [0], [1], [0, 0, 1, 1], [], []>} : vector<32x32xf32>, vector<32x32xf32>, vector<32x32xf32> -> vector<32x32xf32>
    %c0_31 = arith.constant 0 : index
    %c0_32 = arith.constant 0 : index
    %41 = vector.load %arg15[%c0_31, %c0_32] : memref<1x32xf32, #tpu.memory_space<vmem>>, vector<1x32xf32>
    %42 = vector.broadcast %41 : vector<1x32xf32> to vector<32x32xf32>
    %43 = arith.addf %40, %42 : vector<32x32xf32>
    %c0_33 = arith.constant 0 : index
    %c0_34 = arith.constant 0 : index
    %44 = vector.load %arg16[%c0_33, %c0_34] : memref<32x96xf32, #tpu.memory_space<vmem>>, vector<32x96xf32>
    %cst_35 = arith.constant dense<0.000000e+00> : vector<32x96xf32>
    %45 = tpu.matmul %43, %44, %cst_35 {dimension_numbers = #tpu.dot_dimension_numbers<[1], [0], [0], [1], [0, 0, 1, 1], [], []>} : vector<32x32xf32>, vector<32x96xf32>, vector<32x96xf32> -> vector<32x96xf32>
    %c0_36 = arith.constant 0 : index
    %c0_37 = arith.constant 0 : index
    %46 = vector.load %arg17[%c0_36, %c0_37] : memref<1x96xf32, #tpu.memory_space<vmem>>, vector<1x96xf32>
    %47 = vector.broadcast %46 : vector<1x96xf32> to vector<32x96xf32>
    %48 = arith.addf %45, %47 : vector<32x96xf32>
    %49 = vector.extract_strided_slice %48 {offsets = [0, 0], sizes = [32, 32], strides = [1, 1]} : vector<32x96xf32> to vector<32x32xf32>
    %50 = vector.extract_strided_slice %48 {offsets = [0, 32], sizes = [32, 32], strides = [1, 1]} : vector<32x96xf32> to vector<32x32xf32>
    %51 = vector.extract_strided_slice %48 {offsets = [0, 64], sizes = [32, 32], strides = [1, 1]} : vector<32x96xf32> to vector<32x32xf32>
    %52 = tpu.concatenate %49, %49, %49, %49 in 0 : vector<32x32xf32>, vector<32x32xf32>, vector<32x32xf32>, vector<32x32xf32> -> vector<128x32xf32>
    %53 = arith.mulf %52, %0 : vector<128x32xf32>
    %cst_38 = arith.constant 0.353553385 : f32
    %54 = vector.broadcast %cst_38 : f32 to vector<128x32xf32>
    %55 = arith.mulf %53, %54 : vector<128x32xf32>
    %56 = tpu.transpose %50, [1, 0] : vector<32x32xf32> -> vector<32x32xf32>
    %cst_39 = arith.constant dense<0.000000e+00> : vector<128x32xf32>
    %57 = tpu.matmul %55, %56, %cst_39 {dimension_numbers = #tpu.dot_dimension_numbers<[1], [0], [0], [1], [0, 0, 1, 1], [], []>} : vector<128x32xf32>, vector<32x32xf32>, vector<128x32xf32> -> vector<128x32xf32>
    %58 = arith.addf %57, %2 : vector<128x32xf32>
    %cst_40 = arith.constant dense<0xFF800000> : vector<128xf32>
    %59 = vector.multi_reduction <maximumf>, %58, %cst_40 [1] : vector<128x32xf32> to vector<128xf32>
    %60 = vector.shape_cast %59 : vector<128xf32> to vector<128x1xf32>
    %61 = vector.broadcast %60 : vector<128x1xf32> to vector<128x32xf32>
    %62 = arith.subf %58, %61 : vector<128x32xf32>
    %63 = math.exp %62 : vector<128x32xf32>
    %cst_41 = arith.constant dense<0.000000e+00> : vector<128xf32>
    %64 = vector.multi_reduction <add>, %63, %cst_41 [1] : vector<128x32xf32> to vector<128xf32>
    %65 = vector.shape_cast %64 : vector<128xf32> to vector<128x1xf32>
    %66 = vector.broadcast %65 : vector<128x1xf32> to vector<128x32xf32>
    %67 = arith.divf %63, %66 : vector<128x32xf32>
    %cst_42 = arith.constant dense<0.000000e+00> : vector<128x32xf32>
    %68 = tpu.matmul %67, %51, %cst_42 {dimension_numbers = #tpu.dot_dimension_numbers<[1], [0], [0], [1], [0, 0, 1, 1], [], []>} : vector<128x32xf32>, vector<32x32xf32>, vector<128x32xf32> -> vector<128x32xf32>
    %69 = arith.mulf %68, %0 : vector<128x32xf32>
    %cst_43 = arith.constant dense<0.000000e+00> : vector<32x32xf32>
    %70 = tpu.matmul %1, %69, %cst_43 {dimension_numbers = #tpu.dot_dimension_numbers<[1], [0], [0], [1], [0, 0, 1, 1], [], []>} : vector<32x128xf32>, vector<128x32xf32>, vector<32x32xf32> -> vector<32x32xf32>
    %c0_44 = arith.constant 0 : index
    %c0_45 = arith.constant 0 : index
    %71 = vector.load %arg18[%c0_44, %c0_45] : memref<32x32xf32, #tpu.memory_space<vmem>>, vector<32x32xf32>
    %cst_46 = arith.constant dense<0.000000e+00> : vector<32x32xf32>
    %72 = tpu.matmul %70, %71, %cst_46 {dimension_numbers = #tpu.dot_dimension_numbers<[1], [0], [0], [1], [0, 0, 1, 1], [], []>} : vector<32x32xf32>, vector<32x32xf32>, vector<32x32xf32> -> vector<32x32xf32>
    %c0_47 = arith.constant 0 : index
    %c0_48 = arith.constant 0 : index
    %73 = vector.load %arg19[%c0_47, %c0_48] : memref<1x32xf32, #tpu.memory_space<vmem>>, vector<1x32xf32>
    %74 = vector.broadcast %73 : vector<1x32xf32> to vector<32x32xf32>
    %75 = arith.addf %72, %74 : vector<32x32xf32>
    %c0_49 = arith.constant 0 : index
    %c0_50 = arith.constant 0 : index
    %76 = vector.load %arg1[%c0_49, %c0_50] : memref<4x25xf32, #tpu.memory_space<vmem>>, vector<4x25xf32>
    %c0_51 = arith.constant 0 : index
    %c0_52 = arith.constant 0 : index
    %77 = vector.load %arg10[%c0_51, %c0_52] : memref<25x32xf32, #tpu.memory_space<vmem>>, vector<25x32xf32>
    %cst_53 = arith.constant dense<0.000000e+00> : vector<4x32xf32>
    %78 = tpu.matmul %76, %77, %cst_53 {dimension_numbers = #tpu.dot_dimension_numbers<[1], [0], [0], [1], [0, 0, 1, 1], [], []>} : vector<4x25xf32>, vector<25x32xf32>, vector<4x32xf32> -> vector<4x32xf32>
    %c0_54 = arith.constant 0 : index
    %c0_55 = arith.constant 0 : index
    %79 = vector.load %arg11[%c0_54, %c0_55] : memref<1x32xf32, #tpu.memory_space<vmem>>, vector<1x32xf32>
    %80 = vector.broadcast %79 : vector<1x32xf32> to vector<4x32xf32>
    %81 = arith.addf %78, %80 : vector<4x32xf32>
    %c0_56 = arith.constant 0 : index
    %c0_57 = arith.constant 0 : index
    %82 = vector.load %arg20[%c0_56, %c0_57] : memref<32x32xf32, #tpu.memory_space<vmem>>, vector<32x32xf32>
    %cst_58 = arith.constant dense<0.000000e+00> : vector<4x32xf32>
    %83 = tpu.matmul %81, %82, %cst_58 {dimension_numbers = #tpu.dot_dimension_numbers<[1], [0], [0], [1], [0, 0, 1, 1], [], []>} : vector<4x32xf32>, vector<32x32xf32>, vector<4x32xf32> -> vector<4x32xf32>
    %c0_59 = arith.constant 0 : index
    %c0_60 = arith.constant 0 : index
    %84 = vector.load %arg21[%c0_59, %c0_60] : memref<1x32xf32, #tpu.memory_space<vmem>>, vector<1x32xf32>
    %85 = vector.broadcast %84 : vector<1x32xf32> to vector<4x32xf32>
    %86 = arith.addf %83, %85 : vector<4x32xf32>
    %c0_61 = arith.constant 0 : index
    %c0_62 = arith.constant 0 : index
    %87 = vector.load %arg22[%c0_61, %c0_62] : memref<32x64xf32, #tpu.memory_space<vmem>>, vector<32x64xf32>
    %cst_63 = arith.constant dense<0.000000e+00> : vector<32x64xf32>
    %88 = tpu.matmul %75, %87, %cst_63 {dimension_numbers = #tpu.dot_dimension_numbers<[1], [0], [0], [1], [0, 0, 1, 1], [], []>} : vector<32x32xf32>, vector<32x64xf32>, vector<32x64xf32> -> vector<32x64xf32>
    %c0_64 = arith.constant 0 : index
    %c0_65 = arith.constant 0 : index
    %89 = vector.load %arg23[%c0_64, %c0_65] : memref<1x64xf32, #tpu.memory_space<vmem>>, vector<1x64xf32>
    %90 = vector.broadcast %89 : vector<1x64xf32> to vector<32x64xf32>
    %91 = arith.addf %88, %90 : vector<32x64xf32>
    %92 = vector.extract_strided_slice %91 {offsets = [0, 0], sizes = [32, 32], strides = [1, 1]} : vector<32x64xf32> to vector<32x32xf32>
    %93 = vector.extract_strided_slice %91 {offsets = [0, 32], sizes = [32, 32], strides = [1, 1]} : vector<32x64xf32> to vector<32x32xf32>
    %94 = tpu.concatenate %86, %86, %86, %86 in 0 : vector<4x32xf32>, vector<4x32xf32>, vector<4x32xf32>, vector<4x32xf32> -> vector<16x32xf32>
    %95 = arith.mulf %94, %3 : vector<16x32xf32>
    %cst_66 = arith.constant 0.353553385 : f32
    %96 = vector.broadcast %cst_66 : f32 to vector<16x32xf32>
    %97 = arith.mulf %95, %96 : vector<16x32xf32>
    %98 = tpu.transpose %92, [1, 0] : vector<32x32xf32> -> vector<32x32xf32>
    %cst_67 = arith.constant dense<0.000000e+00> : vector<16x32xf32>
    %99 = tpu.matmul %97, %98, %cst_67 {dimension_numbers = #tpu.dot_dimension_numbers<[1], [0], [0], [1], [0, 0, 1, 1], [], []>} : vector<16x32xf32>, vector<32x32xf32>, vector<16x32xf32> -> vector<16x32xf32>
    %100 = arith.addf %99, %5 : vector<16x32xf32>
    %cst_68 = arith.constant dense<0xFF800000> : vector<16xf32>
    %101 = vector.multi_reduction <maximumf>, %100, %cst_68 [1] : vector<16x32xf32> to vector<16xf32>
    %102 = vector.shape_cast %101 : vector<16xf32> to vector<16x1xf32>
    %103 = vector.broadcast %102 : vector<16x1xf32> to vector<16x32xf32>
    %104 = arith.subf %100, %103 : vector<16x32xf32>
    %105 = math.exp %104 : vector<16x32xf32>
    %cst_69 = arith.constant dense<0.000000e+00> : vector<16xf32>
    %106 = vector.multi_reduction <add>, %105, %cst_69 [1] : vector<16x32xf32> to vector<16xf32>
    %107 = vector.shape_cast %106 : vector<16xf32> to vector<16x1xf32>
    %108 = vector.broadcast %107 : vector<16x1xf32> to vector<16x32xf32>
    %109 = arith.divf %105, %108 : vector<16x32xf32>
    %cst_70 = arith.constant dense<0.000000e+00> : vector<16x32xf32>
    %110 = tpu.matmul %109, %93, %cst_70 {dimension_numbers = #tpu.dot_dimension_numbers<[1], [0], [0], [1], [0, 0, 1, 1], [], []>} : vector<16x32xf32>, vector<32x32xf32>, vector<16x32xf32> -> vector<16x32xf32>
    %111 = arith.mulf %110, %3 : vector<16x32xf32>
    %cst_71 = arith.constant dense<0.000000e+00> : vector<4x32xf32>
    %112 = tpu.matmul %4, %111, %cst_71 {dimension_numbers = #tpu.dot_dimension_numbers<[1], [0], [0], [1], [0, 0, 1, 1], [], []>} : vector<4x16xf32>, vector<16x32xf32>, vector<4x32xf32> -> vector<4x32xf32>
    %c0_72 = arith.constant 0 : index
    %c0_73 = arith.constant 0 : index
    %113 = vector.load %arg24[%c0_72, %c0_73] : memref<32x32xf32, #tpu.memory_space<vmem>>, vector<32x32xf32>
    %cst_74 = arith.constant dense<0.000000e+00> : vector<4x32xf32>
    %114 = tpu.matmul %112, %113, %cst_74 {dimension_numbers = #tpu.dot_dimension_numbers<[1], [0], [0], [1], [0, 0, 1, 1], [], []>} : vector<4x32xf32>, vector<32x32xf32>, vector<4x32xf32> -> vector<4x32xf32>
    %c0_75 = arith.constant 0 : index
    %c0_76 = arith.constant 0 : index
    %115 = vector.load %arg25[%c0_75, %c0_76] : memref<1x32xf32, #tpu.memory_space<vmem>>, vector<1x32xf32>
    %116 = vector.broadcast %115 : vector<1x32xf32> to vector<4x32xf32>
    %117 = arith.addf %114, %116 : vector<4x32xf32>
    %c0_77 = arith.constant 0 : index
    %c0_78 = arith.constant 0 : index
    %118 = vector.load %arg26[%c0_77, %c0_78] : memref<32x32xf32, #tpu.memory_space<vmem>>, vector<32x32xf32>
    %cst_79 = arith.constant dense<0.000000e+00> : vector<4x32xf32>
    %119 = tpu.matmul %117, %118, %cst_79 {dimension_numbers = #tpu.dot_dimension_numbers<[1], [0], [0], [1], [0, 0, 1, 1], [], []>} : vector<4x32xf32>, vector<32x32xf32>, vector<4x32xf32> -> vector<4x32xf32>
    %c0_80 = arith.constant 0 : index
    %c0_81 = arith.constant 0 : index
    %120 = vector.load %arg27[%c0_80, %c0_81] : memref<1x32xf32, #tpu.memory_space<vmem>>, vector<1x32xf32>
    %121 = vector.broadcast %120 : vector<1x32xf32> to vector<4x32xf32>
    %122 = arith.addf %119, %121 : vector<4x32xf32>
    %c0_82 = arith.constant 0 : index
    %c0_83 = arith.constant 0 : index
    %123 = vector.load %arg28[%c0_82, %c0_83] : memref<32x64xf32, #tpu.memory_space<vmem>>, vector<32x64xf32>
    %cst_84 = arith.constant dense<0.000000e+00> : vector<32x64xf32>
    %124 = tpu.matmul %75, %123, %cst_84 {dimension_numbers = #tpu.dot_dimension_numbers<[1], [0], [0], [1], [0, 0, 1, 1], [], []>} : vector<32x32xf32>, vector<32x64xf32>, vector<32x64xf32> -> vector<32x64xf32>
    %c0_85 = arith.constant 0 : index
    %c0_86 = arith.constant 0 : index
    %125 = vector.load %arg29[%c0_85, %c0_86] : memref<1x64xf32, #tpu.memory_space<vmem>>, vector<1x64xf32>
    %126 = vector.broadcast %125 : vector<1x64xf32> to vector<32x64xf32>
    %127 = arith.addf %124, %126 : vector<32x64xf32>
    %128 = vector.extract_strided_slice %127 {offsets = [0, 0], sizes = [32, 32], strides = [1, 1]} : vector<32x64xf32> to vector<32x32xf32>
    %129 = vector.extract_strided_slice %127 {offsets = [0, 32], sizes = [32, 32], strides = [1, 1]} : vector<32x64xf32> to vector<32x32xf32>
    %130 = tpu.concatenate %122, %122, %122, %122 in 0 : vector<4x32xf32>, vector<4x32xf32>, vector<4x32xf32>, vector<4x32xf32> -> vector<16x32xf32>
    %131 = arith.mulf %130, %3 : vector<16x32xf32>
    %cst_87 = arith.constant 0.353553385 : f32
    %132 = vector.broadcast %cst_87 : f32 to vector<16x32xf32>
    %133 = arith.mulf %131, %132 : vector<16x32xf32>
    %134 = tpu.transpose %128, [1, 0] : vector<32x32xf32> -> vector<32x32xf32>
    %cst_88 = arith.constant dense<0.000000e+00> : vector<16x32xf32>
    %135 = tpu.matmul %133, %134, %cst_88 {dimension_numbers = #tpu.dot_dimension_numbers<[1], [0], [0], [1], [0, 0, 1, 1], [], []>} : vector<16x32xf32>, vector<32x32xf32>, vector<16x32xf32> -> vector<16x32xf32>
    %136 = arith.addf %135, %5 : vector<16x32xf32>
    %cst_89 = arith.constant dense<0xFF800000> : vector<16xf32>
    %137 = vector.multi_reduction <maximumf>, %136, %cst_89 [1] : vector<16x32xf32> to vector<16xf32>
    %138 = vector.shape_cast %137 : vector<16xf32> to vector<16x1xf32>
    %139 = vector.broadcast %138 : vector<16x1xf32> to vector<16x32xf32>
    %140 = arith.subf %136, %139 : vector<16x32xf32>
    %141 = math.exp %140 : vector<16x32xf32>
    %cst_90 = arith.constant dense<0.000000e+00> : vector<16xf32>
    %142 = vector.multi_reduction <add>, %141, %cst_90 [1] : vector<16x32xf32> to vector<16xf32>
    %143 = vector.shape_cast %142 : vector<16xf32> to vector<16x1xf32>
    %144 = vector.broadcast %143 : vector<16x1xf32> to vector<16x32xf32>
    %145 = arith.divf %141, %144 : vector<16x32xf32>
    %cst_91 = arith.constant dense<0.000000e+00> : vector<16x32xf32>
    %146 = tpu.matmul %145, %129, %cst_91 {dimension_numbers = #tpu.dot_dimension_numbers<[1], [0], [0], [1], [0, 0, 1, 1], [], []>} : vector<16x32xf32>, vector<32x32xf32>, vector<16x32xf32> -> vector<16x32xf32>
    %147 = arith.mulf %146, %3 : vector<16x32xf32>
    %cst_92 = arith.constant dense<0.000000e+00> : vector<4x32xf32>
    %148 = tpu.matmul %4, %147, %cst_92 {dimension_numbers = #tpu.dot_dimension_numbers<[1], [0], [0], [1], [0, 0, 1, 1], [], []>} : vector<4x16xf32>, vector<16x32xf32>, vector<4x32xf32> -> vector<4x32xf32>
    %c0_93 = arith.constant 0 : index
    %c0_94 = arith.constant 0 : index
    %149 = vector.load %arg30[%c0_93, %c0_94] : memref<32x32xf32, #tpu.memory_space<vmem>>, vector<32x32xf32>
    %cst_95 = arith.constant dense<0.000000e+00> : vector<4x32xf32>
    %150 = tpu.matmul %148, %149, %cst_95 {dimension_numbers = #tpu.dot_dimension_numbers<[1], [0], [0], [1], [0, 0, 1, 1], [], []>} : vector<4x32xf32>, vector<32x32xf32>, vector<4x32xf32> -> vector<4x32xf32>
    %c0_96 = arith.constant 0 : index
    %c0_97 = arith.constant 0 : index
    %151 = vector.load %arg31[%c0_96, %c0_97] : memref<1x32xf32, #tpu.memory_space<vmem>>, vector<1x32xf32>
    %152 = vector.broadcast %151 : vector<1x32xf32> to vector<4x32xf32>
    %153 = arith.addf %150, %152 : vector<4x32xf32>
    %c0_98 = arith.constant 0 : index
    %c0_99 = arith.constant 0 : index
    %154 = vector.load %arg32[%c0_98, %c0_99] : memref<32x40xf32, #tpu.memory_space<vmem>>, vector<32x40xf32>
    %cst_100 = arith.constant dense<0.000000e+00> : vector<4x40xf32>
    %155 = tpu.matmul %153, %154, %cst_100 {dimension_numbers = #tpu.dot_dimension_numbers<[1], [0], [0], [1], [0, 0, 1, 1], [], []>} : vector<4x32xf32>, vector<32x40xf32>, vector<4x40xf32> -> vector<4x40xf32>
    %c0_101 = arith.constant 0 : index
    %c0_102 = arith.constant 0 : index
    %156 = vector.load %arg33[%c0_101, %c0_102] : memref<1x40xf32, #tpu.memory_space<vmem>>, vector<1x40xf32>
    %157 = vector.broadcast %156 : vector<1x40xf32> to vector<4x40xf32>
    %158 = arith.addf %155, %157 : vector<4x40xf32>
    %159 = vector.extract_strided_slice %158 {offsets = [0, 0], sizes = [4, 8], strides = [1, 1]} : vector<4x40xf32> to vector<4x8xf32>
    %c0_103 = arith.constant 0 : index
    %c0_104 = arith.constant 0 : index
    %160 = vector.load %arg34[%c0_103, %c0_104] : memref<4x8xf32, #tpu.memory_space<vmem>>, vector<4x8xf32>
    tpu.vector_store %arg34[%c0_103, %c0_104], %159 {strides = array<i32>} : memref<4x8xf32, #tpu.memory_space<vmem>>, vector<4x8xf32>,
    %161 = vector.extract_strided_slice %158 {offsets = [0, 8], sizes = [4, 32], strides = [1, 1]} : vector<4x40xf32> to vector<4x32xf32>
    %c0_105 = arith.constant 0 : index
    %c0_106 = arith.constant 0 : index
    %162 = vector.load %arg35[%c0_105, %c0_106] : memref<4x32xf32, #tpu.memory_space<vmem>>, vector<4x32xf32>
    tpu.vector_store %arg35[%c0_105, %c0_106], %161 {strides = array<i32>} : memref<4x32xf32, #tpu.memory_space<vmem>>, vector<4x32xf32>,
    return
  }
}

</mosaic_0001>

<bundles_post_ra>
// kernel: tpu_custom_call.1
= control target key start
LH: loop header
LB: loop body
LE: loop exit
PB: predicated region body
PF: predicated region fallthrough
CT: control target
= control target key end

     0   :  { %s3442_s6 = smov 1   ;;  %s3443_s10 = smov 2   ;;  %s4576_s0 = inlined_call_operand.smem [shape: u32[36], index: -1, kind: input, shape index: {}] }
   0x1   :  { %s3502_s5 = sld [smem:[%s4576_s0]]   ;;  %s3444_s14 = smov 3  }
   0x2   :  { %s3507_s9 = sld [smem:[%s4576_s0 + %s3442_s6]]   ;;  %s3445_s18 = smov 4  }
   0x3   :  { %s3512_s13 = sld [smem:[%s4576_s0 + %s3443_s10]]   ;;  %s3446_s22 = smov 5  }
   0x4   :  { %s3517_s17 = sld [smem:[%s4576_s0 + %s3444_s14]]   ;;  %s3447_s26 = smov 6  }
   0x5   :  { %s3522_s21 = sld [smem:[%s4576_s0 + %s3445_s18]]   ;;  %s3448_s30 = smov 7  }
   0x6   :  { %s3527_s25 = sld [smem:[%s4576_s0 + %s3446_s22]]   ;;  %s3449_s4 = smov 8  }
   0x7   :  { %s3532_s29 = sld [smem:[%s4576_s0 + %s3447_s26]]   ;;  %s3450_s10 = smov 9  }
   0x8   :  { %s3537_s3 = sld [smem:[%s4576_s0 + %s3448_s30]]   ;;  %s3451_s15 = smov 10  }
   0x9   :  { %4585 = sst [smem:[#allocation30_spill]] %s3512_s13  ;;  %s3452_s20 = smov 11  }
   0xa   :  { %s3542_s8 = sld [smem:[%s4576_s0 + %s3449_s4]]   ;;  %s3453_s26 = smov 12  }
   0xb   :  { %4586 = sst [smem:[#allocation31_spill]] %s3522_s21  ;;  %s3454_s1 = smov 13  }
   0xc   :  { %4587 = sst [smem:[#allocation32_spill]] %s3527_s25  ;;  %s3455_s7 = smov 14  }
   0xd   :  { %s3547_s14 = sld [smem:[%s4576_s0 + %s3450_s10]]   ;;  %s3457_s22 = smov 16  }
   0xe   :  { %s3552_s19 = sld [smem:[%s4576_s0 + %s3451_s15]]   ;;  %s3456_s15 = smov 15  }
   0xf   :  { %s3557_s24 = sld [smem:[%s4576_s0 + %s3452_s20]]   ;;  %s3458_s28 = smov 17  }
  0x10   :  { %s3562_s30 = sld [smem:[%s4576_s0 + %s3453_s26]]  }
  0x11   :  { %s3567_s6 = sld [smem:[%s4576_s0 + %s3454_s1]]  }
  0x12   :  { %s3572_s12 = sld [smem:[%s4576_s0 + %s3455_s7]]   ;;  %s3459_s7 = smov 18  }
  0x13   :  { %s3577_s20 = sld [smem:[%s4576_s0 + %s3456_s15]]   ;;  %s3460_s15 = smov 19  }
  0x14   :  { %4588 = sst [smem:[#allocation33_spill]] %s3552_s19 }
  0x15   :  { %4589 = sst [smem:[#allocation34_spill]] %s3557_s24 }
  0x16   :  { %s3582_s27 = sld [smem:[%s4576_s0 + %s3457_s22]]   ;;  %s3461_s22 = smov 20  }
  0x17   :  { %s3587_s4 = sld [smem:[%s4576_s0 + %s3458_s28]]   ;;  %s3462_s28 = smov 21  }
  0x18   :  { %4590 = sst [smem:[#allocation35_spill]] %s3572_s12 }
  0x19   :  { %4591 = sst [smem:[#allocation36_spill]] %s3577_s20 }
  0x1a   :  { %s3592_s24 = sld [smem:[%s4576_s0 + %s3459_s7]]   ;;  %s3463_s7 = smov 22  }
  0x1b   :  { %s3597_s19 = sld [smem:[%s4576_s0 + %s3460_s15]]   ;;  %s3464_s15 = smov 23  }
  0x1c   :  { %4592 = sst [smem:[#allocation37_spill]] %s3582_s27 }
  0x1d   :  { %4593 = sst [smem:[#allocation38_spill]] %s3587_s4 }
  0x1e   :  { %s3602_s20 = sld [smem:[%s4576_s0 + %s3461_s22]]   ;;  %s3465_s22 = smov 24  }
  0x1f   :  { %s3607_s4 = sld [smem:[%s4576_s0 + %s3462_s28]]   ;;  %s3466_s28 = smov 25  }
  0x20   :  { %4594 = sst [smem:[#allocation39_spill]] %s3592_s24 }
  0x21   :  { %4595 = sst [smem:[#allocation40_spill]] %s3597_s19 }
  0x22   :  { %s3612_s24 = sld [smem:[%s4576_s0 + %s3463_s7]]   ;;  %s3467_s7 = smov 26  }
  0x23   :  { %s3617_s19 = sld [smem:[%s4576_s0 + %s3464_s15]]   ;;  %s3468_s15 = smov 27  }
  0x24   :  { %4596 = sst [smem:[#allocation41_spill]] %s3602_s20 }
  0x25   :  { %4597 = sst [smem:[#allocation42_spill]] %s3607_s4 }
  0x26   :  { %s3622_s20 = sld [smem:[%s4576_s0 + %s3465_s22]]   ;;  %s3469_s22 = smov 28  }
  0x27   :  { %s3627_s4 = sld [smem:[%s4576_s0 + %s3466_s28]]   ;;  %s3470_s28 = smov 29  }
  0x28   :  { %s3632_s27 = sld [smem:[%s4576_s0 + %s3467_s7]]   ;;  %s3471_s7 = smov 30  }
  0x29   :  { %4598 = sst [smem:[#allocation43_spill]] %s3617_s19 }
  0x2a   :  { %s3637_s19 = sld [smem:[%s4576_s0 + %s3468_s15]]   ;;  %s3472_s15 = smov 31  }
  0x2b   :  { %s3642_s25 = sld [smem:[%s4576_s0 + %s3469_s22]]   ;;  %s3473_s22 = smov 32  }
  0x2c   :  { %s3652_s12 = sld [smem:[%s4576_s0 + %s3471_s7]]   ;;  %s3475_s7 = smov 34  }
  0x2d   :  { %4599 = sst [smem:[#allocation44_spill]] %s3627_s4 }
  0x2e   :  { %s3647_s4 = sld [smem:[%s4576_s0 + %s3470_s28]]   ;;  %s3474_s28 = smov 33  }
  0x2f   :  { %s3662_s13 = sld [smem:[%s4576_s0 + %s3473_s22]]  }
  0x30   :  { %4600 = sst [smem:[#allocation45_spill]] %s3637_s19 }
  0x31   :  { %s3657_s19 = sld [smem:[%s4576_s0 + %s3472_s15]]   ;;  %s3476_s15 = smov 35  }
  0x32   :  { %s3672_s21 = sld [smem:[%s4576_s0 + %s3475_s7]]  }
  0x34   :  { %4601 = sst [smem:[#allocation46_spill]] %s3647_s4 }
  0x35   :  { %s3667_s4 = sld [smem:[%s4576_s0 + %s3474_s28]]  }
  0x37   :  { %4602 = sst [smem:[#allocation47_spill]] %s3657_s19 }
  0x38   :  { %s3677_s19 = sld [smem:[%s4576_s0 + %s3476_s15]]  }
  0x39   :  { %77 = vsyncpa [#allocation3], 0 }
  0x3a   :  { %78 = vsyncpa [#allocation6], 0 }
  0x3b   :  { %79 = vsyncpa [#allocation9], 0 }
  0x3c   :  { %80 = vsyncpa [#allocation12], 0 }
  0x3d   :  { %81 = vsyncpa [#allocation15], 0 }
  0x3e   :  { %82 = vsyncpa [#allocation18], 0 }
  0x3f   :  { %83 = vsyncpa [#allocation4], 0  ;;  %s104_s22 = sshll.u32 %s3517_s17, 4  ;;  %s105_s22 = int_to_ptr.hbm [resolvable:$true] %s104_s22 }
  0x40   :  { %84 = vsyncpa [#allocation21], 0  ;;  %s3477_s23 = smov [#allocation5]   ;;  %s135_s28 = sshll.u32 %s3537_s3, 4  ;;  %s136_s28 = int_to_ptr.hbm [resolvable:$true] %s135_s28 }
  0x41   :  { %s106_s26 = sshll.u32 %s3477_s23, 4  ;;  %s3138_s0 = sshra.s32 %s105_s22, 4  ;;  %s107_s26 = int_to_ptr.vmem [resolvable:$true] %s106_s26  ;;  %s3139_s0 = int_to_ptr.hbm [resolvable:$true] %s3138_s0 }
  0x42   :  { %s3140_s1 = scalar_lea.hbm %s3139_s0, 16  ;;  %s3142_s2 = scalar_lea.hbm %s3517_s17, 16 }
  0x43   :  { %p3141_p0 = scmp.ne.s32.totalorder %s3139_s0, %s3140_s1  ;;  %p3143_p1 = scmp.lt.s32.totalorder %s3139_s0, %s3517_s17 }
  0x44   :  { %p3144_p2 = scmp.lt.s32.totalorder %s3142_s2, %s3140_s1 }
  0x46   :  { %p3145_p3 = por %p3144_p2, %p3143_p1 }
  0x48   :  { %p3146_p4 = pnand %p3145_p3, %p3141_p0 }
  0x4a   :  { %3149 = shalt.err (!%p3146_p4)
}
  0x4b   :  { %s3478_s7 = smov 128   ;;  %s3479_s10 = smov 8  }
  0x4c   :  { %112 = dma.hbm_to_vmem [thread:$0]  %s105_s22, 256, %s107_s26, [#allocation6], %s3478_s7, %s3478_s7, %s3479_s10  }
  0x4d   :  { %s3480_s11 = smov [#allocation8]   ;;  %s188_s16 = sshll.u32 %s3622_s20, 4  ;;  %s3687_s16 = int_to_ptr.hbm [resolvable:$true] %s188_s16 }
  0x4e   :  { %s137_s15 = sshll.u32 %s3480_s11, 4  ;;  %s3162_s17 = sshra.s32 %s136_s28, 4  ;;  %s138_s15 = int_to_ptr.vmem [resolvable:$true] %s137_s15  ;;  %s3163_s17 = int_to_ptr.hbm [resolvable:$true] %s3162_s17 }
  0x4f   :  { %s3164_s18 = scalar_lea.hbm %s3163_s17, 4  ;;  %s3166_s23 = scalar_lea.hbm %s3537_s3, 4 }
  0x50   :  { %p3165_p5 = scmp.ne.s32.totalorder %s3163_s17, %s3164_s18  ;;  %p3167_p6 = scmp.lt.s32.totalorder %s3163_s17, %s3537_s3 }
  0x51   :  { %p3168_p7 = scmp.lt.s32.totalorder %s3166_s23, %s3164_s18 }
  0x53   :  { %p3169_p8 = por %p3168_p7, %p3167_p6 }
  0x55   :  { %p3170_p9 = pnand %p3169_p8, %p3165_p5 }
  0x57   :  { %3173 = shalt.err (!%p3170_p9)
}
  0x58   :  { %140 = dma.hbm_to_vmem [thread:$0]  %s136_s28, 64, %s138_s15, [#allocation9]  }
  0x59   :  { %s218_s22 = sshll.u32 %s3642_s25, 4  ;;  %s3481_s26 = smov [#allocation11]   ;;  %s3692_s22 = int_to_ptr.hbm [resolvable:$true] %s218_s22 }
  0x5a   :  { %s190_s0 = sshll.u32 %s3481_s26, 4  ;;  %s3186_s1 = sshra.s32 %s3687_s16, 4  ;;  %s191_s0 = int_to_ptr.vmem [resolvable:$true] %s190_s0  ;;  %s3187_s1 = int_to_ptr.hbm [resolvable:$true] %s3186_s1 }
  0x5b   :  { %s3188_s2 = scalar_lea.hbm %s3187_s1, 32  ;;  %s3190_s3 = scalar_lea.hbm %s3622_s20, 32 }
  0x5c   :  { %p3189_p10 = scmp.ne.s32.totalorder %s3187_s1, %s3188_s2  ;;  %p3191_p11 = scmp.lt.s32.totalorder %s3187_s1, %s3622_s20 }
  0x5d   :  { %p3192_p12 = scmp.lt.s32.totalorder %s3190_s3, %s3188_s2 }
  0x5f   :  { %p3193_p13 = por %p3192_p12, %p3191_p11 }
  0x61   :  { %p3194_p0 = pnand %p3193_p13, %p3189_p10 }
  0x63   :  { %3197 = shalt.err (!%p3194_p0)
}
  0x64   :  { %196 = dma.hbm_to_vmem [thread:$0]  %s3687_s16, 512, %s191_s0, [#allocation12], %s3478_s7, %s3478_s7, %s3479_s10  }
  0x65   :  { %s3482_s28 = smov [#allocation14]   ;;  %s92_s15 = sshll.u32 %s3507_s9, 4  ;;  %s93_s15 = int_to_ptr.hbm [resolvable:$true] %s92_s15 }
  0x66   :  { %s220_s11 = sshll.u32 %s3482_s28, 4  ;;  %s3210_s17 = sshra.s32 %s3692_s22, 4  ;;  %s221_s11 = int_to_ptr.vmem [resolvable:$true] %s220_s11  ;;  %s3211_s17 = int_to_ptr.hbm [resolvable:$true] %s3210_s17 }
  0x67   :  { %s3212_s20 = scalar_lea.hbm %s3211_s17, 32  ;;  %s3214_s18 = scalar_lea.hbm %s3642_s25, 32 }
  0x68   :  { %p3213_p1 = scmp.ne.s32.totalorder %s3211_s17, %s3212_s20  ;;  %p3215_p2 = scmp.lt.s32.totalorder %s3211_s17, %s3642_s25 }
  0x69   :  { %p3216_p3 = scmp.lt.s32.totalorder %s3214_s18, %s3212_s20 }
  0x6b   :  { %p3217_p4 = por %p3216_p3, %p3215_p2 }
  0x6d   :  { %p3218_p5 = pnand %p3217_p4, %p3213_p1 }
  0x6f   :  { %3221 = shalt.err (!%p3218_p5)
}
  0x70   :  { %226 = dma.hbm_to_vmem [thread:$0]  %s3692_s22, 512, %s221_s11, [#allocation15], %s3478_s7, %s3478_s7, %s3479_s10  }
  0x71   :  { %s121_s16 = sshll.u32 %s3532_s29, 4  ;;  %s3483_s23 = smov [#allocation2]   ;;  %s3710_s16 = int_to_ptr.hbm [resolvable:$true] %s121_s16 }
  0x72   :  { %s94_s26 = sshll.u32 %s3483_s23, 4  ;;  %s3234_s0 = sshra.s32 %s93_s15, 4  ;;  %s95_s26 = int_to_ptr.vmem [resolvable:$true] %s94_s26  ;;  %s3235_s0 = int_to_ptr.hbm [resolvable:$true] %s3234_s0 }
  0x73   :  { %s3236_s25 = scalar_lea.hbm %s3235_s0, 4  ;;  %s3238_s1 = scalar_lea.hbm %s3507_s9, 4 }
  0x74   :  { %p3237_p6 = scmp.ne.s32.totalorder %s3235_s0, %s3236_s25  ;;  %p3239_p7 = scmp.lt.s32.totalorder %s3235_s0, %s3507_s9 }
  0x75   :  { %p3240_p8 = scmp.lt.s32.totalorder %s3238_s1, %s3236_s25 }
  0x77   :  { %p3241_p9 = por %p3240_p8, %p3239_p7 }
  0x79   :  { %p3242_p10 = pnand %p3241_p9, %p3237_p6 }
  0x7b   :  { %3245 = shalt.err (!%p3242_p10)
}
  0x7c   :  { %97 = dma.hbm_to_vmem [thread:$0]  %s93_s15, 64, %s95_s26, [#allocation3]  }
  0x7d   :  { %s3484_s22 = smov [#allocation7]   ;;  %s173_s3 = sshll.u32 %s3612_s24, 4  ;;  %s3715_s3 = int_to_ptr.hbm [resolvable:$true] %s173_s3 }
  0x7e   :  { %s123_s2 = sshll.u32 %s3484_s22, 4  ;;  %s3258_s28 = sshra.s32 %s3710_s16, 4  ;;  %s124_s2 = int_to_ptr.vmem [resolvable:$true] %s123_s2  ;;  %s3259_s28 = int_to_ptr.hbm [resolvable:$true] %s3258_s28 }
  0x7f   :  { %s3260_s11 = scalar_lea.hbm %s3259_s28, 16  ;;  %s3262_s9 = scalar_lea.hbm %s3532_s29, 16 }
  0x80   :  { %p3261_p11 = scmp.ne.s32.totalorder %s3259_s28, %s3260_s11  ;;  %p3263_p12 = scmp.lt.s32.totalorder %s3259_s28, %s3532_s29 }
  0x81   :  { %p3264_p13 = scmp.lt.s32.totalorder %s3262_s9, %s3260_s11 }
  0x83   :  { %p3265_p0 = por %p3264_p13, %p3263_p12 }
  0x85   :  { %p3266_p1 = pnand %p3265_p0, %p3261_p11 }
  0x87   :  { %3269 = shalt.err (!%p3266_p1)
}
  0x88   :  { %129 = dma.hbm_to_vmem [thread:$0]  %s3710_s16, 256, %s124_s2, [#allocation6], %s3478_s7, %s3478_s7, %s3479_s10  }
  0x89   :  { %s203_s15 = sshll.u32 %s3632_s27, 4  ;;  %s3485_s17 = smov [#allocation10]   ;;  %s3725_s15 = int_to_ptr.hbm [resolvable:$true] %s203_s15 }
  0x8a   :  { %s175_s20 = sshll.u32 %s3485_s17, 4  ;;  %s3282_s29 = sshra.s32 %s3715_s3, 4  ;;  %s176_s20 = int_to_ptr.vmem [resolvable:$true] %s175_s20  ;;  %s3283_s29 = int_to_ptr.hbm [resolvable:$true] %s3282_s29 }
  0x8b   :  { %s3284_s18 = scalar_lea.hbm %s3283_s29, 32  ;;  %s3286_s23 = scalar_lea.hbm %s3612_s24, 32 }
  0x8c   :  { %p3285_p2 = scmp.ne.s32.totalorder %s3283_s29, %s3284_s18  ;;  %p3287_p3 = scmp.lt.s32.totalorder %s3283_s29, %s3612_s24 }
  0x8d   :  { %p3288_p4 = scmp.lt.s32.totalorder %s3286_s23, %s3284_s18 }
  0x8f   :  { %p3289_p5 = por %p3288_p4, %p3287_p3 }
  0x91   :  { %p3290_p6 = pnand %p3289_p5, %p3285_p2 }
  0x93   :  { %3293 = shalt.err (!%p3290_p6)
}
  0x94   :  { %181 = dma.hbm_to_vmem [thread:$0]  %s3715_s3, 512, %s176_s20, [#allocation9], %s3478_s7, %s3478_s7, %s3479_s10  }
  0x95   :  { %s3486_s16 = smov [#allocation13]   ;;  %s233_s0 = sshll.u32 %s3652_s12, 4  ;;  %s3735_s0 = int_to_ptr.hbm [resolvable:$true] %s233_s0 }
  0x96   :  { %s205_s26 = sshll.u32 %s3486_s16, 4  ;;  %s3306_s24 = sshra.s32 %s3725_s15, 4  ;;  %s206_s26 = int_to_ptr.vmem [resolvable:$true] %s205_s26  ;;  %s3307_s24 = int_to_ptr.hbm [resolvable:$true] %s3306_s24 }
  0x97   :  { %s3308_s25 = scalar_lea.hbm %s3307_s24, 32  ;;  %s3310_s1 = scalar_lea.hbm %s3632_s27, 32 }
  0x98   :  { %p3309_p7 = scmp.ne.s32.totalorder %s3307_s24, %s3308_s25  ;;  %p3311_p8 = scmp.lt.s32.totalorder %s3307_s24, %s3632_s27 }
  0x99   :  { %p3312_p9 = scmp.lt.s32.totalorder %s3310_s1, %s3308_s25 }
  0x9b   :  { %p3313_p10 = por %p3312_p9, %p3311_p8 }
  0x9d   :  { %p3314_p11 = pnand %p3313_p10, %p3309_p7 }
  0x9f   :  { %3317 = shalt.err (!%p3314_p11)
}
  0xa0   :  { %211 = dma.hbm_to_vmem [thread:$0]  %s3725_s15, 512, %s206_s26, [#allocation12], %s3478_s7, %s3478_s7, %s3479_s10  }
  0xa1   :  { %s248_s22 = sshll.u32 %s3662_s13, 4  ;;  %s3487_s2 = smov [#allocation16]   ;;  %s3745_s22 = int_to_ptr.hbm [resolvable:$true] %s248_s22 }
  0xa2   :  { %s235_s3 = sshll.u32 %s3487_s2, 4  ;;  %s3330_s27 = sshra.s32 %s3735_s0, 4  ;;  %s236_s3 = int_to_ptr.vmem [resolvable:$true] %s235_s3  ;;  %s3331_s27 = int_to_ptr.hbm [resolvable:$true] %s3330_s27 }
  0xa3   :  { %s3332_s28 = scalar_lea.hbm %s3331_s27, 32  ;;  %s3334_s11 = scalar_lea.hbm %s3652_s12, 32 }
  0xa4   :  { %p3333_p12 = scmp.ne.s32.totalorder %s3331_s27, %s3332_s28  ;;  %p3335_p13 = scmp.lt.s32.totalorder %s3331_s27, %s3652_s12 }
  0xa5   :  { %p3336_p0 = scmp.lt.s32.totalorder %s3334_s11, %s3332_s28 }
  0xa7   :  { %p3337_p1 = por %p3336_p0, %p3335_p13 }
  0xa9   :  { %p3338_p2 = pnand %p3337_p1, %p3333_p12 }
  0xab   :  { %3341 = shalt.err (!%p3338_p2)
}
  0xac   :  { %241 = dma.hbm_to_vmem [thread:$0]  %s3735_s0, 512, %s236_s3, [#allocation15], %s3478_s7, %s3478_s7, %s3479_s10  }
  0xad   :  { %s3488_s9 = smov [#allocation17]   ;;  %s3354_s17 = sshra.s32 %s3745_s22, 4  ;;  %s3355_s17 = int_to_ptr.hbm [resolvable:$true] %s3354_s17 }
  0xae   :  { %s250_s15 = sshll.u32 %s3488_s9, 4  ;;  %s3356_s20 = scalar_lea.hbm %s3355_s17, 32  ;;  %s251_s15 = int_to_ptr.vmem [resolvable:$true] %s250_s15 }
  0xaf   :  { %p3357_p3 = scmp.ne.s32.totalorder %s3355_s17, %s3356_s20  ;;  %s3358_s12 = scalar_lea.hbm %s3662_s13, 32 }
  0xb0   :  { %p3359_p4 = scmp.lt.s32.totalorder %s3355_s17, %s3662_s13  ;;  %p3360_p5 = scmp.lt.s32.totalorder %s3358_s12, %s3356_s20 }
  0xb2   :  { %p3361_p6 = por %p3360_p5, %p3359_p4 }
  0xb4   :  { %p3362_p7 = pnand %p3361_p6, %p3357_p3 }
  0xb6   :  { %3365 = shalt.err (!%p3362_p7)
}
  0xb7   :  { %256 = dma.hbm_to_vmem [thread:$0]  %s3745_s22, 512, %s251_s15, [#allocation18], %s3478_s7, %s3478_s7, %s3479_s10  }
  0xb8   :  { %3426 = dma.done.wait [#allocation3], 64  }
  0xb9   :  { %3427 = vsyncadd [#allocation3], 4294967232 }
  0xba   :  { %3428 = dma.done.wait [#allocation6], 512  }
  0xbb   :  { %3429 = vsyncadd [#allocation6], 4294966784 }
  0xbc   :  { %3430 = dma.done.wait [#allocation9], 576  }
  0xbd   :  { %3431 = vsyncadd [#allocation9], 4294966720 }
  0xbe   :  { %3432 = dma.done.wait [#allocation12], 1024  }
  0xbf   :  { %3433 = vsyncadd [#allocation12], 4294966272 }
  0xc0   :  { %3434 = dma.done.wait [#allocation15], 1024  }
  0xc1   :  { %3435 = vsyncadd [#allocation15], 4294966272 }
  0xc2   :  { %3436 = dma.done.wait [#allocation18], 512  }
  0xc3   :  { %3437 = vsyncadd [#allocation18], 4294966784  ;;  %v347_v0 = vld [vmem:[%s3542_s8 + $0x18] sm:$0xff]  ;;  %v346_v1 = vld [vmem:[%s3542_s8 + $0x10] sm:$0xff]  ;;  %vm352_vm0 = vcmask 261120   ;;  %s4603_s13 = sld [smem:[#allocation31_spill]] }
  0xc4   :  { %377 = vmatpush.msra.mxu0 %v347_v0  ;;  %v345_v2 = vld [vmem:[%s3542_s8 + $0x8] sm:$0xff]  ;;  %v344_v3 = vld [vmem:[%s3542_s8] sm:$0xff]  ;;  %v397_v4 = vld [vmem:[%s3562_s30 + $0x18] sm:$0xff]  ;;  %s4604_s8 = sld [smem:[#allocation30_spill]]  ;;  %s3491_s27 = smov [#allocation19]  }
  0xc5   :  { %v340_v5 = vld [vmem:[%s3502_s5] sm:$0xff]  ;;  %426 = vmatpush.msra.mxu1 %v397_v4  ;;  %v396_v6 = vld [vmem:[%s3562_s30 + $0x10] sm:$0xff]  ;;  %v341_v7 = vld [vmem:[%s3502_s5 + $0x8] sm:$0xff]  ;;  %s4607_s7 = sld [smem:[#allocation37_spill]]  ;;  %s2644_s28 = sshll.u32 %s3491_s27, 4  ;;  %s2645_s28 = int_to_ptr.vmem [resolvable:$true] %s2644_s28 }
  0xc6   :  { %378 = vmatpush.msra.mxu0 %v346_v1  ;;  %v342_v8 = vld [vmem:[%s3502_s5 + $0x10] sm:$0xff]  ;;  %v343_v9 = vld [vmem:[%s3502_s5 + $0x18] sm:$0xff]  ;;  %v395_v10 = vld [vmem:[%s3562_s30 + $0x8] sm:$0xff]  ;;  %s3489_s5 = smov 96   ;;  %s4608_s10 = sld [smem:[#allocation36_spill]] }
  0xc7   :  { %427 = vmatpush.msra.mxu1 %v396_v6  ;;  %v394_v11 = vld [vmem:[%s3562_s30] sm:$0xff]  ;;  %s4605_s30 = sld [smem:[#allocation35_spill]]  ;;  %s2646_s11 = sshll.u32 %s3672_s21, 4  ;;  %s2647_s11 = int_to_ptr.hbm [resolvable:$true] %s2646_s11 }
  0xc8   :  { %379 = vmatpush.msra.mxu0 %v345_v2  ;;  %v2929_v12 = vld [vmem:[%s3547_s14] ss:$0 sm:$0xff]  ;;  %s3490_s14 = smov 64   ;;  %s4609_s29 = sld [smem:[#allocation38_spill]] }
  0xc9   :  { %428 = vmatpush.msra.mxu1 %v395_v10  ;;  %v2930_v22 = vld [vmem:[%s3567_s6] ss:$0 sm:$0xff]  ;;  %v300_v39 = vld [vmem:[%s4603_s13 + $0x8] sm:$0xff]  ;;  %v301_v42 = vld [vmem:[%s4603_s13 + $0x10] sm:$0xff]  ;;  %s4606_s6 = sld [smem:[#allocation32_spill]]  ;;  %s3492_s9 = smov 120  }
  0xca   :  { %380 = vmatpush.msra.mxu0 %v344_v3  ;;  %v299_v35 = vld [vmem:[%s4603_s13] sm:$0xff]  ;;  %v302_v45 = vld [vmem:[%s4603_s13 + $0x18] sm:$0xff]  ;;  %v304_v51 = vld [vmem:[%s4603_s13 + $0x28] sm:$0xff]  ;;  %s4610_s18 = sld [smem:[#allocation39_spill]]  ;;  %s3390_s15 = sshra.s32 %s2647_s11, 4  ;;  %s3391_s15 = int_to_ptr.hbm [resolvable:$true] %s3390_s15 }
  0xcb   :  { %2712 = vmatmul.msk.f32.vlgmr.msra.gmra.mxu0 %vm352_vm0, %v340_v5  ;;  %429 = vmatpush.msra.mxu1 %v394_v11  ;;  %v303_v48 = vld [vmem:[%s4603_s13 + $0x20] sm:$0xff]  ;;  %v305_v54 = vld [vmem:[%s4603_s13 + $0x30] sm:$0xff]  ;;  %v306_v57 = vld [vmem:[%s4603_s13 + $0x38] sm:$0xff]  ;;  %s4611_s23 = sld [smem:[#allocation33_spill]]  ;;  %s3392_s17 = scalar_lea.hbm %s3391_s15, 4 }
  0xcc   :  { %v307_v60 = vld [vmem:[%s4603_s13 + $0x40] sm:$0xff]  ;;  %v308_v63 = vld [vmem:[%s4603_s13 + $0x48] sm:$0xff]  ;;  %v309_v2 = vld [vmem:[%s4603_s13 + $0x50] sm:$0xff]  ;;  %s4612_s16 = sld [smem:[#allocation41_spill]]  ;;  %p3393_p8 = scmp.ne.s32.totalorder %s3391_s15, %s3392_s17 }
  0xcd   :  { %v310_v5 = vld [vmem:[%s4603_s13 + $0x58] sm:$0xff]  ;;  %v312_v11 = vld [vmem:[%s4603_s13 + $0x68] sm:$0xff]  ;;  %s4613_s26 = sld [smem:[#allocation34_spill]]  ;;  %s3394_s20 = scalar_lea.hbm %s3672_s21, 4 }
  0xce   :  { %s4614_s0 = sld [smem:[#allocation40_spill]]  ;;  %p3395_p9 = scmp.lt.s32.totalorder %s3391_s15, %s3672_s21 }
  0xcf   :  { %s4615_s24 = sld [smem:[#allocation43_spill]]  ;;  %p3396_p10 = scmp.lt.s32.totalorder %s3394_s20, %s3392_s17 }
  0xd0   :  { %s4616_s25 = sld [smem:[#allocation42_spill]] }
  0xd1   :  { %s4617_s1 = sld [smem:[#allocation46_spill]]  ;;  %p3397_p11 = por %p3396_p10, %p3395_p9 }
  0xd2   :  { %s4618_s22 = sld [smem:[#allocation44_spill]] }
  0xd3   :  { %2713 = vmatmul.msk.f32.gmra.mxu0 %vm352_vm0, %v341_v7  ;;  %s4619_s2 = sld [smem:[#allocation45_spill]]  ;;  %p3398_p12 = pnand %p3397_p11, %p3393_p8 }
  0xd4   :  { %s4620_s3 = sld [smem:[#allocation47_spill]] }
  0xdb   :  { %2714 = vmatmul.msk.f32.gmra.mxu0 %vm352_vm0, %v342_v8  ;;  %v311_v8 = vld [vmem:[%s4603_s13 + $0x60] sm:$0xff] }
  0xe3   :  { %2715 = vmatmul.msk.f32.gmra.mxu0 %vm352_vm0, %v343_v9 }
 0x148   :  { %v382_v13 = vpop.f32.mrf.mxu0 }
 0x149   :  { %v383_v14 = vadd.f32 %v2929_v12, %v382_v13 }
 0x14b   :  { %2716 = vmatmul.msk.f32.vlgmr.msra.gmra.mxu1 %vm352_vm0, %v383_v14  ;;  %v313_v14 = vld [vmem:[%s4603_s13 + $0x70] sm:$0xff] }
 0x150   :  { %v385_v15 = vpop.f32.mrf.mxu0 }
 0x151   :  { %v386_v16 = vadd.f32 %v2929_v12, %v385_v15 }
 0x153   :  { %2717 = vmatmul.msk.f32.gmra.mxu1 %vm352_vm0, %v386_v16 }
 0x158   :  { %v388_v17 = vpop.f32.mrf.mxu0 }
 0x159   :  { %v389_v18 = vadd.f32 %v2929_v12, %v388_v17  ;;  %v314_v17 = vld [vmem:[%s4603_s13 + $0x78] sm:$0xff] }
 0x15b   :  { %2718 = vmatmul.msk.f32.gmra.mxu1 %vm352_vm0, %v389_v18 }
 0x160   :  { %v391_v19 = vpop.f32.mrf.mxu0 }
 0x161   :  { %v392_v20 = vadd.f32 %v2929_v12, %v391_v19 }
 0x163   :  { %2719 = vmatmul.msk.f32.gmra.mxu1 %vm352_vm0, %v392_v20  ;;  %v319_v20 = vld [vmem:[%s4604_s8] sm:$0xff] }
 0x1c8   :  { %v431_v21 = vpop.f32.mrf.mxu1 }
 0x1c9   :  { %v3785_v25 = vadd.f32 %v2930_v22, %v431_v21 }
 0x1cb   :  { %v443_v36 = vmul.f32 %v3785_v25, %v299_v35  ;;  %v447_v49 = vmul.f32 %v3785_v25, %v303_v48  ;;  %v451_v61 = vmul.f32 %v3785_v25, %v307_v60  ;;  %v455_v9 = vmul.f32 %v3785_v25, %v311_v8 }
 0x1cd   :  { %v459_v38 = vmul.f32 0.35355338, %v443_v36  ;;  %v463_v50 = vmul.f32 0.35355338, %v447_v49  ;;  %v467_v62 = vmul.f32 0.35355338, %v451_v61 }
 0x1ce   :  { %v471_v10 = vmul.f32 0.35355338, %v455_v9 }
 0x1d0   :  { %v434_v23 = vpop.f32.mrf.mxu1 }
 0x1d1   :  { %v3783_v24 = vadd.f32 %v2930_v22, %v434_v23 }
 0x1d3   :  { %481 = vrot.lane.b32.xlu1 %v3783_v24, %s3489_s5  ;;  %v2894_v26 = vpack.i.bf16 %v3785_v25, %v3783_v24  ;;  %v444_v40 = vmul.f32 %v3783_v24, %v300_v39  ;;  %v448_v52 = vmul.f32 %v3783_v24, %v304_v51  ;;  %v452_v0 = vmul.f32 %v3783_v24, %v308_v63  ;;  %v329_v63 = vld [vmem:[%s4604_s8 + $0x50] sm:$0xff] }
 0x1d4   :  { %v456_v12 = vmul.f32 %v3783_v24, %v312_v11 }
 0x1d5   :  { %v460_v41 = vmul.f32 0.35355338, %v444_v40  ;;  %v464_v53 = vmul.f32 0.35355338, %v448_v52  ;;  %v468_v1 = vmul.f32 0.35355338, %v452_v0 }
 0x1d6   :  { %v472_v13 = vmul.f32 0.35355338, %v456_v12 }
 0x1d8   :  { %v437_v27 = vpop.f32.mrf.mxu1 }
 0x1d9   :  { %v3795_v30 = vadd.f32 %v2930_v22, %v437_v27  ;;  %v320_v27 = vld [vmem:[%s4604_s8 + $0x8] sm:$0xff] }
 0x1db   :  { %479 = vrot.lane.b32.xlu1 %v3785_v25, %s3489_s5  ;;  %v445_v43 = vmul.f32 %v3795_v30, %v301_v42  ;;  %v449_v55 = vmul.f32 %v3795_v30, %v305_v54  ;;  %v453_v3 = vmul.f32 %v3795_v30, %v309_v2  ;;  %v457_v15 = vmul.f32 %v3795_v30, %v313_v14  ;;  %v323_v42 = vld [vmem:[%s4604_s8 + $0x20] sm:$0xff]  ;;  %v326_v54 = vld [vmem:[%s4604_s8 + $0x38] sm:$0xff] }
 0x1dd   :  { %v461_v44 = vmul.f32 0.35355338, %v445_v43  ;;  %v465_v56 = vmul.f32 0.35355338, %v449_v55  ;;  %v469_v4 = vmul.f32 0.35355338, %v453_v3 }
 0x1de   :  { %v473_v16 = vmul.f32 0.35355338, %v457_v15 }
 0x1e0   :  { %v440_v28 = vpop.f32.mrf.mxu1 }
 0x1e1   :  { %v3793_v29 = vadd.f32 %v2930_v22, %v440_v28 }
 0x1e3   :  { %485 = vrot.lane.b32.xlu0 %v3793_v29, %s3489_s5  ;;  %v2889_v31 = vpack.i.bf16 %v3795_v30, %v3793_v29  ;;  %v446_v46 = vmul.f32 %v3793_v29, %v302_v45  ;;  %v450_v58 = vmul.f32 %v3793_v29, %v306_v57  ;;  %v454_v6 = vmul.f32 %v3793_v29, %v310_v5 }
 0x1e4   :  { %v458_v18 = vmul.f32 %v3793_v29, %v314_v17 }
 0x1e5   :  { %v462_v47 = vmul.f32 0.35355338, %v446_v46  ;;  %v466_v59 = vmul.f32 0.35355338, %v450_v58  ;;  %v470_v7 = vmul.f32 0.35355338, %v454_v6 }
 0x1e6   :  { %v474_v19 = vmul.f32 0.35355338, %v458_v18  ;;  %v324_v46 = vld [vmem:[%s4604_s8 + $0x28] sm:$0xff]  ;;  %v327_v58 = vld [vmem:[%s4604_s8 + $0x40] sm:$0xff] }
 0x1eb   :  { %483 = vrot.lane.b32.xlu0 %v3795_v30, %s3489_s5 }
 0x245   :  { %v482_v33 = vpop.permute.xlu1 %481 }
 0x24d   :  { %v480_v37 = vpop.permute.xlu1 %479 }
 0x255   :  { %v486_v32 = vpop.permute.xlu0 %485 }
 0x256   :  { %2720 = vmatpush.xpose.msk.msra.mxu2 %vm352_vm0, %v486_v32 }
 0x25d   :  { %v484_v34 = vpop.permute.xlu0 %483 }
 0x25e   :  { %2721 = vmatpush.xpose.msk.msra.mxu2 %vm352_vm0, %v484_v34  ;;  %v321_v34 = vld [vmem:[%s4604_s8 + $0x10] sm:$0xff] }
 0x262   :  { %2722 = vmatpush.xpose.msk.msra.mxu2 %vm352_vm0, %v482_v33 }
 0x266   :  { %2723 = vmatpush.xpose.msk.msra.mxu2 %vm352_vm0, %v480_v37 }
 0x269   :  { %2724 = vmatmul.msk.f32.vlgmr.msra.gmra.mxu2 %vm352_vm0, %v459_v38  ;;  %v322_v38 = vld [vmem:[%s4604_s8 + $0x18] sm:$0xff] }
 0x271   :  { %2725 = vmatmul.msk.f32.gmra.mxu2 %vm352_vm0, %v460_v41 }
 0x279   :  { %2726 = vmatmul.msk.f32.gmra.mxu2 %vm352_vm0, %v461_v44 }
 0x281   :  { %2727 = vmatmul.msk.f32.gmra.mxu2 %vm352_vm0, %v462_v47 }
 0x289   :  { %2728 = vmatmul.msk.f32.gmra.mxu2 %vm352_vm0, %v463_v50  ;;  %v325_v50 = vld [vmem:[%s4604_s8 + $0x30] sm:$0xff] }
 0x291   :  { %2729 = vmatmul.msk.f32.gmra.mxu2 %vm352_vm0, %v464_v53 }
 0x299   :  { %2730 = vmatmul.msk.f32.gmra.mxu2 %vm352_vm0, %v465_v56 }
 0x2a1   :  { %2731 = vmatmul.msk.f32.gmra.mxu2 %vm352_vm0, %v466_v59 }
 0x2a9   :  { %2732 = vmatmul.msk.f32.gmra.mxu2 %vm352_vm0, %v467_v62  ;;  %v328_v62 = vld [vmem:[%s4604_s8 + $0x48] sm:$0xff] }
 0x2b1   :  { %2733 = vmatmul.msk.f32.gmra.mxu2 %vm352_vm0, %v468_v1 }
 0x2b9   :  { %2734 = vmatmul.msk.f32.gmra.mxu2 %vm352_vm0, %v469_v4 }
 0x2c1   :  { %2735 = vmatmul.msk.f32.gmra.mxu2 %vm352_vm0, %v470_v7 }
 0x2c9   :  { %2736 = vmatmul.msk.f32.gmra.mxu2 %vm352_vm0, %v471_v10 }
 0x2d1   :  { %2737 = vmatmul.msk.f32.gmra.mxu2 %vm352_vm0, %v472_v13 }
 0x2d9   :  { %2738 = vmatmul.msk.f32.gmra.mxu2 %vm352_vm0, %v473_v16 }
 0x2e1   :  { %2739 = vmatmul.msk.f32.gmra.mxu2 %vm352_vm0, %v474_v19 }
 0x2ec   :  { %v560_v21 = vpop.f32.mrf.mxu2 }
 0x2ed   :  { %v561_v22 = vadd.f32 %v560_v21, %v319_v20 }
 0x2ef   :  { %v608_v23 = vsel %vm352_vm0, %v561_v22, -inf }
 0x2f0   :  { %609 = vmax.xlane.f32.xlu2 %v608_v23 }
 0x2f4   :  { %v563_v28 = vpop.f32.mrf.mxu2 }
 0x2f5   :  { %v564_v32 = vadd.f32 %v563_v28, %v320_v27 }
 0x2f7   :  { %v611_v33 = vsel %vm352_vm0, %v564_v32, -inf }
 0x2f8   :  { %612 = vmax.xlane.f32.xlu2 %v611_v33 }
 0x2fc   :  { %v566_v35 = vpop.f32.mrf.mxu2 }
 0x2fd   :  { %v567_v36 = vadd.f32 %v566_v35, %v321_v34 }
 0x2ff   :  { %v614_v37 = vsel %vm352_vm0, %v567_v36, -inf }
 0x300   :  { %615 = vmax.xlane.f32.xlu0 %v614_v37 }
 0x304   :  { %v569_v39 = vpop.f32.mrf.mxu2 }
 0x305   :  { %v3862_v40 = vadd.f32 %v569_v39, %v322_v38  ;;  %v331_v39 = vld [vmem:[%s4604_s8 + $0x60] sm:$0xff] }
 0x307   :  { %v617_v41 = vsel %vm352_vm0, %v3862_v40, -inf }
 0x308   :  { %618 = vmax.xlane.f32.xlu1 %v617_v41 }
 0x30c   :  { %v572_v43 = vpop.f32.mrf.mxu2 }
 0x30d   :  { %v3867_v44 = vadd.f32 %v572_v43, %v323_v42 }
 0x30f   :  { %v620_v45 = vsel %vm352_vm0, %v3867_v44, -inf }
 0x310   :  { %621 = vmax.xlane.f32.xlu2 %v620_v45 }
 0x314   :  { %v575_v47 = vpop.f32.mrf.mxu2 }
 0x315   :  { %v3872_v48 = vadd.f32 %v575_v47, %v324_v46 }
 0x317   :  { %v623_v49 = vsel %vm352_vm0, %v3872_v48, -inf }
 0x318   :  { %624 = vmax.xlane.f32.xlu2 %v623_v49 }
 0x31c   :  { %v578_v51 = vpop.f32.mrf.mxu2 }
 0x31d   :  { %v3877_v52 = vadd.f32 %v578_v51, %v325_v50 }
 0x31f   :  { %v626_v53 = vsel %vm352_vm0, %v3877_v52, -inf }
 0x320   :  { %627 = vmax.xlane.f32.xlu2 %v626_v53 }
 0x321   :  { %2890 = vrot.lane.b32.xlu1 %v2889_v31, %s3490_s14 }
 0x324   :  { %v581_v55 = vpop.f32.mrf.mxu2 }
 0x325   :  { %v3886_v56 = vadd.f32 %v581_v55, %v326_v54 }
 0x327   :  { %v629_v57 = vsel %vm352_vm0, %v3886_v56, -inf }
 0x328   :  { %630 = vmax.xlane.f32.xlu2 %v629_v57 }
 0x32c   :  { %v584_v59 = vpop.f32.mrf.mxu2 }
 0x32d   :  { %v3891_v60 = vadd.f32 %v584_v59, %v327_v58 }
 0x32f   :  { %v632_v61 = vsel %vm352_vm0, %v3891_v60, -inf }
 0x330   :  { %633 = vmax.xlane.f32.xlu0 %v632_v61 }
 0x334   :  { %v587_v29 = vpop.f32.mrf.mxu2 }
 0x335   :  { %v3896_v30 = vadd.f32 %v587_v29, %v328_v62 }
 0x337   :  { %v635_v31 = vsel %vm352_vm0, %v3896_v30, -inf }
 0x338   :  { %636 = vmax.xlane.f32.xlu2 %v635_v31 }
 0x33c   :  { %v590_v0 = vpop.f32.mrf.mxu2 }
 0x33d   :  { %v3905_v1 = vadd.f32 %v590_v0, %v329_v63  ;;  %v332_v63 = vld [vmem:[%s4604_s8 + $0x68] sm:$0xff]  ;;  %v334_v0 = vld [vmem:[%s4604_s8 + $0x78] sm:$0xff] }
 0x33f   :  { %v638_v2 = vsel %vm352_vm0, %v3905_v1, -inf }
 0x344   :  { %2895 = vrot.lane.b32.xlu0 %v2894_v26, %s3490_s14  ;;  %v593_v24 = vpop.f32.mrf.mxu2 }
 0x34b   :  { %639 = vmax.xlane.f32.xlu1 %v638_v2 }
 0x34c   :  { %v596_v16 = vpop.f32.mrf.mxu2 }
 0x34d   :  { %v3939_v43 = vadd.f32 %v596_v16, %v331_v39 }
 0x34f   :  { %v644_v50 = vsel %vm352_vm0, %v3939_v43, -inf }
 0x354   :  { %v599_v27 = vpop.f32.mrf.mxu2 }
 0x35c   :  { %v602_v41 = vpop.f32.mrf.mxu2 }
 0x363   :  { %v610_v3 = vpop.xlane.xlu2 %609 }
 0x364   :  { %v656_v4 = vsub.f32 %v561_v22, %v610_v3  ;;  %v605_v2 = vpop.f32.mrf.mxu2 }
 0x366   :  { %v672_v5 = vmul.f32 1.442695, %v656_v4  ;;  %v3964_v4 = vadd.f32 %v599_v27, %v332_v63 }
 0x368   :  { %2942 = vpow2.f32 %v672_v5  ;;  %v3966_v5 = vadd.f32 %v605_v2, %v334_v0 }
 0x36b   :  { %v613_v6 = vpop.xlane.xlu2 %612 }
 0x36c   :  { %v657_v7 = vsub.f32 %v564_v32, %v613_v6  ;;  %v330_v32 = vld [vmem:[%s4604_s8 + $0x58] sm:$0xff] }
 0x36d   :  { %v3928_v33 = vadd.f32 %v593_v24, %v330_v32 }
 0x36e   :  { %v3909_v8 = vpop.eup %2942  ;;  %v674_v9 = vmul.f32 1.442695, %v657_v7 }
 0x36f   :  { %v704_v10 = vsel %vm352_vm0, %v3909_v8, 0.0  ;;  %v641_v37 = vsel %vm352_vm0, %v3928_v33, -inf }
 0x370   :  { %2944 = vpow2.f32 %v674_v9  ;;  %705 = vadd.xlane.f32.xlu2 %v704_v10  ;;  %v647_v9 = vsel %vm352_vm0, %v3964_v4, -inf  ;;  %v653_v10 = vsel %vm352_vm0, %v3966_v5, -inf }
 0x373   :  { %v616_v25 = vpop.xlane.xlu0 %615 }
 0x374   :  { %v658_v26 = vsub.f32 %v567_v36, %v616_v25 }
 0x376   :  { %v3913_v11 = vpop.eup %2944  ;;  %v676_v12 = vmul.f32 1.442695, %v658_v26 }
 0x377   :  { %v707_v13 = vsel %vm352_vm0, %v3913_v11, 0.0 }
 0x378   :  { %2946 = vpow2.f32 %v676_v12  ;;  %708 = vadd.xlane.f32.xlu2 %v707_v13 }
 0x37b   :  { %v619_v14 = vpop.xlane.xlu1 %618 }
 0x37c   :  { %v659_v15 = vsub.f32 %v3862_v40, %v619_v14  ;;  %v333_v40 = vld [vmem:[%s4604_s8 + $0x70] sm:$0xff] }
 0x37d   :  { %v3941_v46 = vadd.f32 %v602_v41, %v333_v40 }
 0x37e   :  { %v3918_v17 = vpop.eup %2946  ;;  %v678_v18 = vmul.f32 1.442695, %v659_v15 }
 0x37f   :  { %v710_v19 = vsel %vm352_vm0, %v3918_v17, 0.0  ;;  %v650_v51 = vsel %vm352_vm0, %v3941_v46, -inf }
 0x380   :  { %2948 = vpow2.f32 %v678_v18  ;;  %711 = vadd.xlane.f32.xlu2 %v710_v19 }
 0x383   :  { %v622_v20 = vpop.xlane.xlu2 %621 }
 0x384   :  { %v660_v21 = vsub.f32 %v3867_v44, %v622_v20 }
 0x386   :  { %v3923_v22 = vpop.eup %2948  ;;  %v680_v23 = vmul.f32 1.442695, %v660_v21 }
 0x387   :  { %v713_v28 = vsel %vm352_vm0, %v3923_v22, 0.0 }
 0x388   :  { %2950 = vpow2.f32 %v680_v23  ;;  %714 = vadd.xlane.f32.xlu2 %v713_v28 }
 0x38b   :  { %v625_v34 = vpop.xlane.xlu2 %624 }
 0x38c   :  { %v661_v36 = vsub.f32 %v3872_v48, %v625_v34 }
 0x38e   :  { %v3930_v35 = vpop.eup %2950  ;;  %v682_v42 = vmul.f32 1.442695, %v661_v36 }
 0x38f   :  { %v716_v38 = vsel %vm352_vm0, %v3930_v35, 0.0 }
 0x390   :  { %642 = vmax.xlane.f32.xlu2 %v641_v37  ;;  %717 = vadd.xlane.f32.xlu0 %v716_v38  ;;  %2952 = vpow2.f32 %v682_v42 }
 0x393   :  { %v2891_v44 = vpop.permute.xlu1 %2890  ;;  %v628_v45 = vpop.xlane.xlu2 %627 }
 0x394   :  { %v2892_v47 = vunpack.i.l.bf16 %v2891_v44  ;;  %v662_v48 = vsub.f32 %v3877_v52, %v628_v45  ;;  %v2893_v49 = vunpack.i.h.bf16 %v2891_v44 }
 0x396   :  { %1064 = vmatpush.msra.mxu3 %v2892_v47  ;;  %v684_v53 = vmul.f32 1.442695, %v662_v48  ;;  %v3948_v55 = vpop.eup %2952 }
 0x397   :  { %v719_v58 = vsel %vm352_vm0, %v3948_v55, 0.0 }
 0x398   :  { %1065 = vmatpush.msra.mxu3 %v2893_v49  ;;  %645 = vmax.xlane.f32.xlu2 %v644_v50  ;;  %2954 = vpow2.f32 %v684_v53 }
 0x399   :  { %651 = vmax.xlane.f32.xlu0 %v650_v51 }
 0x39b   :  { %v631_v54 = vpop.xlane.xlu2 %630 }
 0x39c   :  { %v663_v57 = vsub.f32 %v3886_v56, %v631_v54 }
 0x39e   :  { %v686_v52 = vmul.f32 1.442695, %v663_v57  ;;  %v3953_v61 = vpop.eup %2954 }
 0x39f   :  { %v722_v31 = vsel %vm352_vm0, %v3953_v61, 0.0 }
 0x3a0   :  { %2956 = vpow2.f32 %v686_v52  ;;  %720 = vadd.xlane.f32.xlu2 %v719_v58 }
 0x3a3   :  { %v634_v59 = vpop.xlane.xlu0 %633 }
 0x3a4   :  { %v664_v29 = vsub.f32 %v3891_v60, %v634_v59 }
 0x3a6   :  { %v3955_v62 = vpop.eup %2956  ;;  %v688_v3 = vmul.f32 1.442695, %v664_v29 }
 0x3a7   :  { %v725_v56 = vsel %vm352_vm0, %v3955_v62, 0.0 }
 0x3a8   :  { %723 = vadd.xlane.f32.xlu2 %v722_v31  ;;  %726 = vadd.xlane.f32.xlu1 %v725_v56  ;;  %2958 = vpow2.f32 %v688_v3 }
 0x3ab   :  { %v637_v6 = vpop.xlane.xlu2 %636 }
 0x3ac   :  { %v665_v7 = vsub.f32 %v3896_v30, %v637_v6 }
 0x3ae   :  { %v690_v60 = vmul.f32 1.442695, %v665_v7  ;;  %v3973_v24 = vpop.eup %2958 }
 0x3af   :  { %v728_v12 = vsel %vm352_vm0, %v3973_v24, 0.0 }
 0x3b0   :  { %2960 = vpow2.f32 %v690_v60  ;;  %648 = vmax.xlane.f32.xlu2 %v647_v9  ;;  %654 = vmax.xlane.f32.xlu1 %v653_v10 }
 0x3b6   :  { %v3975_v25 = vpop.eup %2960  ;;  %v2896_v26 = vpop.permute.xlu0 %2895 }
 0x3b7   :  { %v731_v30 = vsel %vm352_vm0, %v3975_v25, 0.0  ;;  %v2897_v13 = vunpack.i.l.bf16 %v2896_v26  ;;  %v2898_v14 = vunpack.i.h.bf16 %v2896_v26 }
 0x3b8   :  { %729 = vadd.xlane.f32.xlu2 %v728_v12  ;;  %732 = vadd.xlane.f32.xlu0 %v731_v30 }
 0x3b9   :  { %1066 = vmatpush.msra.mxu3 %v2897_v13 }
 0x3bb   :  { %1067 = vmatpush.msra.mxu3 %v2898_v14 }
 0x3be   :  { %v640_v15 = vpop.xlane.xlu1 %639 }
 0x3bf   :  { %v666_v16 = vsub.f32 %v3905_v1, %v640_v15 }
 0x3c1   :  { %v692_v18 = vmul.f32 1.442695, %v666_v16 }
 0x3c3   :  { %2962 = vpow2.f32 %v692_v18 }
 0x3c9   :  { %v3982_v19 = vpop.eup %2962 }
 0x3ca   :  { %v734_v20 = vsel %vm352_vm0, %v3982_v19, 0.0 }
 0x3cb   :  { %735 = vadd.xlane.f32.xlu2 %v734_v20 }
 0x3e3   :  { %v706_v21 = vpop.xlane.xlu2 %705 }
 0x3e4   :  { %2964 = vrcp.f32 %v706_v21  ;;  %v763_v34 = vand.u32 2147483648, %v706_v21  ;;  %v761_v37 = vand.u32 2147483647, %v706_v21  ;;  %vm757_vm2 = vweird.f32 %v706_v21 }
 0x3e6   :  { %v764_v39 = vor.u32 1.1754944e-38, %v763_v34  ;;  %vm762_vm4 = vcmp.eq.f32.partialorder %v761_v37, 8.507059e+37 }
 0x3ea   :  { %v2965_v23 = vpop.eup %2964 }
 0x3eb   :  { %v753_v27 = vmul.f32 %v2965_v23, %v706_v21  ;;  %v709_v28 = vpop.xlane.xlu2 %708  ;;  %vm758_vm1 = vweird.f32 %v2965_v23 }
 0x3ec   :  { %2966 = vrcp.f32 %v709_v28  ;;  %vm759_vm3 = vmor %vm757_vm2, %vm758_vm1  ;;  %v778_v48 = vand.u32 2147483648, %v709_v28  ;;  %v776_v50 = vand.u32 2147483647, %v709_v28  ;;  %vm772_vm6 = vweird.f32 %v709_v28 }
 0x3ed   :  { %v754_v32 = vsub.f32 1.0, %v753_v27 }
 0x3ee   :  { %v779_v54 = vor.u32 1.1754944e-38, %v778_v48  ;;  %vm777_vm8 = vcmp.eq.f32.partialorder %v776_v50, 8.507059e+37 }
 0x3ef   :  { %v755_v36 = vmul.f32 %v2965_v23, %v754_v32 }
 0x3f1   :  { %v756_v1 = vadd.f32 %v2965_v23, %v755_v36 }
 0x3f2   :  { %v2967_v38 = vpop.eup %2966 }
 0x3f3   :  { %v768_v40 = vmul.f32 %v2967_v38, %v709_v28  ;;  %v712_v41 = vpop.xlane.xlu2 %711  ;;  %v760_v42 = vsel %vm759_vm3, %v2965_v23, %v756_v1  ;;  %vm773_vm5 = vweird.f32 %v2967_v38 }
 0x3f4   :  { %2968 = vrcp.f32 %v712_v41  ;;  %v765_v44 = vsel %vm762_vm4, %v764_v39, %v760_v42  ;;  %vm774_vm7 = vmor %vm772_vm6, %vm773_vm5  ;;  %v793_v56 = vand.u32 2147483648, %v712_v41  ;;  %v791_v63 = vand.u32 2147483647, %v712_v41 }
 0x3f5   :  { %v769_v45 = vsub.f32 1.0, %v768_v40  ;;  %v766_v47 = vmul.f32 %v3909_v8, %v765_v44  ;;  %vm787_vm10 = vweird.f32 %v712_v41 }
 0x3f6   :  { %v794_v3 = vor.u32 1.1754944e-38, %v793_v56  ;;  %vm792_vm12 = vcmp.eq.f32.partialorder %v791_v63, 8.507059e+37 }
 0x3f7   :  { %v770_v49 = vmul.f32 %v2967_v38, %v769_v45  ;;  %2740 = vmatmul.msk.f32.vlgmr.msra.gmra.mxu3 %vm352_vm0, %v766_v47 }
 0x3f9   :  { %v771_v51 = vadd.f32 %v2967_v38, %v770_v49 }
 0x3fa   :  { %v2969_v53 = vpop.eup %2968 }
 0x3fb   :  { %v783_v57 = vmul.f32 %v2969_v53, %v712_v41  ;;  %v715_v52 = vpop.xlane.xlu2 %714  ;;  %v775_v58 = vsel %vm774_vm7, %v2967_v38, %v771_v51  ;;  %vm788_vm9 = vweird.f32 %v2969_v53 }
 0x3fc   :  { %2970 = vrcp.f32 %v715_v52  ;;  %v780_v59 = vsel %vm777_vm8, %v779_v54, %v775_v58  ;;  %vm789_vm11 = vmor %vm787_vm10, %vm788_vm9  ;;  %v808_v12 = vand.u32 2147483648, %v715_v52  ;;  %v806_v15 = vand.u32 2147483647, %v715_v52 }
 0x3fd   :  { %v784_v29 = vsub.f32 1.0, %v783_v57  ;;  %v781_v8 = vmul.f32 %v3913_v11, %v780_v59  ;;  %vm802_vm14 = vweird.f32 %v715_v52 }
 0x3fe   :  { %v809_v20 = vor.u32 1.1754944e-38, %v808_v12  ;;  %vm807_vm1 = vcmp.eq.f32.partialorder %v806_v15, 8.507059e+37 }
 0x3ff   :  { %v785_v31 = vmul.f32 %v2969_v53, %v784_v29  ;;  %2741 = vmatmul.msk.f32.gmra.mxu3 %vm352_vm0, %v781_v8 }
 0x401   :  { %v786_v0 = vadd.f32 %v2969_v53, %v785_v31 }
 0x402   :  { %v2971_v2 = vpop.eup %2970 }
 0x403   :  { %v798_v6 = vmul.f32 %v2971_v2, %v715_v52  ;;  %v718_v7 = vpop.xlane.xlu0 %717  ;;  %v643_v60 = vpop.xlane.xlu2 %642  ;;  %v790_v9 = vsel %vm789_vm11, %v2969_v53, %v786_v0  ;;  %vm803_vm13 = vweird.f32 %v2971_v2 }
 0x404   :  { %2972 = vrcp.f32 %v718_v7  ;;  %v667_v10 = vsub.f32 %v3928_v33, %v643_v60  ;;  %v795_v26 = vsel %vm792_vm12, %v794_v3, %v790_v9  ;;  %vm804_vm15 = vmor %vm802_vm14, %vm803_vm13  ;;  %v823_v1 = vand.u32 2147483648, %v718_v7 }
 0x405   :  { %v799_v11 = vsub.f32 1.0, %v798_v6  ;;  %v796_v13 = vmul.f32 %v3918_v17, %v795_v26  ;;  %v821_v39 = vand.u32 2147483647, %v718_v7  ;;  %vm817_vm3 = vweird.f32 %v718_v7 }
 0x406   :  { %v694_v30 = vmul.f32 1.442695, %v667_v10 }
 0x407   :  { %v800_v14 = vmul.f32 %v2971_v2, %v799_v11  ;;  %2742 = vmatmul.msk.f32.gmra.mxu3 %vm352_vm0, %v796_v13  ;;  %vm822_vm5 = vcmp.eq.f32.partialorder %v821_v39, 8.507059e+37 }
 0x408   :  { %2974 = vpow2.f32 %v694_v30 }
 0x409   :  { %v801_v16 = vadd.f32 %v2971_v2, %v800_v14 }
 0x40a   :  { %v2973_v18 = vpop.eup %2972 }
 0x40b   :  { %v813_v21 = vmul.f32 %v2973_v18, %v718_v7  ;;  %v646_v33 = vpop.xlane.xlu2 %645  ;;  %v805_v23 = vsel %vm804_vm15, %v2971_v2, %v801_v16  ;;  %vm818_vm2 = vweird.f32 %v2973_v18 }
 0x40c   :  { %v652_v27 = vpop.xlane.xlu0 %651  ;;  %v668_v28 = vsub.f32 %v3939_v43, %v646_v33  ;;  %v810_v32 = vsel %vm807_vm1, %v809_v20, %v805_v23  ;;  %vm819_vm4 = vmor %vm817_vm3, %vm818_vm2 }
 0x40d   :  { %v814_v17 = vsub.f32 1.0, %v813_v21  ;;  %v670_v34 = vsub.f32 %v3941_v46, %v652_v27  ;;  %v811_v36 = vmul.f32 %v3923_v22, %v810_v32  ;;  %v824_v46 = vor.u32 1.1754944e-38, %v823_v1 }
 0x40e   :  { %v3996_v37 = vpop.eup %2974  ;;  %v696_v38 = vmul.f32 1.442695, %v668_v28 }
 0x40f   :  { %v815_v40 = vmul.f32 %v2973_v18, %v814_v17  ;;  %v700_v41 = vmul.f32 1.442695, %v670_v34  ;;  %v737_v42 = vsel %vm352_vm0, %v3996_v37, 0.0  ;;  %2743 = vmatmul.msk.f32.gmra.mxu3 %vm352_vm0, %v811_v36 }
 0x410   :  { %2976 = vpow2.f32 %v696_v38  ;;  %738 = vadd.xlane.f32.xlu1 %v737_v42 }
 0x411   :  { %2978 = vpow2.f32 %v700_v41  ;;  %v816_v43 = vadd.f32 %v2973_v18, %v815_v40 }
 0x413   :  { %v721_v22 = vpop.xlane.xlu2 %720  ;;  %v820_v44 = vsel %vm819_vm4, %v2973_v18, %v816_v43 }
 0x414   :  { %2980 = vrcp.f32 %v721_v22  ;;  %v825_v45 = vsel %vm822_vm5, %v824_v46, %v820_v44  ;;  %v838_v58 = vand.u32 2147483648, %v721_v22  ;;  %v836_v29 = vand.u32 2147483647, %v721_v22 }
 0x415   :  { %v826_v47 = vmul.f32 %v3930_v35, %v825_v45  ;;  %vm832_vm7 = vweird.f32 %v721_v22 }
 0x416   :  { %v4002_v48 = vpop.eup %2976  ;;  %v839_v56 = vor.u32 1.1754944e-38, %v838_v58  ;;  %vm837_vm9 = vcmp.eq.f32.partialorder %v836_v29, 8.507059e+37 }
 0x417   :  { %v4004_v49 = vpop.eup %2978  ;;  %v740_v50 = vsel %vm352_vm0, %v4002_v48, 0.0  ;;  %2744 = vmatmul.msk.f32.gmra.mxu3 %vm352_vm0, %v826_v47 }
 0x418   :  { %v746_v51 = vsel %vm352_vm0, %v4004_v49, 0.0  ;;  %741 = vadd.xlane.f32.xlu0 %v740_v50 }
 0x419   :  { %747 = vadd.xlane.f32.xlu1 %v746_v51 }
 0x41a   :  { %v2981_v53 = vpop.eup %2980 }
 0x41b   :  { %v828_v54 = vmul.f32 %v2981_v53, %v721_v22  ;;  %v4011_v57 = vpop.xlane.xlu1 %726  ;;  %v724_v52 = vpop.xlane.xlu2 %723  ;;  %vm833_vm6 = vweird.f32 %v2981_v53 }
 0x41c   :  { %2982 = vrcp.f32 %v4011_v57  ;;  %vm834_vm8 = vmor %vm832_vm7, %vm833_vm6  ;;  %v853_v15 = vand.u32 2147483648, %v724_v52  ;;  %v851_v16 = vand.u32 2147483647, %v724_v52  ;;  %vm847_vm11 = vweird.f32 %v724_v52 }
 0x41d   :  { %v829_v35 = vsub.f32 1.0, %v828_v54  ;;  %2984 = vrcp.f32 %v724_v52  ;;  %v868_v27 = vand.u32 2147483648, %v4011_v57  ;;  %vm862_vm15 = vweird.f32 %v4011_v57 }
 0x41e   :  { %v854_v21 = vor.u32 1.1754944e-38, %v853_v15  ;;  %vm852_vm13 = vcmp.eq.f32.partialorder %v851_v16, 8.507059e+37  ;;  %v866_v36 = vand.u32 2147483647, %v4011_v57 }
 0x41f   :  { %v830_v59 = vmul.f32 %v2981_v53, %v829_v35  ;;  %v869_v40 = vor.u32 1.1754944e-38, %v868_v27 }
 0x420   :  { %vm867_vm2 = vcmp.eq.f32.partialorder %v866_v36, 8.507059e+37 }
 0x421   :  { %v831_v8 = vadd.f32 %v2981_v53, %v830_v59 }
 0x422   :  { %v2983_v31 = vpop.eup %2982 }
 0x423   :  { %v2985_v63 = vpop.eup %2984  ;;  %v858_v0 = vmul.f32 %v2983_v31, %v4011_v57  ;;  %v655_v2 = vpop.xlane.xlu1 %654  ;;  %v835_v6 = vsel %vm834_vm8, %v2981_v53, %v831_v8  ;;  %vm863_vm14 = vweird.f32 %v2983_v31 }
 0x424   :  { %v649_v3 = vpop.xlane.xlu2 %648  ;;  %v843_v7 = vmul.f32 %v2985_v63, %v724_v52  ;;  %v671_v60 = vsub.f32 %v3966_v5, %v655_v2  ;;  %v840_v10 = vsel %vm837_vm9, %v839_v56, %v835_v6  ;;  %vm848_vm10 = vweird.f32 %v2985_v63  ;;  %vm864_vm1 = vmor %vm862_vm15, %vm863_vm14 }
 0x425   :  { %v669_v9 = vsub.f32 %v3964_v4, %v649_v3  ;;  %v859_v11 = vsub.f32 1.0, %v858_v0  ;;  %v841_v26 = vmul.f32 %v3948_v55, %v840_v10  ;;  %vm849_vm12 = vmor %vm847_vm11, %vm848_vm10 }
 0x426   :  { %v844_v12 = vsub.f32 1.0, %v843_v7  ;;  %v702_v30 = vmul.f32 1.442695, %v671_v60 }
 0x427   :  { %v698_v13 = vmul.f32 1.442695, %v669_v9  ;;  %2745 = vmatmul.msk.f32.gmra.mxu3 %vm352_vm0, %v841_v26  ;;  %v860_v18 = vmul.f32 %v2983_v31, %v859_v11 }
 0x428   :  { %v845_v14 = vmul.f32 %v2985_v63, %v844_v12  ;;  %2986 = vpow2.f32 %v702_v30 }
 0x429   :  { %2988 = vpow2.f32 %v698_v13  ;;  %v861_v33 = vadd.f32 %v2983_v31, %v860_v18 }
 0x42a   :  { %v846_v20 = vadd.f32 %v2985_v63, %v845_v14 }
 0x42b   :  { %v733_v5 = vpop.xlane.xlu0 %732  ;;  %v865_v38 = vsel %vm864_vm1, %v2983_v31, %v861_v33 }
 0x42c   :  { %v730_v4 = vpop.xlane.xlu2 %729  ;;  %2990 = vrcp.f32 %v733_v5  ;;  %v850_v55 = vsel %vm849_vm12, %v2985_v63, %v846_v20  ;;  %v870_v43 = vsel %vm867_vm2, %v869_v40, %v865_v38  ;;  %v898_v58 = vand.u32 2147483648, %v733_v5 }
 0x42d   :  { %2992 = vrcp.f32 %v730_v4  ;;  %v855_v28 = vsel %vm852_vm13, %v854_v21, %v850_v55  ;;  %v883_v44 = vand.u32 2147483648, %v730_v4  ;;  %v871_v45 = vmul.f32 %v3955_v62, %v870_v43 }
 0x42e   :  { %v4019_v23 = vpop.eup %2986  ;;  %v856_v17 = vmul.f32 %v3953_v61, %v855_v28  ;;  %v881_v50 = vand.u32 2147483647, %v730_v4  ;;  %vm877_vm4 = vweird.f32 %v730_v4  ;;  %vm892_vm8 = vweird.f32 %v733_v5 }
 0x42f   :  { %v4022_v32 = vpop.eup %2988  ;;  %v749_v34 = vsel %vm352_vm0, %v4019_v23, 0.0  ;;  %v884_v54 = vor.u32 1.1754944e-38, %v883_v44  ;;  %v896_v62 = vand.u32 2147483647, %v733_v5  ;;  %v899_v31 = vor.u32 1.1754944e-38, %v898_v58 }
 0x430   :  { %750 = vadd.xlane.f32.xlu0 %v749_v34  ;;  %v743_v1 = vsel %vm352_vm0, %v4022_v32, 0.0  ;;  %2746 = vmatmul.msk.f32.gmra.mxu3 %vm352_vm0, %v856_v17  ;;  %vm882_vm6 = vcmp.eq.f32.partialorder %v881_v50, 8.507059e+37 }
 0x431   :  { %744 = vadd.xlane.f32.xlu2 %v743_v1  ;;  %vm897_vm10 = vcmp.eq.f32.partialorder %v896_v62, 8.507059e+37 }
 0x432   :  { %v2991_v39 = vpop.eup %2990 }
 0x433   :  { %v2993_v41 = vpop.eup %2992  ;;  %v888_v42 = vmul.f32 %v2991_v39, %v733_v5  ;;  %vm893_vm7 = vweird.f32 %v2991_v39 }
 0x434   :  { %v873_v61 = vmul.f32 %v2993_v41, %v730_v4  ;;  %vm878_vm3 = vweird.f32 %v2993_v41  ;;  %vm894_vm9 = vmor %vm892_vm8, %vm893_vm7 }
 0x435   :  { %v889_v46 = vsub.f32 1.0, %v888_v42  ;;  %vm879_vm5 = vmor %vm877_vm4, %vm878_vm3 }
 0x436   :  { %v874_v22 = vsub.f32 1.0, %v873_v61 }
 0x437   :  { %v890_v51 = vmul.f32 %v2991_v39, %v889_v46 }
 0x438   :  { %v875_v47 = vmul.f32 %v2993_v41, %v874_v22  ;;  %2747 = vmatmul.msk.f32.gmra.mxu3 %vm352_vm0, %v871_v45 }
 0x439   :  { %v891_v35 = vadd.f32 %v2991_v39, %v890_v51 }
 0x43a   :  { %v876_v53 = vadd.f32 %v2993_v41, %v875_v47 }
 0x43b   :  { %v895_v8 = vsel %vm894_vm9, %v2991_v39, %v891_v35 }
 0x43c   :  { %v880_v57 = vsel %vm879_vm5, %v2993_v41, %v876_v53  ;;  %v900_v56 = vsel %vm897_vm10, %v899_v31, %v895_v8 }
 0x43d   :  { %v885_v52 = vsel %vm882_vm6, %v884_v54, %v880_v57  ;;  %v901_v2 = vmul.f32 %v3975_v25, %v900_v56 }
 0x43e   :  { %v736_v59 = vpop.xlane.xlu2 %735  ;;  %v886_v29 = vmul.f32 %v3973_v24, %v885_v52 }
 0x43f   :  { %2994 = vrcp.f32 %v736_v59  ;;  %v913_v6 = vand.u32 2147483648, %v736_v59  ;;  %v911_v24 = vand.u32 2147483647, %v736_v59  ;;  %vm907_vm12 = vweird.f32 %v736_v59 }
 0x440   :  { %2748 = vmatmul.msk.f32.gmra.mxu3 %vm352_vm0, %v886_v29 }
 0x441   :  { %v914_v9 = vor.u32 1.1754944e-38, %v913_v6  ;;  %vm912_vm14 = vcmp.eq.f32.partialorder %v911_v24, 8.507059e+37 }
 0x445   :  { %v2995_v63 = vpop.eup %2994 }
 0x446   :  { %v903_v0 = vmul.f32 %v2995_v63, %v736_v59  ;;  %vm908_vm11 = vweird.f32 %v2995_v63 }
 0x447   :  { %vm909_vm13 = vmor %vm907_vm12, %vm908_vm11 }
 0x448   :  { %v904_v3 = vsub.f32 1.0, %v903_v0  ;;  %2749 = vmatmul.msk.f32.gmra.mxu3 %vm352_vm0, %v901_v2 }
 0x44a   :  { %v905_v7 = vmul.f32 %v2995_v63, %v904_v3 }
 0x44c   :  { %v906_v60 = vadd.f32 %v2995_v63, %v905_v7 }
 0x44e   :  { %v910_v10 = vsel %vm909_vm13, %v2995_v63, %v906_v60 }
 0x44f   :  { %v915_v11 = vsel %vm912_vm14, %v914_v9, %v910_v10 }
 0x450   :  { %v916_v26 = vmul.f32 %v3982_v19, %v915_v11 }
 0x452   :  { %2750 = vmatmul.msk.f32.gmra.mxu3 %vm352_vm0, %v916_v26 }
 0x47a   :  { %v4048_v60 = vpop.f32.mrf.mxu3 }
 0x482   :  { %v1072_v26 = vpop.f32.mrf.mxu3 }
 0x483   :  { %v739_v12 = vpop.xlane.xlu1 %738 }
 0x484   :  { %2996 = vrcp.f32 %v739_v12  ;;  %v928_v15 = vand.u32 2147483648, %v739_v12  ;;  %v926_v18 = vand.u32 2147483647, %v739_v12  ;;  %vm922_vm1 = vweird.f32 %v739_v12 }
 0x486   :  { %v929_v4 = vor.u32 1.1754944e-38, %v928_v15  ;;  %vm927_vm3 = vcmp.eq.f32.partialorder %v926_v18, 8.507059e+37 }
 0x48a   :  { %v2997_v25 = vpop.eup %2996 }
 0x48b   :  { %v918_v30 = vmul.f32 %v2997_v25, %v739_v12  ;;  %v742_v13 = vpop.xlane.xlu0 %741  ;;  %vm923_vm15 = vweird.f32 %v2997_v25  ;;  %v1075_v12 = vpop.f32.mrf.mxu3 }
 0x48c   :  { %2998 = vrcp.f32 %v742_v13  ;;  %vm924_vm2 = vmor %vm922_vm1, %vm923_vm15  ;;  %v943_v28 = vand.u32 2147483648, %v742_v13  ;;  %v941_v34 = vand.u32 2147483647, %v742_v13  ;;  %vm937_vm5 = vweird.f32 %v742_v13  ;;  %v748_v38 = vpop.xlane.xlu1 %747 }
 0x48d   :  { %v919_v14 = vsub.f32 1.0, %v918_v30  ;;  %3000 = vrcp.f32 %v748_v38  ;;  %v973_v29 = vand.u32 2147483648, %v748_v38  ;;  %vm967_vm13 = vweird.f32 %v748_v38 }
 0x48e   :  { %v944_v1 = vor.u32 1.1754944e-38, %v943_v28  ;;  %vm942_vm7 = vcmp.eq.f32.partialorder %v941_v34, 8.507059e+37  ;;  %v971_v31 = vand.u32 2147483647, %v748_v38  ;;  %v4061_v28 = vld [vmem:[%s4603_s13 + $0x68] sm:$0xff]  ;;  %v4065_v34 = vld [vmem:[%s4603_s13 + $0x60] sm:$0xff] }
 0x48f   :  { %v920_v16 = vmul.f32 %v2997_v25, %v919_v14  ;;  %v974_v0 = vor.u32 1.1754944e-38, %v973_v29 }
 0x490   :  { %vm972_vm15 = vcmp.eq.f32.partialorder %v971_v31, 8.507059e+37  ;;  %v315_v31 = vld [vmem:[%s4606_s6] sm:$0xff] }
 0x491   :  { %v921_v20 = vadd.f32 %v2997_v25, %v920_v16 }
 0x492   :  { %v2999_v5 = vpop.eup %2998 }
 0x493   :  { %v933_v21 = vmul.f32 %v2999_v5, %v742_v13  ;;  %v925_v19 = vsel %vm924_vm2, %v2997_v25, %v921_v20  ;;  %vm938_vm4 = vweird.f32 %v2999_v5  ;;  %v1078_v25 = vpop.f32.mrf.mxu3 }
 0x494   :  { %v930_v55 = vsel %vm927_vm3, %v929_v4, %v925_v19  ;;  %vm939_vm6 = vmor %vm937_vm5, %vm938_vm4  ;;  %v4053_v19 = vld [vmem:[%s4603_s13 + $0x78] sm:$0xff] }
 0x495   :  { %v934_v33 = vsub.f32 1.0, %v933_v21  ;;  %v931_v27 = vmul.f32 %v3996_v37, %v930_v55  ;;  %v3001_v37 = vpop.eup %3000 }
 0x496   :  { %v963_v43 = vmul.f32 %v3001_v37, %v748_v38  ;;  %vm968_vm11 = vweird.f32 %v3001_v37 }
 0x497   :  { %v935_v17 = vmul.f32 %v2999_v5, %v934_v33  ;;  %2751 = vmatmul.msk.f32.gmra.mxu3 %vm352_vm0, %v931_v27  ;;  %vm969_vm14 = vmor %vm967_vm13, %vm968_vm11  ;;  %v4057_v33 = vld [vmem:[%s4603_s13 + $0x70] sm:$0xff] }
 0x498   :  { %v964_v22 = vsub.f32 1.0, %v963_v43  ;;  %v4085_v43 = vld [vmem:[%s4603_s13 + $0x38] sm:$0xff] }
 0x499   :  { %v936_v36 = vadd.f32 %v2999_v5, %v935_v17 }
 0x49a   :  { %v965_v50 = vmul.f32 %v3001_v37, %v964_v22  ;;  %v4089_v22 = vld [vmem:[%s4603_s13 + $0x30] sm:$0xff] }
 0x49b   :  { %v940_v39 = vsel %vm939_vm6, %v2999_v5, %v936_v36 }
 0x49c   :  { %v945_v40 = vsel %vm942_vm7, %v944_v1, %v940_v39  ;;  %v966_v59 = vadd.f32 %v3001_v37, %v965_v50  ;;  %v4069_v1 = vld [vmem:[%s4603_s13 + $0x58] sm:$0xff]  ;;  %v4073_v39 = vld [vmem:[%s4603_s13 + $0x50] sm:$0xff]  ;;  %v4097_v50 = vld [vmem:[%s4603_s13 + $0x20] sm:$0xff] }
 0x49d   :  { %v946_v41 = vmul.f32 %v4002_v48, %v945_v40 }
 0x49e   :  { %v970_v63 = vsel %vm969_vm14, %v3001_v37, %v966_v59  ;;  %v4112_v59 = vld [vmem:[%s4603_s13 + $0x8] sm:$0xff] }
 0x49f   :  { %2752 = vmatmul.msk.f32.gmra.mxu3 %vm352_vm0, %v946_v41  ;;  %v975_v2 = vsel %vm972_vm15, %v974_v0, %v970_v63  ;;  %v4077_v41 = vld [vmem:[%s4603_s13 + $0x48] sm:$0xff]  ;;  %v1118_v29 = vmul.f32 %v4112_v59, %v1072_v26  ;;  %v317_v63 = vld [vmem:[%s4606_s6 + $0x10] sm:$0xff]  ;;  %v318_v0 = vld [vmem:[%s4606_s6 + $0x18] sm:$0xff] }
 0x4a0   :  { %v976_v7 = vmul.f32 %v4004_v49, %v975_v2  ;;  %v1081_v49 = vpop.f32.mrf.mxu3  ;;  %v1162_v2 = vld [vmem:[%s4605_s30] sm:$0xff] }
 0x4a3   :  { %v751_v42 = vpop.xlane.xlu0 %750 }
 0x4a4   :  { %v745_v61 = vpop.xlane.xlu2 %744  ;;  %v988_v6 = vand.u32 2147483648, %v751_v42  ;;  %vm982_vm2 = vweird.f32 %v751_v42  ;;  %v986_v24 = vand.u32 2147483647, %v751_v42 }
 0x4a5   :  { %3002 = vrcp.f32 %v745_v61  ;;  %v958_v51 = vand.u32 2147483648, %v745_v61  ;;  %v956_v48 = vand.u32 2147483647, %v745_v61  ;;  %vm952_vm9 = vweird.f32 %v745_v61 }
 0x4a6   :  { %3004 = vrcp.f32 %v751_v42  ;;  %v989_v9 = vor.u32 1.1754944e-38, %v988_v6  ;;  %vm987_vm4 = vcmp.eq.f32.partialorder %v986_v24, 8.507059e+37  ;;  %v1213_v6 = vld [vmem:[%s4607_s7 + $0x10] sm:$0xff] }
 0x4a7   :  { %v959_v52 = vor.u32 1.1754944e-38, %v958_v51  ;;  %vm957_vm12 = vcmp.eq.f32.partialorder %v956_v48, 8.507059e+37  ;;  %v1121_v51 = vmul.f32 %v4097_v50, %v1081_v49  ;;  %v1165_v48 = vld [vmem:[%s4605_s30 + $0x18] sm:$0xff] }
 0x4a8   :  { %1194 = vmatpush.msrb.mxu1 %v1165_v48 }
 0x4aa   :  { %v1084_v30 = vpop.f32.mrf.mxu3 }
 0x4ab   :  { %v3003_v46 = vpop.eup %3002 }
 0x4ac   :  { %v948_v44 = vmul.f32 %v3003_v46, %v745_v61  ;;  %v3005_v45 = vpop.eup %3004  ;;  %vm953_vm8 = vweird.f32 %v3003_v46 }
 0x4ad   :  { %v978_v53 = vmul.f32 %v3005_v45, %v751_v42  ;;  %vm954_vm10 = vmor %vm952_vm9, %vm953_vm8  ;;  %vm983_vm1 = vweird.f32 %v3005_v45  ;;  %v4081_v42 = vld [vmem:[%s4603_s13 + $0x40] sm:$0xff] }
 0x4ae   :  { %v949_v47 = vsub.f32 1.0, %v948_v44  ;;  %vm984_vm3 = vmor %vm982_vm2, %vm983_vm1 }
 0x4af   :  { %v979_v35 = vsub.f32 1.0, %v978_v53  ;;  %v4101_v53 = vld [vmem:[%s4603_s13 + $0x18] sm:$0xff] }
 0x4b0   :  { %v950_v54 = vmul.f32 %v3003_v46, %v949_v47 }
 0x4b1   :  { %v980_v56 = vmul.f32 %v3005_v45, %v979_v35 }
 0x4b2   :  { %v951_v57 = vadd.f32 %v3003_v46, %v950_v54  ;;  %v1120_v54 = vmul.f32 %v4101_v53, %v1078_v25 }
 0x4b3   :  { %v981_v3 = vadd.f32 %v3005_v45, %v980_v56  ;;  %v1087_v13 = vpop.f32.mrf.mxu3  ;;  %v316_v56 = vld [vmem:[%s4606_s6 + $0x8] sm:$0xff] }
 0x4b4   :  { %v955_v58 = vsel %vm954_vm10, %v3003_v46, %v951_v57  ;;  %v1123_v44 = vmul.f32 %v4089_v22, %v1087_v13  ;;  %v1164_v57 = vld [vmem:[%s4605_s30 + $0x10] sm:$0xff] }
 0x4b5   :  { %v960_v62 = vsel %vm957_vm12, %v959_v52, %v955_v58  ;;  %v4107_v52 = vld [vmem:[%s4603_s13 + $0x10] sm:$0xff]  ;;  %v1163_v58 = vld [vmem:[%s4605_s30 + $0x8] sm:$0xff]  ;;  %1195 = vmatpush.msrb.mxu1 %v1164_v57 }
 0x4b6   :  { %v961_v8 = vmul.f32 %v4022_v32, %v960_v62  ;;  %v985_v32 = vsel %vm984_vm3, %v3005_v45, %v981_v3  ;;  %v4093_v45 = vld [vmem:[%s4603_s13 + $0x28] sm:$0xff]  ;;  %v1119_v35 = vmul.f32 %v4107_v52, %v1075_v12  ;;  %v4116_v62 = vld [vmem:[%s4603_s13] sm:$0xff]  ;;  %v1214_v3 = vld [vmem:[%s4607_s7 + $0x18] sm:$0xff] }
 0x4b7   :  { %v990_v10 = vsel %vm987_vm4, %v989_v9, %v985_v32  ;;  %v1122_v47 = vmul.f32 %v4093_v45, %v1084_v30  ;;  %1196 = vmatpush.msrb.mxu1 %v1163_v58  ;;  %v1212_v9 = vld [vmem:[%s4607_s7 + $0x8] sm:$0xff] }
 0x4b8   :  { %2753 = vmatmul.msk.f32.gmra.mxu3 %vm352_vm0, %v961_v8  ;;  %v991_v11 = vmul.f32 %v4019_v23, %v990_v10  ;;  %v1117_v8 = vmul.f32 %v4116_v62, %v4048_v60  ;;  %v1211_v10 = vld [vmem:[%s4607_s7] sm:$0xff] }
 0x4b9   :  { %1197 = vmatpush.msrb.mxu1 %v1162_v2 }
 0x4bb   :  { %v1090_v14 = vpop.f32.mrf.mxu3 }
 0x4bc   :  { %v1124_v46 = vmul.f32 %v4085_v43, %v1090_v14 }
 0x4c0   :  { %2754 = vmatmul.msk.f32.gmra.mxu3 %vm352_vm0, %v976_v7 }
 0x4c3   :  { %v1093_v15 = vpop.f32.mrf.mxu3 }
 0x4c4   :  { %v1125_v61 = vmul.f32 %v4081_v42, %v1093_v15 }
 0x4c8   :  { %2755 = vmatmul.msk.f32.gmra.mxu3 %vm352_vm0, %v991_v11  ;;  %v2931_v11 = vld [vmem:[%s4608_s10] ss:$0 sm:$0xff] }
 0x4cb   :  { %v1096_v16 = vpop.f32.mrf.mxu3 }
 0x4cc   :  { %v1126_v37 = vmul.f32 %v4077_v41, %v1096_v16 }
 0x4d5   :  { %v1099_v18 = vpop.f32.mrf.mxu3 }
 0x4d6   :  { %v1127_v40 = vmul.f32 %v4073_v39, %v1099_v18  ;;  %v2932_v18 = vld [vmem:[%s4609_s29] ss:$0 sm:$0xff] }
 0x51a   :  { %v1102_v20 = vpop.f32.mrf.mxu3 }
 0x51b   :  { %v1128_v38 = vmul.f32 %v4069_v1, %v1102_v20 }
 0x522   :  { %v1105_v5 = vpop.f32.mrf.mxu3 }
 0x523   :  { %v1129_v36 = vmul.f32 %v4065_v34, %v1105_v5 }
 0x53b   :  { %v1108_v23 = vpop.f32.mrf.mxu3 }
 0x53c   :  { %v1130_v17 = vmul.f32 %v4061_v28, %v1108_v23 }
 0x543   :  { %v1111_v4 = vpop.f32.mrf.mxu3 }
 0x544   :  { %v1131_v27 = vmul.f32 %v4057_v33, %v1111_v4 }
 0x54b   :  { %v1114_v21 = vpop.f32.mrf.mxu3 }
 0x54c   :  { %v1132_v55 = vmul.f32 %v4053_v19, %v1114_v21 }
 0x54e   :  { %1133 = vmatpush.msrb.mxu0 %v1132_v55 }
 0x550   :  { %1134 = vmatpush.msrb.mxu0 %v1131_v27 }
 0x552   :  { %1135 = vmatpush.msrb.mxu0 %v1130_v17 }
 0x554   :  { %1136 = vmatpush.msrb.mxu0 %v1129_v36 }
 0x556   :  { %1137 = vmatpush.msrb.mxu0 %v1128_v38 }
 0x558   :  { %1138 = vmatpush.msrb.mxu0 %v1127_v40 }
 0x55a   :  { %1139 = vmatpush.msrb.mxu0 %v1126_v37 }
 0x55c   :  { %1140 = vmatpush.msrb.mxu0 %v1125_v61 }
 0x55e   :  { %1141 = vmatpush.msrb.mxu0 %v1124_v46 }
 0x560   :  { %1142 = vmatpush.msrb.mxu0 %v1123_v44 }
 0x562   :  { %1143 = vmatpush.msrb.mxu0 %v1122_v47 }
 0x564   :  { %1144 = vmatpush.msrb.mxu0 %v1121_v51 }
 0x566   :  { %1145 = vmatpush.msrb.mxu0 %v1120_v54 }
 0x568   :  { %1146 = vmatpush.msrb.mxu0 %v1119_v35 }
 0x56a   :  { %1147 = vmatpush.msrb.mxu0 %v1118_v29 }
 0x56c   :  { %1148 = vmatpush.msrb.mxu0 %v1117_v8 }
 0x56d   :  { %1149 = vmatmul.f32.vlgmr.msrb.gmra.mxu0 %v315_v31 }
 0x56e   :  { %1243 = vmatpush.msra.mxu0 %v1214_v3 }
 0x570   :  { %1244 = vmatpush.msra.mxu0 %v1213_v6 }
 0x572   :  { %1245 = vmatpush.msra.mxu0 %v1212_v9 }
 0x574   :  { %1246 = vmatpush.msra.mxu0 %v1211_v10 }
 0x575   :  { %1152 = vmatmul.f32.gmra.mxu0 %v316_v56 }
 0x57d   :  { %1155 = vmatmul.f32.gmra.mxu0 %v317_v63 }
 0x585   :  { %1158 = vmatmul.f32.gmra.mxu0 %v318_v0 }
 0x5ea   :  { %v1150_v7 = vpop.f32.mrf.mxu0 }
 0x5eb   :  { %2756 = vmatmul.msk.f32.vlgmr.msrb.gmra.mxu1 %vm352_vm0, %v1150_v7 }
 0x5f2   :  { %v1153_v24 = vpop.f32.mrf.mxu0 }
 0x5f3   :  { %2757 = vmatmul.msk.f32.gmra.mxu1 %vm352_vm0, %v1153_v24 }
 0x5fa   :  { %v1156_v32 = vpop.f32.mrf.mxu0 }
 0x5fb   :  { %2758 = vmatmul.msk.f32.gmra.mxu1 %vm352_vm0, %v1156_v32  ;;  %v3102_v32 = vld [vmem:[%s4604_s8] sm:$0xff] }
 0x602   :  { %v1159_v60 = vpop.f32.mrf.mxu0 }
 0x603   :  { %2759 = vmatmul.msk.f32.gmra.mxu1 %vm352_vm0, %v1159_v60 }
 0x668   :  { %v1199_v26 = vpop.f32.mrf.mxu1 }
 0x669   :  { %v1200_v12 = vadd.f32 %v2931_v11, %v1199_v26 }
 0x66b   :  { %2760 = vmatmul.msk.f32.vlgmr.msra.gmra.mxu0 %vm352_vm0, %v1200_v12 }
 0x670   :  { %v1202_v25 = vpop.f32.mrf.mxu1 }
 0x671   :  { %v1203_v49 = vadd.f32 %v2931_v11, %v1202_v25 }
 0x673   :  { %2761 = vmatmul.msk.f32.gmra.mxu0 %vm352_vm0, %v1203_v49 }
 0x678   :  { %v1205_v30 = vpop.f32.mrf.mxu1 }
 0x679   :  { %v1206_v13 = vadd.f32 %v2931_v11, %v1205_v30  ;;  %v3105_v30 = vld [vmem:[%s4604_s8 + $0x18] sm:$0xff] }
 0x67b   :  { %2762 = vmatmul.msk.f32.gmra.mxu0 %vm352_vm0, %v1206_v13 }
 0x680   :  { %v1208_v14 = vpop.f32.mrf.mxu1 }
 0x681   :  { %v1209_v15 = vadd.f32 %v2931_v11, %v1208_v14 }
 0x683   :  { %2763 = vmatmul.msk.f32.gmra.mxu0 %vm352_vm0, %v1209_v15 }
 0x6e8   :  { %v1248_v16 = vpop.f32.mrf.mxu0 }
 0x6e9   :  { %v4141_v23 = vadd.f32 %v2932_v18, %v1248_v16  ;;  %v3106_v16 = vld [vmem:[%s4604_s8 + $0x20] sm:$0xff] }
 0x6eb   :  { %v1260_v61 = vmul.f32 %v4116_v62, %v4141_v23  ;;  %v1264_v58 = vmul.f32 %v4097_v50, %v4141_v23  ;;  %v1268_v50 = vmul.f32 %v4081_v42, %v4141_v23  ;;  %v1272_v2 = vmul.f32 %v4065_v34, %v4141_v23 }
 0x6ed   :  { %v1276_v44 = vmul.f32 0.35355338, %v1260_v61  ;;  %v1280_v29 = vmul.f32 0.35355338, %v1264_v58  ;;  %v1284_v56 = vmul.f32 0.35355338, %v1268_v50 }
 0x6ee   :  { %v3108_v61 = vld [vmem:[%s4604_s8 + $0x30] sm:$0xff] }
 0x6f0   :  { %v1251_v20 = vpop.f32.mrf.mxu0 }
 0x6f1   :  { %v4139_v5 = vadd.f32 %v2932_v18, %v1251_v20 }
 0x6f3   :  { %1298 = vrot.lane.b32.xlu0 %v4139_v5, %s3489_s5  ;;  %v2904_v4 = vpack.i.bf16 %v4141_v23, %v4139_v5  ;;  %v1261_v47 = vmul.f32 %v4112_v59, %v4139_v5  ;;  %v1265_v59 = vmul.f32 %v4093_v45, %v4139_v5  ;;  %v1269_v45 = vmul.f32 %v4077_v41, %v4139_v5 }
 0x6f4   :  { %v1288_v41 = vmul.f32 0.35355338, %v1272_v2 }
 0x6f5   :  { %v1277_v51 = vmul.f32 0.35355338, %v1261_v47  ;;  %v1281_v62 = vmul.f32 0.35355338, %v1265_v59  ;;  %v1285_v63 = vmul.f32 0.35355338, %v1269_v45 }
 0x6f8   :  { %v1254_v21 = vpop.f32.mrf.mxu0 }
 0x6f9   :  { %v4147_v55 = vadd.f32 %v2932_v18, %v1254_v21 }
 0x6fb   :  { %1300 = vrot.lane.b32.xlu1 %v4147_v55, %s3489_s5  ;;  %v1262_v54 = vmul.f32 %v4107_v52, %v4147_v55  ;;  %v1266_v52 = vmul.f32 %v4089_v22, %v4147_v55  ;;  %v1270_v22 = vmul.f32 %v4073_v39, %v4147_v55  ;;  %v1273_v39 = vmul.f32 %v4061_v28, %v4139_v5 }
 0x6fd   :  { %v1278_v48 = vmul.f32 0.35355338, %v1262_v54  ;;  %v1282_v8 = vmul.f32 0.35355338, %v1266_v52  ;;  %v1286_v0 = vmul.f32 0.35355338, %v1270_v22 }
 0x6fe   :  { %v1289_v3 = vmul.f32 0.35355338, %v1273_v39 }
 0x700   :  { %v1257_v27 = vpop.f32.mrf.mxu0 }
 0x701   :  { %v4151_v17 = vadd.f32 %v2932_v18, %v1257_v27  ;;  %v3107_v27 = vld [vmem:[%s4604_s8 + $0x28] sm:$0xff] }
 0x703   :  { %1302 = vrot.lane.b32.xlu2 %v4151_v17, %s3489_s5  ;;  %v2899_v36 = vpack.i.bf16 %v4147_v55, %v4151_v17  ;;  %v1263_v57 = vmul.f32 %v4101_v53, %v4151_v17  ;;  %v1267_v53 = vmul.f32 %v4085_v43, %v4151_v17  ;;  %v1271_v43 = vmul.f32 %v4069_v1, %v4151_v17 }
 0x704   :  { %v1274_v1 = vmul.f32 %v4057_v33, %v4147_v55  ;;  %v1275_v34 = vmul.f32 %v4053_v19, %v4151_v17  ;;  %v3103_v33 = vld [vmem:[%s4604_s8 + $0x8] sm:$0xff]  ;;  %v3104_v19 = vld [vmem:[%s4604_s8 + $0x10] sm:$0xff] }
 0x705   :  { %v1279_v35 = vmul.f32 0.35355338, %v1263_v57  ;;  %v1283_v31 = vmul.f32 0.35355338, %v1267_v53  ;;  %v1287_v42 = vmul.f32 0.35355338, %v1271_v43 }
 0x706   :  { %v1290_v6 = vmul.f32 0.35355338, %v1274_v1  ;;  %v1291_v7 = vmul.f32 0.35355338, %v1275_v34 }
 0x70b   :  { %1296 = vrot.lane.b32.xlu2 %v4141_v23, %s3489_s5 }
 0x75d   :  { %v1303_v38 = vpop.permute.xlu2 %1302 }
 0x75e   :  { %2764 = vmatpush.xpose.msk.msra.mxu1 %vm352_vm0, %v1303_v38 }
 0x765   :  { %v1299_v37 = vpop.permute.xlu0 %1298  ;;  %v1297_v46 = vpop.permute.xlu2 %1296 }
 0x76d   :  { %v1301_v40 = vpop.permute.xlu1 %1300 }
 0x76e   :  { %2765 = vmatpush.xpose.msk.msra.mxu1 %vm352_vm0, %v1301_v40 }
 0x772   :  { %2766 = vmatpush.xpose.msk.msra.mxu1 %vm352_vm0, %v1299_v37 }
 0x776   :  { %2767 = vmatpush.xpose.msk.msra.mxu1 %vm352_vm0, %v1297_v46 }
 0x779   :  { %2768 = vmatmul.msk.f32.vlgmr.msra.gmra.mxu1 %vm352_vm0, %v1276_v44 }
 0x781   :  { %2769 = vmatmul.msk.f32.gmra.mxu1 %vm352_vm0, %v1277_v51  ;;  %v3109_v51 = vld [vmem:[%s4604_s8 + $0x38] sm:$0xff] }
 0x789   :  { %2770 = vmatmul.msk.f32.gmra.mxu1 %vm352_vm0, %v1278_v48 }
 0x791   :  { %2771 = vmatmul.msk.f32.gmra.mxu1 %vm352_vm0, %v1279_v35  ;;  %v3110_v35 = vld [vmem:[%s4604_s8 + $0x40] sm:$0xff] }
 0x799   :  { %2772 = vmatmul.msk.f32.gmra.mxu1 %vm352_vm0, %v1280_v29 }
 0x7a1   :  { %2773 = vmatmul.msk.f32.gmra.mxu1 %vm352_vm0, %v1281_v62  ;;  %v3111_v62 = vld [vmem:[%s4604_s8 + $0x48] sm:$0xff] }
 0x7a9   :  { %2774 = vmatmul.msk.f32.gmra.mxu1 %vm352_vm0, %v1282_v8 }
 0x7b1   :  { %2775 = vmatmul.msk.f32.gmra.mxu1 %vm352_vm0, %v1283_v31 }
 0x7b9   :  { %2776 = vmatmul.msk.f32.gmra.mxu1 %vm352_vm0, %v1284_v56  ;;  %v3112_v56 = vld [vmem:[%s4604_s8 + $0x60] sm:$0xff] }
 0x7c1   :  { %2777 = vmatmul.msk.f32.gmra.mxu1 %vm352_vm0, %v1285_v63 }
 0x7c9   :  { %2778 = vmatmul.msk.f32.gmra.mxu1 %vm352_vm0, %v1286_v0  ;;  %v3113_v0 = vld [vmem:[%s4604_s8 + $0x50] sm:$0xff] }
 0x7d1   :  { %2779 = vmatmul.msk.f32.gmra.mxu1 %vm352_vm0, %v1287_v42 }
 0x7d9   :  { %2780 = vmatmul.msk.f32.gmra.mxu1 %vm352_vm0, %v1288_v41 }
 0x7e1   :  { %2781 = vmatmul.msk.f32.gmra.mxu1 %vm352_vm0, %v1289_v3 }
 0x7e9   :  { %2782 = vmatmul.msk.f32.gmra.mxu1 %vm352_vm0, %v1290_v6 }
 0x7f1   :  { %2783 = vmatmul.msk.f32.gmra.mxu1 %vm352_vm0, %v1291_v7 }
 0x7f6   :  { %v1377_v24 = vpop.f32.mrf.mxu1 }
 0x7f7   :  { %v1378_v28 = vadd.f32 %v3102_v32, %v1377_v24 }
 0x7f9   :  { %v1425_v60 = vsel %vm352_vm0, %v1378_v28, -inf }
 0x7fa   :  { %1426 = vmax.xlane.f32.xlu0 %v1425_v60 }
 0x7fe   :  { %v1380_v9 = vpop.f32.mrf.mxu1 }
 0x7ff   :  { %v1381_v10 = vadd.f32 %v3103_v33, %v1380_v9 }
 0x801   :  { %v1428_v11 = vsel %vm352_vm0, %v1381_v10, -inf }
 0x802   :  { %1429 = vmax.xlane.f32.xlu1 %v1428_v11 }
 0x806   :  { %v1383_v26 = vpop.f32.mrf.mxu1 }
 0x807   :  { %v4216_v12 = vadd.f32 %v3104_v19, %v1383_v26 }
 0x809   :  { %v1431_v25 = vsel %vm352_vm0, %v4216_v12, -inf }
 0x80a   :  { %1432 = vmax.xlane.f32.xlu2 %v1431_v25 }
 0x80e   :  { %v1386_v49 = vpop.f32.mrf.mxu1 }
 0x80f   :  { %v4221_v13 = vadd.f32 %v3105_v30, %v1386_v49 }
 0x811   :  { %v1434_v14 = vsel %vm352_vm0, %v4221_v13, -inf }
 0x812   :  { %1435 = vmax.xlane.f32.xlu0 %v1434_v14 }
 0x816   :  { %v1389_v15 = vpop.f32.mrf.mxu1 }
 0x817   :  { %v4226_v18 = vadd.f32 %v3106_v16, %v1389_v15 }
 0x819   :  { %v1437_v20 = vsel %vm352_vm0, %v4226_v18, -inf }
 0x81a   :  { %1438 = vmax.xlane.f32.xlu1 %v1437_v20 }
 0x81e   :  { %v1392_v21 = vpop.f32.mrf.mxu1 }
 0x81f   :  { %v4231_v38 = vadd.f32 %v3107_v27, %v1392_v21 }
 0x821   :  { %v1440_v40 = vsel %vm352_vm0, %v4231_v38, -inf }
 0x822   :  { %1441 = vmax.xlane.f32.xlu2 %v1440_v40 }
 0x826   :  { %v1395_v37 = vpop.f32.mrf.mxu1 }
 0x827   :  { %v4236_v46 = vadd.f32 %v3108_v61, %v1395_v37 }
 0x829   :  { %v1443_v44 = vsel %vm352_vm0, %v4236_v46, -inf }
 0x82a   :  { %1444 = vmax.xlane.f32.xlu0 %v1443_v44 }
 0x82e   :  { %v1398_v47 = vpop.f32.mrf.mxu1 }
 0x82f   :  { %v4241_v54 = vadd.f32 %v3109_v51, %v1398_v47 }
 0x831   :  { %v1446_v48 = vsel %vm352_vm0, %v4241_v54, -inf }
 0x832   :  { %1447 = vmax.xlane.f32.xlu2 %v1446_v48 }
 0x836   :  { %v1401_v57 = vpop.f32.mrf.mxu1 }
 0x837   :  { %v4246_v58 = vadd.f32 %v3110_v35, %v1401_v57 }
 0x839   :  { %v1449_v29 = vsel %vm352_vm0, %v4246_v58, -inf }
 0x83a   :  { %1450 = vmax.xlane.f32.xlu1 %v1449_v29 }
 0x83e   :  { %v1404_v59 = vpop.f32.mrf.mxu1 }
 0x83f   :  { %v4251_v52 = vadd.f32 %v3111_v62, %v1404_v59 }
 0x841   :  { %v1452_v8 = vsel %vm352_vm0, %v4251_v52, -inf }
 0x842   :  { %1453 = vmax.xlane.f32.xlu0 %v1452_v8  ;;  %v3115_v8 = vld [vmem:[%s4604_s8 + $0x70] sm:$0xff] }
 0x846   :  { %v1407_v53 = vpop.f32.mrf.mxu1 }
 0x847   :  { %v4267_v43 = vadd.f32 %v3113_v0, %v1407_v53 }
 0x849   :  { %v1455_v55 = vsel %vm352_vm0, %v4267_v43, -inf }
 0x84a   :  { %2900 = vrot.lane.b32.xlu2 %v2899_v36, %s3490_s14 }
 0x84e   :  { %v4259_v31 = vpop.f32.mrf.mxu1 }
 0x856   :  { %v1413_v50 = vpop.f32.mrf.mxu1 }
 0x857   :  { %v4262_v45 = vadd.f32 %v3112_v56, %v1413_v50  ;;  %v3116_v56 = vld [vmem:[%s4604_s8 + $0x58] sm:$0xff] }
 0x859   :  { %v1461_v63 = vsel %vm352_vm0, %v4262_v45, -inf }
 0x85a   :  { %1462 = vmax.xlane.f32.xlu0 %v1461_v63  ;;  %v4327_v63 = vadd.f32 %v3116_v56, %v4259_v31 }
 0x86d   :  { %v1427_v22 = vpop.xlane.xlu0 %1426 }
 0x86e   :  { %v1473_v42 = vsub.f32 %v1378_v28, %v1427_v22 }
 0x870   :  { %v1489_v2 = vmul.f32 1.442695, %v1473_v42 }
 0x872   :  { %3006 = vpow2.f32 %v1489_v2  ;;  %v1458_v2 = vsel %vm352_vm0, %v4327_v63, -inf }
 0x873   :  { %1456 = vmax.xlane.f32.xlu2 %v1455_v55 }
 0x875   :  { %v1430_v17 = vpop.xlane.xlu1 %1429 }
 0x876   :  { %v1474_v36 = vsub.f32 %v1381_v10, %v1430_v17  ;;  %v3117_v17 = vld [vmem:[%s4604_s8 + $0x78] sm:$0xff] }
 0x878   :  { %v4271_v41 = vpop.eup %3006  ;;  %v1491_v39 = vmul.f32 1.442695, %v1474_v36 }
 0x879   :  { %v1521_v3 = vsel %vm352_vm0, %v4271_v41, 0.0 }
 0x87a   :  { %3008 = vpow2.f32 %v1491_v39  ;;  %1522 = vadd.xlane.f32.xlu1 %v1521_v3 }
 0x87d   :  { %v1433_v1 = vpop.xlane.xlu2 %1432 }
 0x87e   :  { %v1475_v6 = vsub.f32 %v4216_v12, %v1433_v1 }
 0x880   :  { %v4276_v34 = vpop.eup %3008  ;;  %v1493_v7 = vmul.f32 1.442695, %v1475_v6 }
 0x881   :  { %v1524_v24 = vsel %vm352_vm0, %v4276_v34, 0.0 }
 0x882   :  { %3010 = vpow2.f32 %v1493_v7  ;;  %1525 = vadd.xlane.f32.xlu0 %v1524_v24 }
 0x885   :  { %v1436_v32 = vpop.xlane.xlu0 %1435 }
 0x886   :  { %v1476_v28 = vsub.f32 %v4221_v13, %v1436_v32 }
 0x888   :  { %v4281_v60 = vpop.eup %3010  ;;  %v1495_v9 = vmul.f32 1.442695, %v1476_v28 }
 0x889   :  { %v1527_v33 = vsel %vm352_vm0, %v4281_v60, 0.0 }
 0x88a   :  { %3012 = vpow2.f32 %v1495_v9  ;;  %1528 = vadd.xlane.f32.xlu0 %v1527_v33 }
 0x88d   :  { %v1439_v10 = vpop.xlane.xlu1 %1438 }
 0x88e   :  { %v1477_v11 = vsub.f32 %v4226_v18, %v1439_v10 }
 0x890   :  { %v4286_v26 = vpop.eup %3012  ;;  %v1497_v19 = vmul.f32 1.442695, %v1477_v11 }
 0x891   :  { %v1530_v12 = vsel %vm352_vm0, %v4286_v26, 0.0 }
 0x892   :  { %3014 = vpow2.f32 %v1497_v19  ;;  %1531 = vadd.xlane.f32.xlu0 %v1530_v12 }
 0x893   :  { %2905 = vrot.lane.b32.xlu1 %v2904_v4, %s3490_s14 }
 0x895   :  { %v1442_v25 = vpop.xlane.xlu2 %1441 }
 0x896   :  { %v1478_v49 = vsub.f32 %v4231_v38, %v1442_v25  ;;  %v1416_v38 = vpop.f32.mrf.mxu1 }
 0x898   :  { %v4295_v30 = vpop.eup %3014  ;;  %v1499_v13 = vmul.f32 1.442695, %v1478_v49 }
 0x899   :  { %v1533_v14 = vsel %vm352_vm0, %v4295_v30, 0.0 }
 0x89a   :  { %3016 = vpow2.f32 %v1499_v13  ;;  %1534 = vadd.xlane.f32.xlu0 %v1533_v14 }
 0x89d   :  { %v1445_v15 = vpop.xlane.xlu0 %1444 }
 0x89e   :  { %v1479_v16 = vsub.f32 %v4236_v46, %v1445_v15  ;;  %v3114_v46 = vld [vmem:[%s4604_s8 + $0x68] sm:$0xff]  ;;  %v1419_v59 = vpop.f32.mrf.mxu1 }
 0x89f   :  { %v4310_v44 = vadd.f32 %v3114_v46, %v1416_v38 }
 0x8a0   :  { %v4300_v18 = vpop.eup %3016  ;;  %v1501_v20 = vmul.f32 1.442695, %v1479_v16 }
 0x8a1   :  { %v1536_v5 = vsel %vm352_vm0, %v4300_v18, 0.0  ;;  %v1464_v29 = vsel %vm352_vm0, %v4310_v44, -inf }
 0x8a2   :  { %3018 = vpow2.f32 %v1501_v20  ;;  %1537 = vadd.xlane.f32.xlu0 %v1536_v5 }
 0x8a5   :  { %v1448_v23 = vpop.xlane.xlu2 %1447 }
 0x8a6   :  { %v1480_v4 = vsub.f32 %v4241_v54, %v1448_v23 }
 0x8a8   :  { %v4305_v21 = vpop.eup %3018  ;;  %v1503_v27 = vmul.f32 1.442695, %v1480_v4 }
 0x8a9   :  { %v1539_v40 = vsel %vm352_vm0, %v4305_v21, 0.0 }
 0x8aa   :  { %3020 = vpow2.f32 %v1503_v27  ;;  %1540 = vadd.xlane.f32.xlu0 %v1539_v40 }
 0x8ad   :  { %v2901_v37 = vpop.permute.xlu2 %2900  ;;  %v1451_v61 = vpop.xlane.xlu1 %1450 }
 0x8ae   :  { %v2902_v47 = vunpack.i.l.bf16 %v2901_v37  ;;  %v1481_v51 = vsub.f32 %v4246_v58, %v1451_v61  ;;  %v2903_v54 = vunpack.i.h.bf16 %v2901_v37  ;;  %v4320_v58 = vadd.f32 %v3115_v8, %v1419_v59 }
 0x8b0   :  { %v4313_v48 = vpop.eup %3020  ;;  %v1505_v57 = vmul.f32 1.442695, %v1481_v51  ;;  %1881 = vmatpush.msrb.mxu0 %v2902_v47  ;;  %v1467_v42 = vsel %vm352_vm0, %v4320_v58, -inf }
 0x8b1   :  { %v1542_v35 = vsel %vm352_vm0, %v4313_v48, 0.0 }
 0x8b2   :  { %3022 = vpow2.f32 %v1505_v57  ;;  %1543 = vadd.xlane.f32.xlu2 %v1542_v35  ;;  %1882 = vmatpush.msrb.mxu0 %v2903_v54 }
 0x8b3   :  { %1465 = vmax.xlane.f32.xlu0 %v1464_v29 }
 0x8b5   :  { %v1454_v62 = vpop.xlane.xlu0 %1453 }
 0x8b6   :  { %v1482_v53 = vsub.f32 %v4251_v52, %v1454_v62  ;;  %v1422_v52 = vpop.f32.mrf.mxu1 }
 0x8b7   :  { %v4338_v31 = vadd.f32 %v3117_v17, %v1422_v52 }
 0x8b8   :  { %v4323_v50 = vpop.eup %3022  ;;  %v1507_v22 = vmul.f32 1.442695, %v1482_v53 }
 0x8b9   :  { %v1545_v0 = vsel %vm352_vm0, %v4323_v50, 0.0  ;;  %v1470_v39 = vsel %vm352_vm0, %v4338_v31, -inf }
 0x8ba   :  { %3024 = vpow2.f32 %v1507_v22  ;;  %1546 = vadd.xlane.f32.xlu2 %v1545_v0 }
 0x8bb   :  { %1468 = vmax.xlane.f32.xlu0 %v1467_v42 }
 0x8bd   :  { %1459 = vmax.xlane.f32.xlu1 %v1458_v2 }
 0x8c0   :  { %v4335_v55 = vpop.eup %3024 }
 0x8c1   :  { %v1548_v36 = vsel %vm352_vm0, %v4335_v55, 0.0 }
 0x8c3   :  { %1549 = vadd.xlane.f32.xlu0 %v1548_v36 }
 0x8c5   :  { %1471 = vmax.xlane.f32.xlu1 %v1470_v39 }
 0x8cd   :  { %v1463_v3 = vpop.xlane.xlu0 %1462 }
 0x8ce   :  { %v1485_v1 = vsub.f32 %v4262_v45, %v1463_v3 }
 0x8d0   :  { %v1513_v6 = vmul.f32 1.442695, %v1485_v1 }
 0x8d2   :  { %3026 = vpow2.f32 %v1513_v6 }
 0x8d8   :  { %v4345_v7 = vpop.eup %3026 }
 0x8d9   :  { %v1557_v24 = vsel %vm352_vm0, %v4345_v7, 0.0 }
 0x8da   :  { %1558 = vadd.xlane.f32.xlu0 %v1557_v24 }
 0x8e6   :  { %v1457_v32 = vpop.xlane.xlu2 %1456 }
 0x8e7   :  { %v1483_v28 = vsub.f32 %v4267_v43, %v1457_v32 }
 0x8e9   :  { %v1509_v9 = vmul.f32 1.442695, %v1483_v28 }
 0x8eb   :  { %3028 = vpow2.f32 %v1509_v9 }
 0x8ed   :  { %v1523_v33 = vpop.xlane.xlu1 %1522 }
 0x8ee   :  { %3030 = vrcp.f32 %v1523_v33  ;;  %v1580_v20 = vand.u32 2147483648, %v1523_v33  ;;  %vm1574_vm6 = vweird.f32 %v1523_v33  ;;  %v1578_v5 = vand.u32 2147483647, %v1523_v33 }
 0x8f0   :  { %v1581_v38 = vor.u32 1.1754944e-38, %v1580_v20  ;;  %vm1579_vm8 = vcmp.eq.f32.partialorder %v1578_v5, 8.507059e+37 }
 0x8f1   :  { %v4350_v10 = vpop.eup %3028 }
 0x8f2   :  { %v1551_v45 = vsel %vm352_vm0, %v4350_v10, 0.0 }
 0x8f3   :  { %1552 = vadd.xlane.f32.xlu2 %v1551_v45 }
 0x8f4   :  { %v3031_v11 = vpop.eup %3030 }
 0x8f5   :  { %v1570_v19 = vmul.f32 %v3031_v11, %v1523_v33  ;;  %v1526_v12 = vpop.xlane.xlu0 %1525  ;;  %vm1575_vm5 = vweird.f32 %v3031_v11 }
 0x8f6   :  { %3032 = vrcp.f32 %v1526_v12  ;;  %vm1576_vm7 = vmor %vm1574_vm6, %vm1575_vm5  ;;  %v1595_v57 = vand.u32 2147483648, %v1526_v12  ;;  %vm1589_vm10 = vweird.f32 %v1526_v12  ;;  %v1593_v59 = vand.u32 2147483647, %v1526_v12 }
 0x8f7   :  { %v1571_v25 = vsub.f32 1.0, %v1570_v19 }
 0x8f8   :  { %v1596_v56 = vor.u32 1.1754944e-38, %v1595_v57  ;;  %vm1594_vm12 = vcmp.eq.f32.partialorder %v1593_v59, 8.507059e+37 }
 0x8f9   :  { %v1572_v49 = vmul.f32 %v3031_v11, %v1571_v25 }
 0x8fb   :  { %v1573_v43 = vadd.f32 %v3031_v11, %v1572_v49 }
 0x8fc   :  { %v3033_v13 = vpop.eup %3032 }
 0x8fd   :  { %v1585_v14 = vmul.f32 %v3033_v13, %v1526_v12  ;;  %v1529_v15 = vpop.xlane.xlu0 %1528  ;;  %v1577_v23 = vsel %vm1576_vm7, %v3031_v11, %v1573_v43  ;;  %vm1590_vm9 = vweird.f32 %v3033_v13 }
 0x8fe   :  { %3034 = vrcp.f32 %v1529_v15  ;;  %v1582_v46 = vsel %vm1579_vm8, %v1581_v38, %v1577_v23  ;;  %vm1591_vm11 = vmor %vm1589_vm10, %vm1590_vm9  ;;  %v1610_v17 = vand.u32 2147483648, %v1529_v15  ;;  %vm1604_vm14 = vweird.f32 %v1529_v15 }
 0x8ff   :  { %v1586_v16 = vsub.f32 1.0, %v1585_v14  ;;  %v1583_v29 = vmul.f32 %v4271_v41, %v1582_v46  ;;  %v1608_v36 = vand.u32 2147483647, %v1529_v15 }
 0x900   :  { %v1611_v6 = vor.u32 1.1754944e-38, %v1610_v17 }
 0x901   :  { %v1587_v4 = vmul.f32 %v3033_v13, %v1586_v16  ;;  %vm1609_vm1 = vcmp.eq.f32.partialorder %v1608_v36, 8.507059e+37 }
 0x903   :  { %v1588_v54 = vadd.f32 %v3033_v13, %v1587_v4 }
 0x904   :  { %v3035_v27 = vpop.eup %3034 }
 0x905   :  { %v1600_v40 = vmul.f32 %v3035_v27, %v1529_v15  ;;  %v2906_v37 = vpop.permute.xlu1 %2905  ;;  %v1532_v61 = vpop.xlane.xlu0 %1531  ;;  %v1592_v8 = vsel %vm1591_vm11, %v3033_v13, %v1588_v54  ;;  %vm1605_vm13 = vweird.f32 %v3035_v27 }
 0x906   :  { %v2907_v47 = vunpack.i.l.bf16 %v2906_v37  ;;  %3036 = vrcp.f32 %v1532_v61  ;;  %v2908_v35 = vunpack.i.h.bf16 %v2906_v37  ;;  %v1597_v42 = vsel %vm1594_vm12, %v1596_v56, %v1592_v8  ;;  %vm1606_vm15 = vmor %vm1604_vm14, %vm1605_vm13 }
 0x907   :  { %v1601_v51 = vsub.f32 1.0, %v1600_v40  ;;  %v1598_v41 = vmul.f32 %v4276_v34, %v1597_v42  ;;  %v1625_v45 = vand.u32 2147483648, %v1532_v61  ;;  %vm1619_vm3 = vweird.f32 %v1532_v61 }
 0x908   :  { %1883 = vmatpush.msrb.mxu0 %v2907_v47  ;;  %v1623_v11 = vand.u32 2147483647, %v1532_v61 }
 0x909   :  { %v1602_v62 = vmul.f32 %v3035_v27, %v1601_v51  ;;  %v1626_v49 = vor.u32 1.1754944e-38, %v1625_v45 }
 0x90a   :  { %1884 = vmatpush.msrb.mxu0 %v2908_v35  ;;  %vm1624_vm5 = vcmp.eq.f32.partialorder %v1623_v11, 8.507059e+37 }
 0x90b   :  { %2784 = vmatmul.msk.f32.vlgmr.msrb.gmra.mxu0 %vm352_vm0, %v1583_v29  ;;  %v1603_v52 = vadd.f32 %v3035_v27, %v1602_v62 }
 0x90c   :  { %v3037_v53 = vpop.eup %3036 }
 0x90d   :  { %v1615_v22 = vmul.f32 %v3037_v53, %v1532_v61  ;;  %v1535_v0 = vpop.xlane.xlu0 %1534  ;;  %v1607_v3 = vsel %vm1606_vm15, %v3035_v27, %v1603_v52  ;;  %vm1620_vm2 = vweird.f32 %v3037_v53 }
 0x90e   :  { %3038 = vrcp.f32 %v1535_v0  ;;  %v1612_v28 = vsel %vm1609_vm1, %v1611_v6, %v1607_v3  ;;  %vm1621_vm4 = vmor %vm1619_vm3, %vm1620_vm2  ;;  %v1640_v20 = vand.u32 2147483648, %v1535_v0  ;;  %vm1634_vm7 = vweird.f32 %v1535_v0 }
 0x90f   :  { %v1616_v2 = vsub.f32 1.0, %v1615_v22  ;;  %v1613_v34 = vmul.f32 %v4281_v60, %v1612_v28  ;;  %v1638_v5 = vand.u32 2147483647, %v1535_v0 }
 0x910   :  { %v1641_v38 = vor.u32 1.1754944e-38, %v1640_v20 }
 0x911   :  { %v1617_v39 = vmul.f32 %v3037_v53, %v1616_v2  ;;  %vm1639_vm9 = vcmp.eq.f32.partialorder %v1638_v5, 8.507059e+37 }
 0x913   :  { %2785 = vmatmul.msk.f32.gmra.mxu0 %vm352_vm0, %v1598_v41  ;;  %v1618_v33 = vadd.f32 %v3037_v53, %v1617_v39 }
 0x914   :  { %v3039_v1 = vpop.eup %3038 }
 0x915   :  { %v1630_v24 = vmul.f32 %v3039_v1, %v1535_v0  ;;  %v1538_v32 = vpop.xlane.xlu0 %1537  ;;  %v1622_v12 = vsel %vm1621_vm4, %v3037_v53, %v1618_v33  ;;  %vm1635_vm6 = vweird.f32 %v3039_v1 }
 0x916   :  { %3040 = vrcp.f32 %v1538_v32  ;;  %v1627_v15 = vsel %vm1624_vm5, %v1626_v49, %v1622_v12  ;;  %vm1636_vm8 = vmor %vm1634_vm7, %vm1635_vm6  ;;  %v1655_v54 = vand.u32 2147483648, %v1538_v32  ;;  %vm1649_vm11 = vweird.f32 %v1538_v32 }
 0x917   :  { %v1631_v9 = vsub.f32 1.0, %v1630_v24  ;;  %v1628_v60 = vmul.f32 %v4286_v26, %v1627_v15  ;;  %v1653_v29 = vand.u32 2147483647, %v1538_v32 }
 0x918   :  { %v1656_v53 = vor.u32 1.1754944e-38, %v1655_v54 }
 0x919   :  { %v1632_v19 = vmul.f32 %v3039_v1, %v1631_v9  ;;  %vm1654_vm13 = vcmp.eq.f32.partialorder %v1653_v29, 8.507059e+37 }
 0x91b   :  { %2786 = vmatmul.msk.f32.gmra.mxu0 %vm352_vm0, %v1613_v34  ;;  %v1633_v16 = vadd.f32 %v3039_v1, %v1632_v19 }
 0x91c   :  { %v3041_v25 = vpop.eup %3040 }
 0x91d   :  { %v1645_v13 = vmul.f32 %v3041_v25, %v1538_v32  ;;  %v4360_v14 = vpop.xlane.xlu0 %1540  ;;  %v1637_v4 = vsel %vm1636_vm8, %v3039_v1, %v1633_v16  ;;  %vm1650_vm10 = vweird.f32 %v3041_v25 }
 0x91e   :  { %3042 = vrcp.f32 %v4360_v14  ;;  %v1642_v46 = vsel %vm1639_vm9, %v1641_v38, %v1637_v4  ;;  %vm1651_vm12 = vmor %vm1649_vm11, %vm1650_vm10  ;;  %v1670_v2 = vand.u32 2147483648, %v4360_v14  ;;  %vm1664_vm15 = vweird.f32 %v4360_v14 }
 0x91f   :  { %v1646_v43 = vsub.f32 1.0, %v1645_v13  ;;  %v1643_v35 = vmul.f32 %v4295_v30, %v1642_v46  ;;  %v1668_v39 = vand.u32 2147483647, %v4360_v14 }
 0x920   :  { %v1671_v9 = vor.u32 1.1754944e-38, %v1670_v2 }
 0x921   :  { %v1647_v23 = vmul.f32 %v3041_v25, %v1646_v43  ;;  %vm1669_vm2 = vcmp.eq.f32.partialorder %v1668_v39, 8.507059e+37 }
 0x923   :  { %2787 = vmatmul.msk.f32.gmra.mxu0 %vm352_vm0, %v1628_v60  ;;  %v1648_v51 = vadd.f32 %v3041_v25, %v1647_v23 }
 0x924   :  { %v3043_v27 = vpop.eup %3042 }
 0x925   :  { %v1660_v40 = vmul.f32 %v3043_v27, %v4360_v14  ;;  %v4366_v37 = vpop.xlane.xlu2 %1543  ;;  %v1652_v62 = vsel %vm1651_vm12, %v3041_v25, %v1648_v51  ;;  %vm1665_vm14 = vweird.f32 %v3043_v27 }
 0x926   :  { %3044 = vrcp.f32 %v4366_v37  ;;  %v1466_v61 = vpop.xlane.xlu0 %1465  ;;  %v1657_v0 = vsel %vm1654_vm13, %v1656_v53, %v1652_v62  ;;  %vm1666_vm1 = vmor %vm1664_vm15, %vm1665_vm14  ;;  %vm1679_vm4 = vweird.f32 %v4366_v37  ;;  %v1683_v49 = vand.u32 2147483647, %v4366_v37 }
 0x927   :  { %v1661_v47 = vsub.f32 1.0, %v1660_v40  ;;  %v1486_v26 = vsub.f32 %v4310_v44, %v1466_v61  ;;  %v1658_v36 = vmul.f32 %v4300_v18, %v1657_v0 }
 0x928   :  { %vm1684_vm6 = vcmp.eq.f32.partialorder %v1683_v49, 8.507059e+37 }
 0x929   :  { %v1515_v57 = vmul.f32 1.442695, %v1486_v26  ;;  %v1662_v59 = vmul.f32 %v3043_v27, %v1661_v47 }
 0x92b   :  { %3046 = vpow2.f32 %v1515_v57  ;;  %2788 = vmatmul.msk.f32.gmra.mxu0 %vm352_vm0, %v1643_v35  ;;  %v1663_v30 = vadd.f32 %v3043_v27, %v1662_v59 }
 0x92c   :  { %v3045_v8 = vpop.eup %3044 }
 0x92d   :  { %v1675_v56 = vmul.f32 %v3045_v8, %v4366_v37  ;;  %v4373_v22 = vpop.xlane.xlu2 %1546  ;;  %v1667_v32 = vsel %vm1666_vm1, %v3043_v27, %v1663_v30  ;;  %vm1680_vm3 = vweird.f32 %v3045_v8 }
 0x92e   :  { %3048 = vrcp.f32 %v4373_v22  ;;  %v1469_v44 = vpop.xlane.xlu0 %1468  ;;  %v1672_v33 = vsel %vm1669_vm2, %v1671_v9, %v1667_v32  ;;  %vm1681_vm5 = vmor %vm1679_vm4, %vm1680_vm3  ;;  %v1700_v23 = vand.u32 2147483648, %v4373_v22  ;;  %vm1694_vm8 = vweird.f32 %v4373_v22 }
 0x92f   :  { %v1676_v42 = vsub.f32 1.0, %v1675_v56  ;;  %v1487_v6 = vsub.f32 %v4320_v58, %v1469_v44  ;;  %v1685_v58 = vand.u32 2147483648, %v4366_v37  ;;  %v1673_v25 = vmul.f32 %v4305_v21, %v1672_v33 }
 0x930   :  { %v1460_v52 = vpop.xlane.xlu1 %1459  ;;  %v1698_v40 = vand.u32 2147483647, %v4373_v22  ;;  %v1701_v47 = vor.u32 1.1754944e-38, %v1700_v23 }
 0x931   :  { %v4377_v17 = vpop.eup %3046  ;;  %v1484_v41 = vsub.f32 %v4327_v63, %v1460_v52  ;;  %v1677_v1 = vmul.f32 %v3045_v8, %v1676_v42  ;;  %v1517_v34 = vmul.f32 1.442695, %v1487_v6  ;;  %v1686_v16 = vor.u32 1.1754944e-38, %v1685_v58 }
 0x932   :  { %v1560_v3 = vsel %vm352_vm0, %v4377_v17, 0.0  ;;  %vm1699_vm10 = vcmp.eq.f32.partialorder %v1698_v40, 8.507059e+37 }
 0x933   :  { %v1511_v24 = vmul.f32 1.442695, %v1484_v41  ;;  %1561 = vadd.xlane.f32.xlu2 %v1560_v3  ;;  %2789 = vmatmul.msk.f32.gmra.mxu0 %vm352_vm0, %v1658_v36  ;;  %v1678_v11 = vadd.f32 %v3045_v8, %v1677_v1 }
 0x934   :  { %v3049_v28 = vpop.eup %3048 }
 0x935   :  { %v1690_v63 = vmul.f32 %v3049_v28, %v4373_v22  ;;  %3050 = vpow2.f32 %v1511_v24  ;;  %v1682_v43 = vsel %vm1681_vm5, %v3045_v8, %v1678_v11  ;;  %vm1695_vm7 = vweird.f32 %v3049_v28 }
 0x936   :  { %v1550_v18 = vpop.xlane.xlu0 %1549  ;;  %vm1696_vm9 = vmor %vm1694_vm8, %vm1695_vm7 }
 0x937   :  { %v1691_v45 = vsub.f32 1.0, %v1690_v63  ;;  %3052 = vrcp.f32 %v1550_v18  ;;  %v1715_v57 = vand.u32 2147483648, %v1550_v18  ;;  %vm1709_vm12 = vweird.f32 %v1550_v18 }
 0x938   :  { %v1472_v19 = vpop.xlane.xlu1 %1471  ;;  %3054 = vpow2.f32 %v1517_v34  ;;  %v1713_v29 = vand.u32 2147483647, %v1550_v18 }
 0x939   :  { %v1488_v12 = vsub.f32 %v4338_v31, %v1472_v19  ;;  %v1692_v14 = vmul.f32 %v3049_v28, %v1691_v45  ;;  %v1687_v31 = vsel %vm1684_vm6, %v1686_v16, %v1682_v43  ;;  %v1716_v62 = vor.u32 1.1754944e-38, %v1715_v57 }
 0x93a   :  { %v1688_v38 = vmul.f32 %v4313_v48, %v1687_v31  ;;  %vm1714_vm14 = vcmp.eq.f32.partialorder %v1713_v29, 8.507059e+37 }
 0x93b   :  { %v4393_v13 = vpop.eup %3050  ;;  %v1519_v15 = vmul.f32 1.442695, %v1488_v12  ;;  %2790 = vmatmul.msk.f32.gmra.mxu0 %vm352_vm0, %v1673_v25  ;;  %v1693_v5 = vadd.f32 %v3049_v28, %v1692_v14 }
 0x93c   :  { %v1554_v20 = vsel %vm352_vm0, %v4393_v13, 0.0 }
 0x93d   :  { %v3053_v60 = vpop.eup %3052  ;;  %3056 = vpow2.f32 %v1519_v15  ;;  %1555 = vadd.xlane.f32.xlu1 %v1554_v20  ;;  %v1697_v46 = vsel %vm1696_vm9, %v3049_v28, %v1693_v5 }
 0x93e   :  { %v1705_v21 = vmul.f32 %v3053_v60, %v1550_v18  ;;  %v4399_v27 = vpop.eup %3054  ;;  %v1702_v48 = vsel %vm1699_vm10, %v1701_v47, %v1697_v46  ;;  %vm1710_vm11 = vweird.f32 %v3053_v60 }
 0x93f   :  { %v1563_v51 = vsel %vm352_vm0, %v4399_v27, 0.0  ;;  %v1703_v35 = vmul.f32 %v4323_v50, %v1702_v48  ;;  %vm1711_vm13 = vmor %vm1709_vm12, %vm1710_vm11 }
 0x940   :  { %v1706_v4 = vsub.f32 1.0, %v1705_v21 }
 0x942   :  { %v1707_v61 = vmul.f32 %v3053_v60, %v1706_v4 }
 0x943   :  { %v4404_v37 = vpop.eup %3056  ;;  %2791 = vmatmul.msk.f32.gmra.mxu0 %vm352_vm0, %v1688_v38 }
 0x944   :  { %v1566_v26 = vsel %vm352_vm0, %v4404_v37, 0.0  ;;  %v1708_v54 = vadd.f32 %v3053_v60, %v1707_v61 }
 0x945   :  { %1567 = vadd.xlane.f32.xlu0 %v1566_v26  ;;  %1564 = vadd.xlane.f32.xlu1 %v1563_v51 }
 0x946   :  { %v1712_v59 = vsel %vm1711_vm13, %v3053_v60, %v1708_v54 }
 0x947   :  { %v1717_v8 = vsel %vm1714_vm14, %v1716_v62, %v1712_v59 }
 0x948   :  { %v1718_v53 = vmul.f32 %v4335_v55, %v1717_v8 }
 0x94b   :  { %2792 = vmatmul.msk.f32.gmra.mxu0 %vm352_vm0, %v1703_v35 }
 0x94d   :  { %v1559_v39 = vpop.xlane.xlu0 %1558 }
 0x94e   :  { %v1760_v16 = vand.u32 2147483648, %v1559_v39  ;;  %vm1754_vm9 = vweird.f32 %v1559_v39  ;;  %v1758_v60 = vand.u32 2147483647, %v1559_v39 }
 0x950   :  { %v1761_v4 = vor.u32 1.1754944e-38, %v1760_v16  ;;  %vm1759_vm11 = vcmp.eq.f32.partialorder %v1758_v60, 8.507059e+37 }
 0x953   :  { %2793 = vmatmul.msk.f32.gmra.mxu0 %vm352_vm0, %v1718_v53 }
 0x966   :  { %v1553_v56 = vpop.xlane.xlu2 %1552 }
 0x967   :  { %3058 = vrcp.f32 %v1553_v56  ;;  %v1730_v42 = vand.u32 2147483648, %v1553_v56  ;;  %v1728_v50 = vand.u32 2147483647, %v1553_v56  ;;  %vm1724_vm1 = vweird.f32 %v1553_v56 }
 0x968   :  { %3060 = vrcp.f32 %v1559_v39 }
 0x969   :  { %v1731_v52 = vor.u32 1.1754944e-38, %v1730_v42  ;;  %vm1729_vm3 = vcmp.eq.f32.partialorder %v1728_v50, 8.507059e+37 }
 0x96d   :  { %v3059_v22 = vpop.eup %3058 }
 0x96e   :  { %v1720_v44 = vmul.f32 %v3059_v22, %v1553_v56  ;;  %vm1725_vm15 = vweird.f32 %v3059_v22  ;;  %v3061_v3 = vpop.eup %3060 }
 0x96f   :  { %vm1726_vm2 = vmor %vm1724_vm1, %vm1725_vm15  ;;  %v1750_v24 = vmul.f32 %v3061_v3, %v1559_v39  ;;  %vm1755_vm6 = vweird.f32 %v3061_v3 }
 0x970   :  { %v1721_v0 = vsub.f32 1.0, %v1720_v44  ;;  %vm1756_vm10 = vmor %vm1754_vm9, %vm1755_vm6  ;;  %vm2041_vm9 = vcmask 1040384  }
 0x971   :  { %v1751_v28 = vsub.f32 1.0, %v1750_v24 }
 0x972   :  { %v1722_v30 = vmul.f32 %v3059_v22, %v1721_v0 }
 0x973   :  { %v1752_v45 = vmul.f32 %v3061_v3, %v1751_v28 }
 0x974   :  { %v1723_v2 = vadd.f32 %v3059_v22, %v1722_v30 }
 0x975   :  { %v1753_v25 = vadd.f32 %v3061_v3, %v1752_v45 }
 0x976   :  { %v1727_v41 = vsel %vm1726_vm2, %v3059_v22, %v1723_v2 }
 0x977   :  { %v1732_v36 = vsel %vm1729_vm3, %v1731_v52, %v1727_v41  ;;  %v1757_v23 = vsel %vm1756_vm10, %v3061_v3, %v1753_v25  ;;  %v3121_v25 = vld [vmem:[%s4603_s13 + $0x60] sm:$0xff]  ;;  %vm2037_vm10 = vcmask 203776  }
 0x978   :  { %v1733_v55 = vmul.f32 %v4350_v10, %v1732_v36  ;;  %v1762_v38 = vsel %vm1759_vm11, %v1761_v4, %v1757_v23  ;;  %v3127_v4 = vld [vmem:[%s4603_s13 + $0x30] sm:$0xff]  ;;  %vm2148_vm11 = vcmask 1043456  }
 0x97a   :  { %2794 = vmatmul.msk.f32.gmra.mxu0 %vm352_vm0, %v1733_v55 }
 0x988   :  { %v4430_v44 = vpop.f32.mrf.mxu0 }
 0x990   :  { %v4434_v36 = vpop.f32.mrf.mxu0 }
 0x998   :  { %v1892_v39 = vpop.f32.mrf.mxu0 }
 0x9a0   :  { %v1895_v3 = vpop.f32.mrf.mxu0 }
 0x9a6   :  { %v1562_v1 = vpop.xlane.xlu2 %1561 }
 0x9a7   :  { %v1775_v47 = vand.u32 2147483648, %v1562_v1  ;;  %vm1769_vm13 = vweird.f32 %v1562_v1  ;;  %v1773_v26 = vand.u32 2147483647, %v1562_v1 }
 0x9a9   :  { %v1776_v57 = vor.u32 1.1754944e-38, %v1775_v47  ;;  %vm1774_vm15 = vcmp.eq.f32.partialorder %v1773_v26, 8.507059e+37  ;;  %v3130_v26 = vld [vmem:[%s4603_s13 + $0x18] sm:$0xff] }
 0x9b0   :  { %v1556_v6 = vpop.xlane.xlu1 %1555 }
 0x9b1   :  { %3062 = vrcp.f32 %v1556_v6  ;;  %v1745_v34 = vand.u32 2147483648, %v1556_v6  ;;  %v1743_v58 = vand.u32 2147483647, %v1556_v6  ;;  %vm1739_vm5 = vweird.f32 %v1556_v6 }
 0x9b2   :  { %3064 = vrcp.f32 %v1562_v1 }
 0x9b3   :  { %v1746_v12 = vor.u32 1.1754944e-38, %v1745_v34  ;;  %vm1744_vm8 = vcmp.eq.f32.partialorder %v1743_v58, 8.507059e+37  ;;  %v3118_v34 = vld [vmem:[%s4603_s13 + $0x78] sm:$0xff] }
 0x9b7   :  { %v3063_v32 = vpop.eup %3062 }
 0x9b8   :  { %v1735_v9 = vmul.f32 %v3063_v32, %v1556_v6  ;;  %v4417_v63 = vpop.xlane.xlu1 %1564  ;;  %v3065_v18 = vpop.eup %3064  ;;  %vm1740_vm4 = vweird.f32 %v3063_v32 }
 0x9b9   :  { %3066 = vrcp.f32 %v4417_v63  ;;  %v1765_v10 = vmul.f32 %v3065_v18, %v1562_v1  ;;  %vm1741_vm7 = vmor %vm1739_vm5, %vm1740_vm4  ;;  %v1568_v14 = vpop.xlane.xlu0 %1567  ;;  %vm1770_vm12 = vweird.f32 %v3065_v18  ;;  %v1790_v62 = vand.u32 2147483648, %v4417_v63  ;;  %v1898_v1 = vpop.f32.mrf.mxu0 }
 0x9ba   :  { %v1736_v33 = vsub.f32 1.0, %v1735_v9  ;;  %3068 = vrcp.f32 %v1568_v14  ;;  %vm1771_vm14 = vmor %vm1769_vm13, %vm1770_vm12  ;;  %vm1784_vm2 = vweird.f32 %v4417_v63  ;;  %v1788_v8 = vand.u32 2147483647, %v4417_v63 }
 0x9bb   :  { %v1766_v49 = vsub.f32 1.0, %v1765_v10  ;;  %v1791_v22 = vor.u32 1.1754944e-38, %v1790_v62  ;;  %v1805_v30 = vand.u32 2147483648, %v1568_v14  ;;  %vm1799_vm6 = vweird.f32 %v1568_v14  ;;  %v3133_v62 = vld [vmem:[%s4603_s13] sm:$0xff] }
 0x9bc   :  { %v1737_v11 = vmul.f32 %v3063_v32, %v1736_v33  ;;  %vm1789_vm4 = vcmp.eq.f32.partialorder %v1788_v8, 8.507059e+37  ;;  %v1803_v50 = vand.u32 2147483647, %v1568_v14  ;;  %v1934_v8 = vmul.f32 %v3133_v62, %v4430_v44  ;;  %v2031_v44 = vld [vmem:[%s4611_s23 + $0x10] sm:$0xff] }
 0x9bd   :  { %v1767_v31 = vmul.f32 %v3065_v18, %v1766_v49  ;;  %v1806_v52 = vor.u32 1.1754944e-38, %v1805_v30  ;;  %v2030_v30 = vld [vmem:[%s4611_s23 + $0x8] sm:$0xff] }
 0x9be   :  { %v1738_v19 = vadd.f32 %v3063_v32, %v1737_v11  ;;  %v3119_v11 = vld [vmem:[%s4603_s13 + $0x70] sm:$0xff] }
 0x9bf   :  { %v3067_v43 = vpop.eup %3066  ;;  %v1768_v40 = vadd.f32 %v3065_v18, %v1767_v31 }
 0x9c0   :  { %v1742_v15 = vsel %vm1741_vm7, %v3063_v32, %v1738_v19  ;;  %v1780_v5 = vmul.f32 %v3067_v43, %v4417_v63  ;;  %v3069_v46 = vpop.eup %3068  ;;  %vm1785_vm1 = vweird.f32 %v3067_v43  ;;  %v3120_v19 = vld [vmem:[%s4603_s13 + $0x68] sm:$0xff] }
 0x9c1   :  { %v1747_v20 = vsel %vm1744_vm8, %v1746_v12, %v1742_v15  ;;  %v1795_v48 = vmul.f32 %v3069_v46, %v1568_v14  ;;  %v1772_v54 = vsel %vm1771_vm14, %v3065_v18, %v1768_v40  ;;  %vm1786_vm3 = vmor %vm1784_vm2, %vm1785_vm1  ;;  %vm1800_vm5 = vweird.f32 %v3069_v46  ;;  %v1901_v6 = vpop.f32.mrf.mxu0  ;;  %v3122_v14 = vld [vmem:[%s4603_s13 + $0x58] sm:$0xff]  ;;  %v3128_v40 = vld [vmem:[%s4603_s13 + $0x28] sm:$0xff] }
 0x9c2   :  { %v1748_v21 = vmul.f32 %v4393_v13, %v1747_v20  ;;  %v1781_v61 = vsub.f32 1.0, %v1780_v5  ;;  %v1763_v13 = vmul.f32 %v4345_v7, %v1762_v38  ;;  %v1777_v35 = vsel %vm1774_vm15, %v1776_v57, %v1772_v54  ;;  %vm1801_vm7 = vmor %vm1799_vm6, %vm1800_vm5  ;;  %v3124_v20 = vld [vmem:[%s4603_s13 + $0x48] sm:$0xff]  ;;  %v3126_v5 = vld [vmem:[%s4603_s13 + $0x38] sm:$0xff] }
 0x9c3   :  { %v1796_v59 = vsub.f32 1.0, %v1795_v48  ;;  %v1778_v7 = vmul.f32 %v4377_v17, %v1777_v35  ;;  %vm1804_vm8 = vcmp.eq.f32.partialorder %v1803_v50, 8.507059e+37  ;;  %v1981_v48 = vld [vmem:[%s4610_s18 + $0x10] sm:$0xff]  ;;  %v1980_v35 = vld [vmem:[%s4610_s18 + $0x8] sm:$0xff]  ;;  %v2029_v50 = vld [vmem:[%s4611_s23] sm:$0xff]  ;;  %vm2286_vm5 = vcmask 130048  }
 0x9c4   :  { %2795 = vmatmul.msk.f32.gmra.mxu0 %vm352_vm0, %v1748_v21  ;;  %v1782_v51 = vmul.f32 %v3067_v43, %v1781_v61  ;;  %v3125_v21 = vld [vmem:[%s4603_s13 + $0x40] sm:$0xff]  ;;  %v1939_v61 = vmul.f32 %v3128_v40, %v1901_v6  ;;  %v3131_v54 = vld [vmem:[%s4603_s13 + $0x10] sm:$0xff]  ;;  %v2068_v6 = vld [vmem:[%s4612_s16 + $0x18] sm:$0xff] }
 0x9c5   :  { %v1797_v53 = vmul.f32 %v3069_v46, %v1796_v59  ;;  %v1936_v57 = vmul.f32 %v3131_v54, %v1892_v39  ;;  %v4499_v40 = vld [vmem:[#allocation7] sm:$0xff] }
 0x9c6   :  { %v1783_v29 = vadd.f32 %v3067_v43, %v1782_v51  ;;  %v1982_v51 = vld [vmem:[%s4610_s18 + $0x18] sm:$0xff] }
 0x9c7   :  { %v1798_v42 = vadd.f32 %v3069_v46, %v1797_v53  ;;  %2011 = vmatpush.msrb.mxu2 %v1982_v51  ;;  %v3135_v53 = vld [vmem:[%s4606_s6 + $0x8] sm:$0xff] }
 0x9c8   :  { %v1787_v56 = vsel %vm1786_vm3, %v3067_v43, %v1783_v29  ;;  %v3123_v43 = vld [vmem:[%s4603_s13 + $0x50] sm:$0xff]  ;;  %v3132_v29 = vld [vmem:[%s4603_s13 + $0x8] sm:$0xff] }
 0x9c9   :  { %v1792_v0 = vsel %vm1789_vm4, %v1791_v22, %v1787_v56  ;;  %v1802_v17 = vsel %vm1801_vm7, %v3069_v46, %v1798_v42  ;;  %v3129_v46 = vld [vmem:[%s4603_s13 + $0x20] sm:$0xff]  ;;  %v1935_v59 = vmul.f32 %v3132_v29, %v4434_v36  ;;  %2012 = vmatpush.msrb.mxu2 %v1981_v48  ;;  %v3136_v56 = vld [vmem:[%s4606_s6 + $0x10] sm:$0xff]  ;;  %v3137_v22 = vld [vmem:[%s4606_s6 + $0x18] sm:$0xff] }
 0x9ca   :  { %v1793_v2 = vmul.f32 %v4399_v27, %v1792_v0  ;;  %v1807_v41 = vsel %vm1804_vm8, %v1806_v52, %v1802_v17  ;;  %v1904_v27 = vpop.f32.mrf.mxu0  ;;  %v1938_v47 = vmul.f32 %v3129_v46, %v1898_v1  ;;  %v1979_v0 = vld [vmem:[%s4610_s18] sm:$0xff]  ;;  %v2032_v42 = vld [vmem:[%s4611_s23 + $0x18] sm:$0x1]  ;;  %v2096_v1 = vld [vmem:[#allocation10] sm:$0xff] }
 0x9cb   :  { %v1808_v55 = vmul.f32 %v4404_v37, %v1807_v41  ;;  %v1940_v38 = vmul.f32 %v3127_v4, %v1904_v27  ;;  %2013 = vmatpush.msrb.mxu2 %v1980_v35  ;;  %v2099_v17 = vld [vmem:[#allocation10 + $0x18] sm:$0xff]  ;;  %v2098_v41 = vld [vmem:[#allocation10 + $0x10] sm:$0xff]  ;;  %v2067_v27 = vld [vmem:[%s4612_s16 + $0x10] sm:$0xff] }
 0x9cc   :  { %2796 = vmatmul.msk.f32.gmra.mxu0 %vm352_vm0, %v1763_v13  ;;  %v1937_v13 = vmul.f32 %v3130_v26, %v1895_v3  ;;  %v2097_v3 = vld [vmem:[#allocation10 + $0x8] sm:$0xff]  ;;  %v4505_v26 = vld [vmem:[#allocation7 + $0x8] sm:$0xff]  ;;  %v4510_v48 = vld [vmem:[#allocation5] sm:$0xff] }
 0x9cd   :  { %2014 = vmatpush.msrb.mxu2 %v1979_v0  ;;  %v4514_v29 = vld [vmem:[#allocation5 + $0x8] sm:$0xff] }
 0x9cf   :  { %2088 = vmatpush.msra.mxu2 %v2068_v6 }
 0x9d1   :  { %2089 = vmatpush.msra.mxu2 %v2067_v27 }
 0x9d2   :  { %v1907_v24 = vpop.f32.mrf.mxu0 }
 0x9d3   :  { %v1941_v23 = vmul.f32 %v3126_v5, %v1907_v24  ;;  %v2066_v24 = vld [vmem:[%s4612_s16 + $0x8] sm:$0xff] }
 0x9d4   :  { %2797 = vmatmul.msk.f32.gmra.mxu0 %vm352_vm0, %v1778_v7  ;;  %v3134_v7 = vld [vmem:[%s4606_s6] sm:$0xff]  ;;  %2090 = vmatpush.msra.mxu2 %v2066_v24 }
 0x9da   :  { %v1910_v32 = vpop.f32.mrf.mxu0 }
 0x9db   :  { %v1942_v31 = vmul.f32 %v3125_v21, %v1910_v32  ;;  %v2934_v32 = vld [vmem:[%s4613_s26] ss:$0 sm:$0xff] }
 0x9dc   :  { %2798 = vmatmul.msk.f32.gmra.mxu0 %vm352_vm0, %v1793_v2  ;;  %v2028_v2 = vld [vmem:[#allocation2] sm:$0xf] }
 0x9e2   :  { %v1913_v28 = vpop.f32.mrf.mxu0 }
 0x9e3   :  { %v1943_v60 = vmul.f32 %v3124_v20, %v1913_v28  ;;  %v2933_v28 = vld [vmem:[%s4614_s0] ss:$0 sm:$0xff] }
 0x9e4   :  { %2799 = vmatmul.msk.f32.gmra.mxu0 %vm352_vm0, %v1808_v55  ;;  %v2936_v20 = vld [vmem:[%s4616_s25] ss:$0 sm:$0xff] }
 0x9f7   :  { %v1916_v9 = vpop.f32.mrf.mxu0 }
 0x9f8   :  { %v1944_v16 = vmul.f32 %v3123_v43, %v1916_v9  ;;  %v2065_v9 = vld [vmem:[%s4612_s16] sm:$0xff] }
 0x9f9   :  { %2091 = vmatpush.msra.mxu2 %v2065_v9 }
 0xa41   :  { %v1919_v63 = vpop.f32.mrf.mxu0 }
 0xa42   :  { %v1945_v15 = vmul.f32 %v3122_v14, %v1919_v63 }
 0xa49   :  { %v1922_v18 = vpop.f32.mrf.mxu0 }
 0xa4a   :  { %v1946_v49 = vmul.f32 %v3121_v25, %v1922_v18  ;;  %v2935_v25 = vld [vmem:[%s4615_s24] ss:$0 sm:$0xff] }
 0xa51   :  { %v1925_v33 = vpop.f32.mrf.mxu0 }
 0xa52   :  { %v1947_v12 = vmul.f32 %v3120_v19, %v1925_v33 }
 0xa59   :  { %v1928_v37 = vpop.f32.mrf.mxu0 }
 0xa5a   :  { %v1948_v58 = vmul.f32 %v3119_v11, %v1928_v37 }
 0xa61   :  { %v1931_v45 = vpop.f32.mrf.mxu0 }
 0xa62   :  { %v1949_v10 = vmul.f32 %v3118_v34, %v1931_v45 }
 0xa64   :  { %1950 = vmatpush.msrb.mxu3 %v1949_v10 }
 0xa66   :  { %1951 = vmatpush.msrb.mxu3 %v1948_v58 }
 0xa68   :  { %1952 = vmatpush.msrb.mxu3 %v1947_v12 }
 0xa6a   :  { %1953 = vmatpush.msrb.mxu3 %v1946_v49 }
 0xa6c   :  { %1954 = vmatpush.msrb.mxu3 %v1945_v15 }
 0xa6e   :  { %1955 = vmatpush.msrb.mxu3 %v1944_v16 }
 0xa70   :  { %1956 = vmatpush.msrb.mxu3 %v1943_v60 }
 0xa72   :  { %1957 = vmatpush.msrb.mxu3 %v1942_v31 }
 0xa74   :  { %1958 = vmatpush.msrb.mxu3 %v1941_v23 }
 0xa76   :  { %1959 = vmatpush.msrb.mxu3 %v1940_v38 }
 0xa78   :  { %1960 = vmatpush.msrb.mxu3 %v1939_v61 }
 0xa7a   :  { %1961 = vmatpush.msrb.mxu3 %v1938_v47 }
 0xa7c   :  { %1962 = vmatpush.msrb.mxu3 %v1937_v13 }
 0xa7e   :  { %1963 = vmatpush.msrb.mxu3 %v1936_v57 }
 0xa80   :  { %1964 = vmatpush.msrb.mxu3 %v1935_v59 }
 0xa82   :  { %1965 = vmatpush.msrb.mxu3 %v1934_v8 }
 0xa83   :  { %1966 = vmatmul.f32.vlgmr.msrb.gmra.mxu3 %v3134_v7 }
 0xa84   :  { %2804 = vmatpush.msk.msra.mxu3 %vm2041_vm9, %v2032_v42 }
 0xa86   :  { %2058 = vmatpush.msra.mxu3 %v2031_v44 }
 0xa88   :  { %2059 = vmatpush.msra.mxu3 %v2030_v30 }
 0xa8a   :  { %2060 = vmatpush.msra.mxu3 %v2029_v50 }
 0xa8b   :  { %1969 = vmatmul.f32.gmra.mxu3 %v3135_v53 }
 0xa8c   :  { %2128 = vmatpush.msrb.mxu3 %v2099_v17 }
 0xa8e   :  { %2129 = vmatpush.msrb.mxu3 %v2098_v41 }
 0xa90   :  { %2130 = vmatpush.msrb.mxu3 %v2097_v3 }
 0xa92   :  { %2131 = vmatpush.msrb.mxu3 %v2096_v1 }
 0xa93   :  { %1972 = vmatmul.f32.gmra.mxu3 %v3136_v56 }
 0xa9b   :  { %1975 = vmatmul.f32.gmra.mxu3 %v3137_v22 }
 0xaa3   :  { %2805 = vmatmul.msk.f32.vlgmr.msra.gmra.mxu3 %vm2037_vm10, %v2028_v2 }
 0xb06   :  { %v1967_v52 = vpop.f32.mrf.mxu3 }
 0xb07   :  { %2800 = vmatmul.msk.f32.vlgmr.msrb.gmra.mxu2 %vm352_vm0, %v1967_v52 }
 0xb0e   :  { %v1970_v36 = vpop.f32.mrf.mxu3 }
 0xb0f   :  { %2801 = vmatmul.msk.f32.gmra.mxu2 %vm352_vm0, %v1970_v36 }
 0xb16   :  { %v1973_v55 = vpop.f32.mrf.mxu3 }
 0xb17   :  { %2802 = vmatmul.msk.f32.gmra.mxu2 %vm352_vm0, %v1973_v55 }
 0xb1e   :  { %v1976_v39 = vpop.f32.mrf.mxu3 }
 0xb1f   :  { %2803 = vmatmul.msk.f32.gmra.mxu2 %vm352_vm0, %v1976_v39 }
 0xb26   :  { %v2062_v63 = vpop.f32.mrf.mxu3 }
 0xb27   :  { %v2063_v33 = vadd.f32 %v2934_v32, %v2062_v63 }
 0xb29   :  { %2806 = vmatmul.msk.f32.vlgmr.msra.gmra.mxu2 %vm352_vm0, %v2063_v33 }
 0xb8a   :  { %v2016_v18 = vpop.f32.mrf.mxu2 }
 0xb8b   :  { %v4478_v37 = vadd.f32 %v2933_v28, %v2016_v18 }
 0xb8d   :  { %2807 = vmatmul.msk.f32.vlgmr.msrb.gmra.mxu3 %vm352_vm0, %v4478_v37 }
 0xb92   :  { %v2019_v45 = vpop.f32.mrf.mxu2 }
 0xb93   :  { %v4483_v34 = vadd.f32 %v2933_v28, %v2019_v45 }
 0xb95   :  { %2808 = vmatmul.msk.f32.gmra.mxu3 %vm352_vm0, %v4483_v34 }
 0xb9a   :  { %v2022_v10 = vpop.f32.mrf.mxu2 }
 0xb9b   :  { %v4487_v11 = vadd.f32 %v2933_v28, %v2022_v10 }
 0xb9d   :  { %2809 = vmatmul.msk.f32.gmra.mxu3 %vm352_vm0, %v4487_v11 }
 0xba2   :  { %v2025_v58 = vpop.f32.mrf.mxu2 }
 0xba3   :  { %v4491_v19 = vadd.f32 %v2933_v28, %v2025_v58 }
 0xba5   :  { %2810 = vmatmul.msk.f32.gmra.mxu3 %vm352_vm0, %v4491_v19 }
 0xbac   :  { %v2093_v60 = vpop.f32.mrf.mxu2 }
 0xbad   :  { %v2094_v23 = vadd.f32 %v2936_v20, %v2093_v60 }
 0xbaf   :  { %v2146_v38 = vrot.slane %v2094_v23, 4 }
 0xbb1   :  { %v2149_v61 = vsel %vm2148_vm11, %v2094_v23, %v2146_v38  ;;  %v4526_v38 = vld [vmem:[#allocation8] sm:$0xf] }
 0xbb2   :  { %v2150_v46 = vmul.f32 %v2149_v61, %v4499_v40  ;;  %v2151_v13 = vmul.f32 %v2149_v61, %v4505_v26  ;;  %v2375_v61 = vld [vmem:[#allocation14 + $0x18] sm:$0xff] }
 0xbb4   :  { %v2152_v47 = vmul.f32 0.35355338, %v2150_v46  ;;  %v2153_v51 = vmul.f32 0.35355338, %v2151_v13  ;;  %v2374_v46 = vld [vmem:[#allocation14 + $0x10] sm:$0xff] }
 0xbb5   :  { %v2312_v13 = vld [vmem:[#allocation11 + $0x10] sm:$0xff] }
 0xc10   :  { %v2133_v12 = vpop.f32.mrf.mxu3 }
 0xc11   :  { %v2134_v14 = vadd.f32 %v2935_v25, %v2133_v12 }
 0xc18   :  { %v2136_v49 = vpop.f32.mrf.mxu3 }
 0xc19   :  { %v2137_v15 = vadd.f32 %v2935_v25, %v2136_v49 }
 0xc1b   :  { %v2914_v43 = vpack.i.bf16 %v2134_v14, %v2137_v15 }
 0xc20   :  { %v2139_v16 = vpop.f32.mrf.mxu3 }
 0xc21   :  { %v2140_v31 = vadd.f32 %v2935_v25, %v2139_v16 }
 0xc28   :  { %v2142_v21 = vpop.f32.mrf.mxu3 }
 0xc29   :  { %v2143_v5 = vadd.f32 %v2935_v25, %v2142_v21 }
 0xc2b   :  { %v2909_v4 = vpack.i.bf16 %v2140_v31, %v2143_v5  ;;  %2811 = vmatpush.xpose.msk.msrb.mxu2 %vm352_vm0, %v2143_v5 }
 0xc2f   :  { %2812 = vmatpush.xpose.msk.msrb.mxu2 %vm352_vm0, %v2140_v31 }
 0xc33   :  { %2813 = vmatpush.xpose.msk.msrb.mxu2 %vm352_vm0, %v2137_v15 }
 0xc37   :  { %2814 = vmatpush.xpose.msk.msrb.mxu2 %vm352_vm0, %v2134_v14 }
 0xc3a   :  { %2815 = vmatmul.msk.f32.vlgmr.msrb.gmra.mxu2 %vm352_vm0, %v2152_v47  ;;  %v2313_v47 = vld [vmem:[#allocation11 + $0x18] sm:$0xff] }
 0xc3b   :  { %2333 = vmatpush.msra.mxu3 %v2313_v47 }
 0xc3d   :  { %2334 = vmatpush.msra.mxu3 %v2312_v13 }
 0xc42   :  { %2816 = vmatmul.msk.f32.gmra.mxu2 %vm352_vm0, %v2153_v51  ;;  %v2373_v51 = vld [vmem:[#allocation14 + $0x8] sm:$0xff] }
 0xcbd   :  { %v2189_v54 = vpop.f32.mrf.mxu2 }
 0xcbe   :  { %v2190_v57 = vadd.f32 %v2189_v54, %v4510_v48  ;;  %v2311_v54 = vld [vmem:[#allocation11 + $0x8] sm:$0xff] }
 0xcbf   :  { %2335 = vmatpush.msra.mxu3 %v2311_v54 }
 0xcc0   :  { %v2195_v35 = vsel %vm352_vm0, %v2190_v57, -inf }
 0xcc1   :  { %2196 = vmax.xlane.f32.xlu2 %v2195_v35  ;;  %v2310_v35 = vld [vmem:[#allocation11] sm:$0xff] }
 0xcc2   :  { %2336 = vmatpush.msra.mxu3 %v2310_v35 }
 0xcc5   :  { %v2192_v59 = vpop.f32.mrf.mxu2 }
 0xcc6   :  { %v2193_v62 = vadd.f32 %v2192_v59, %v4514_v29 }
 0xcc8   :  { %v2198_v8 = vsel %vm352_vm0, %v2193_v62, -inf }
 0xcc9   :  { %2199 = vmax.xlane.f32.xlu1 %v2198_v8  ;;  %v2937_v8 = vld [vmem:[%s4617_s1] ss:$0 sm:$0xff] }
 0xce2   :  { %2910 = vrot.lane.b32.xlu1 %v2909_v4, %s3489_s5 }
 0xd34   :  { %v2197_v7 = vpop.xlane.xlu2 %2196 }
 0xd35   :  { %v2201_v53 = vsub.f32 %v2190_v57, %v2197_v7  ;;  %v2372_v57 = vld [vmem:[#allocation14] sm:$0xff]  ;;  %v2344_v7 = vld [vmem:[#allocation13 + $0x18] sm:$0xff] }
 0xd37   :  { %v2203_v56 = vmul.f32 1.442695, %v2201_v53  ;;  %v2343_v53 = vld [vmem:[#allocation13 + $0x10] sm:$0xff] }
 0xd39   :  { %3070 = vpow2.f32 %v2203_v56 }
 0xd3c   :  { %v2200_v22 = vpop.xlane.xlu1 %2199 }
 0xd3d   :  { %v2202_v0 = vsub.f32 %v2193_v62, %v2200_v22 }
 0xd3f   :  { %v3071_v42 = vpop.eup %3070  ;;  %v2205_v44 = vmul.f32 1.442695, %v2202_v0 }
 0xd40   :  { %v2207_v30 = vsel %vm352_vm0, %v3071_v42, 0.0 }
 0xd41   :  { %3072 = vpow2.f32 %v2205_v44  ;;  %2208 = vadd.xlane.f32.xlu0 %v2207_v30  ;;  %v2342_v30 = vld [vmem:[#allocation13 + $0x8] sm:$0xff] }
 0xd47   :  { %v3073_v50 = vpop.eup %3072 }
 0xd48   :  { %v2210_v2 = vsel %vm352_vm0, %v3073_v50, 0.0 }
 0xd49   :  { %2211 = vadd.xlane.f32.xlu2 %v2210_v2  ;;  %v2938_v2 = vld [vmem:[%s4618_s22] ss:$0 sm:$0xff] }
 0xd54   :  { %v2911_v17 = vpop.permute.xlu1 %2910 }
 0xd55   :  { %v2912_v52 = vunpack.i.l.bf16 %v2911_v17  ;;  %2915 = vrot.lane.b32.xlu0 %v2914_v43, %s3489_s5  ;;  %v2913_v41 = vunpack.i.h.bf16 %v2911_v17 }
 0xd57   :  { %2273 = vmatpush.msrb.mxu1 %v2912_v52 }
 0xd59   :  { %2274 = vmatpush.msrb.mxu1 %v2913_v41 }
 0xdb4   :  { %v2209_v36 = vpop.xlane.xlu0 %2208 }
 0xdb5   :  { %3074 = vrcp.f32 %v2209_v36  ;;  %v2224_v24 = vand.u32 2147483648, %v2209_v36  ;;  %vm2218_vm13 = vweird.f32 %v2209_v36  ;;  %v2222_v28 = vand.u32 2147483647, %v2209_v36 }
 0xdb7   :  { %v2225_v18 = vor.u32 1.1754944e-38, %v2224_v24  ;;  %vm2223_vm15 = vcmp.eq.f32.partialorder %v2222_v28, 8.507059e+37 }
 0xdbb   :  { %v3075_v55 = vpop.eup %3074 }
 0xdbc   :  { %v2214_v39 = vmul.f32 %v3075_v55, %v2209_v36  ;;  %v2212_v3 = vpop.xlane.xlu2 %2211  ;;  %vm2219_vm12 = vweird.f32 %v3075_v55 }
 0xdbd   :  { %3076 = vrcp.f32 %v2212_v3  ;;  %vm2220_vm14 = vmor %vm2218_vm13, %vm2219_vm12  ;;  %v2239_v49 = vand.u32 2147483648, %v2212_v3  ;;  %vm2233_vm2 = vweird.f32 %v2212_v3  ;;  %v2237_v43 = vand.u32 2147483647, %v2212_v3 }
 0xdbe   :  { %v2215_v1 = vsub.f32 1.0, %v2214_v39  ;;  %v2939_v39 = vld [vmem:[%s4619_s2] ss:$0 sm:$0xff] }
 0xdbf   :  { %v2240_v20 = vor.u32 1.1754944e-38, %v2239_v49  ;;  %vm2238_vm4 = vcmp.eq.f32.partialorder %v2237_v43, 8.507059e+37 }
 0xdc0   :  { %v2216_v6 = vmul.f32 %v3075_v55, %v2215_v1 }
 0xdc2   :  { %v2217_v27 = vadd.f32 %v3075_v55, %v2216_v6 }
 0xdc3   :  { %v3077_v32 = vpop.eup %3076 }
 0xdc4   :  { %v2229_v9 = vmul.f32 %v3077_v32, %v2212_v3  ;;  %v2221_v63 = vsel %vm2220_vm14, %v3075_v55, %v2217_v27  ;;  %vm2234_vm1 = vweird.f32 %v3077_v32  ;;  %vm2631_vm14 = vcmask 60416  }
 0xdc5   :  { %v2226_v10 = vsel %vm2223_vm15, %v2225_v18, %v2221_v63  ;;  %vm2235_vm3 = vmor %vm2233_vm2, %vm2234_vm1 }
 0xdc6   :  { %v2230_v33 = vsub.f32 1.0, %v2229_v9  ;;  %v2227_v15 = vmul.f32 %v3071_v42, %v2226_v10 }
 0xdc7   :  { %v2916_v45 = vpop.permute.xlu0 %2915 }
 0xdc8   :  { %v2231_v58 = vmul.f32 %v3077_v32, %v2230_v33  ;;  %v2917_v12 = vunpack.i.l.bf16 %v2916_v45  ;;  %v2918_v14 = vunpack.i.h.bf16 %v2916_v45 }
 0xdca   :  { %v2232_v25 = vadd.f32 %v3077_v32, %v2231_v58  ;;  %2275 = vmatpush.msrb.mxu1 %v2917_v12 }
 0xdcc   :  { %2276 = vmatpush.msrb.mxu1 %v2918_v14  ;;  %v2236_v16 = vsel %vm2235_vm3, %v3077_v32, %v2232_v25 }
 0xdcd   :  { %2817 = vmatmul.msk.f32.vlgmr.msrb.gmra.mxu1 %vm352_vm0, %v2227_v15  ;;  %v2241_v60 = vsel %vm2238_vm4, %v2240_v20, %v2236_v16 }
 0xdce   :  { %v2242_v21 = vmul.f32 %v3073_v50, %v2241_v60  ;;  %2364 = vmatpush.msra.mxu1 %v2344_v7  ;;  %v2341_v50 = vld [vmem:[#allocation13] sm:$0xff] }
 0xdd0   :  { %2365 = vmatpush.msra.mxu1 %v2343_v53 }
 0xdd2   :  { %2366 = vmatpush.msra.mxu1 %v2342_v30 }
 0xdd4   :  { %2367 = vmatpush.msra.mxu1 %v2341_v50 }
 0xdd5   :  { %2818 = vmatmul.msk.f32.gmra.mxu1 %vm352_vm0, %v2242_v21 }
 0xe4a   :  { %v2278_v31 = vpop.f32.mrf.mxu1 }
 0xe4b   :  { %v2284_v4 = vmul.f32 %v2278_v31, %v4499_v40 }
 0xe52   :  { %v2281_v5 = vpop.f32.mrf.mxu1 }
 0xe53   :  { %v2285_v23 = vmul.f32 %v2281_v5, %v4505_v26 }
 0xe55   :  { %2304 = vmatpush.msra.mxu2 %v2285_v23 }
 0xe57   :  { %2305 = vmatpush.msra.mxu2 %v2284_v4 }
 0xe58   :  { %2819 = vmatmul.msk.f32.vlgmr.msra.gmra.mxu2 %vm2286_vm5, %v4526_v38 }
 0xe59   :  { %2392 = vmatpush.msrb.mxu2 %v2375_v61 }
 0xe5b   :  { %2393 = vmatpush.msrb.mxu2 %v2374_v46 }
 0xe5d   :  { %2394 = vmatpush.msrb.mxu2 %v2373_v51 }
 0xe5f   :  { %2395 = vmatpush.msrb.mxu2 %v2372_v57 }
 0xe60   :  { %2822 = vmatmul.msk.f32.vlgmr.msrb.gmra.mxu2 %vm352_vm0, %v4478_v37 }
 0xe68   :  { %2823 = vmatmul.msk.f32.gmra.mxu2 %vm352_vm0, %v4483_v34 }
 0xe70   :  { %2824 = vmatmul.msk.f32.gmra.mxu2 %vm352_vm0, %v4487_v11 }
 0xe78   :  { %2825 = vmatmul.msk.f32.gmra.mxu2 %vm352_vm0, %v4491_v19 }
 0xedb   :  { %v2307_v59 = vpop.f32.mrf.mxu2 }
 0xedc   :  { %2820 = vmatmul.msk.f32.vlgmr.msra.gmra.mxu3 %vm352_vm0, %v2307_v59 }
 0xee3   :  { %v2397_v62 = vpop.f32.mrf.mxu2 }
 0xee4   :  { %v2398_v37 = vadd.f32 %v2937_v8, %v2397_v62 }
 0xeeb   :  { %v2400_v56 = vpop.f32.mrf.mxu2 }
 0xeec   :  { %v2401_v22 = vadd.f32 %v2937_v8, %v2400_v56 }
 0xeee   :  { %v2924_v34 = vpack.i.bf16 %v2398_v37, %v2401_v22 }
 0xef3   :  { %v2403_v11 = vpop.f32.mrf.mxu2 }
 0xef4   :  { %v2404_v42 = vadd.f32 %v2937_v8, %v2403_v11 }
 0xefb   :  { %v2406_v0 = vpop.f32.mrf.mxu2 }
 0xefc   :  { %v2407_v19 = vadd.f32 %v2937_v8, %v2406_v0 }
 0xefe   :  { %v2919_v44 = vpack.i.bf16 %v2404_v42, %v2407_v19  ;;  %2826 = vmatpush.xpose.msk.msrb.mxu3 %vm352_vm0, %v2407_v19 }
 0xf00   :  { %2920 = vrot.lane.b32.xlu1 %v2919_v44, %s3489_s5 }
 0xf02   :  { %2827 = vmatpush.xpose.msk.msrb.mxu3 %vm352_vm0, %v2404_v42 }
 0xf06   :  { %2828 = vmatpush.xpose.msk.msrb.mxu3 %vm352_vm0, %v2401_v22 }
 0xf0a   :  { %2829 = vmatpush.xpose.msk.msrb.mxu3 %vm352_vm0, %v2398_v37 }
 0xf5f   :  { %v2338_v17 = vpop.f32.mrf.mxu3 }
 0xf60   :  { %v2339_v52 = vadd.f32 %v2938_v2, %v2338_v17  ;;  %v2572_v17 = vld [vmem:[#allocation16 + $0x18] sm:$0xff] }
 0xf62   :  { %2821 = vmatmul.msk.f32.vlgmr.msra.gmra.mxu1 %vm352_vm0, %v2339_v52  ;;  %v2571_v52 = vld [vmem:[#allocation16 + $0x10] sm:$0xff] }
 0xf72   :  { %v2921_v41 = vpop.permute.xlu1 %2920 }
 0xf73   :  { %v2922_v36 = vunpack.i.l.bf16 %v2921_v41  ;;  %v2923_v55 = vunpack.i.h.bf16 %v2921_v41  ;;  %v2570_v41 = vld [vmem:[#allocation16 + $0x8] sm:$0xff] }
 0xf75   :  { %2536 = vmatpush.msrb.mxu1 %v2922_v36  ;;  %v2569_v36 = vld [vmem:[#allocation16] sm:$0xff] }
 0xf77   :  { %2537 = vmatpush.msrb.mxu1 %v2923_v55  ;;  %v2603_v55 = vld [vmem:[#allocation17 + $0x18] sm:$0xff] }
 0xfdf   :  { %v2369_v3 = vpop.f32.mrf.mxu1 }
 0xfe0   :  { %v2370_v1 = vadd.f32 %v2939_v39, %v2369_v3  ;;  %v2602_v39 = vld [vmem:[#allocation17 + $0x10] sm:$0xff] }
 0xfe2   :  { %v2410_v6 = vrot.slane %v2370_v1, 4 }
 0xfe4   :  { %v2412_v27 = vsel %vm2148_vm11, %v2370_v1, %v2410_v6 }
 0xfe5   :  { %v2413_v24 = vmul.f32 %v2412_v27, %v4499_v40  ;;  %v2414_v28 = vmul.f32 %v2412_v27, %v4505_v26  ;;  %v2941_v27 = vld [vmem:[%s3667_s4] ss:$0 sm:$0xff] }
 0xfe7   :  { %v2415_v32 = vmul.f32 0.35355338, %v2413_v24  ;;  %v2416_v9 = vmul.f32 0.35355338, %v2414_v28 }
 0xfe9   :  { %2830 = vmatmul.msk.f32.vlgmr.msrb.gmra.mxu3 %vm352_vm0, %v2415_v32 }
 0xff1   :  { %2831 = vmatmul.msk.f32.gmra.mxu3 %vm352_vm0, %v2416_v9 }
0x106c   :  { %v2452_v63 = vpop.f32.mrf.mxu3 }
0x106d   :  { %v2453_v18 = vadd.f32 %v2452_v63, %v4510_v48 }
0x106f   :  { %v2458_v33 = vsel %vm352_vm0, %v2453_v18, -inf }
0x1070   :  { %2459 = vmax.xlane.f32.xlu2 %v2458_v33 }
0x1074   :  { %v2455_v45 = vpop.f32.mrf.mxu3 }
0x1075   :  { %v2456_v10 = vadd.f32 %v2455_v45, %v4514_v29 }
0x1077   :  { %v2461_v58 = vsel %vm352_vm0, %v2456_v10, -inf }
0x1078   :  { %2462 = vmax.xlane.f32.xlu2 %v2461_v58 }
0x10e3   :  { %v2460_v12 = vpop.xlane.xlu2 %2459 }
0x10e4   :  { %v2464_v25 = vsub.f32 %v2453_v18, %v2460_v12 }
0x10e6   :  { %v2466_v49 = vmul.f32 1.442695, %v2464_v25 }
0x10e8   :  { %3078 = vpow2.f32 %v2466_v49 }
0x10eb   :  { %v2463_v14 = vpop.xlane.xlu2 %2462 }
0x10ec   :  { %v2465_v15 = vsub.f32 %v2456_v10, %v2463_v14 }
0x10ee   :  { %v3079_v43 = vpop.eup %3078  ;;  %v2468_v16 = vmul.f32 1.442695, %v2465_v15 }
0x10ef   :  { %v2470_v20 = vsel %vm352_vm0, %v3079_v43, 0.0 }
0x10f0   :  { %3080 = vpow2.f32 %v2468_v16  ;;  %2471 = vadd.xlane.f32.xlu0 %v2470_v20 }
0x10f6   :  { %v3081_v48 = vpop.eup %3080 }
0x10f7   :  { %v2473_v60 = vsel %vm352_vm0, %v3081_v48, 0.0 }
0x10f8   :  { %2474 = vadd.xlane.f32.xlu2 %v2473_v60 }
0x1110   :  { %2925 = vrot.lane.b32.xlu2 %v2924_v34, %s3489_s5 }
0x1163   :  { %v2472_v29 = vpop.xlane.xlu0 %2471 }
0x1164   :  { %3082 = vrcp.f32 %v2472_v29  ;;  %v2487_v4 = vand.u32 2147483648, %v2472_v29  ;;  %v2485_v46 = vand.u32 2147483647, %v2472_v29  ;;  %vm2481_vm7 = vweird.f32 %v2472_v29 }
0x1166   :  { %v2488_v51 = vor.u32 1.1754944e-38, %v2487_v4  ;;  %vm2486_vm9 = vcmp.eq.f32.partialorder %v2485_v46, 8.507059e+37 }
0x116a   :  { %v3083_v21 = vpop.eup %3082 }
0x116b   :  { %v2477_v31 = vmul.f32 %v3083_v21, %v2472_v29  ;;  %v2475_v5 = vpop.xlane.xlu2 %2474  ;;  %vm2482_vm6 = vweird.f32 %v3083_v21 }
0x116c   :  { %3084 = vrcp.f32 %v2475_v5  ;;  %vm2483_vm8 = vmor %vm2481_vm7, %vm2482_vm6  ;;  %v2502_v7 = vand.u32 2147483648, %v2475_v5  ;;  %v2500_v22 = vand.u32 2147483647, %v2475_v5  ;;  %vm2496_vm11 = vweird.f32 %v2475_v5 }
0x116d   :  { %v2478_v23 = vsub.f32 1.0, %v2477_v31 }
0x116e   :  { %v2503_v11 = vor.u32 1.1754944e-38, %v2502_v7  ;;  %vm2501_vm13 = vcmp.eq.f32.partialorder %v2500_v22, 8.507059e+37 }
0x116f   :  { %v2479_v61 = vmul.f32 %v3083_v21, %v2478_v23 }
0x1171   :  { %v2480_v47 = vadd.f32 %v3083_v21, %v2479_v61 }
0x1172   :  { %v3085_v13 = vpop.eup %3084 }
0x1173   :  { %v2484_v54 = vsel %vm2483_vm8, %v3083_v21, %v2480_v47  ;;  %v2492_v57 = vmul.f32 %v3085_v13, %v2475_v5  ;;  %v2926_v35 = vpop.permute.xlu2 %2925  ;;  %vm2497_vm10 = vweird.f32 %v3085_v13 }
0x1174   :  { %v2489_v59 = vsel %vm2486_vm9, %v2488_v51, %v2484_v54  ;;  %v2927_v62 = vunpack.i.l.bf16 %v2926_v35  ;;  %v2928_v53 = vunpack.i.h.bf16 %v2926_v35  ;;  %vm2498_vm12 = vmor %vm2496_vm11, %vm2497_vm10 }
0x1175   :  { %v2493_v8 = vsub.f32 1.0, %v2492_v57  ;;  %v2490_v56 = vmul.f32 %v3079_v43, %v2489_v59 }
0x1176   :  { %2538 = vmatpush.msrb.mxu1 %v2927_v62 }
0x1177   :  { %v2494_v37 = vmul.f32 %v3085_v13, %v2493_v8 }
0x1178   :  { %2539 = vmatpush.msrb.mxu1 %v2928_v53 }
0x1179   :  { %v2495_v34 = vadd.f32 %v3085_v13, %v2494_v37  ;;  %2832 = vmatmul.msk.f32.vlgmr.msrb.gmra.mxu1 %vm352_vm0, %v2490_v56 }
0x117a   :  { %2623 = vmatpush.msra.mxu1 %v2603_v55 }
0x117b   :  { %v2499_v0 = vsel %vm2498_vm12, %v3085_v13, %v2495_v34 }
0x117c   :  { %v2504_v42 = vsel %vm2501_vm13, %v2503_v11, %v2499_v0  ;;  %2624 = vmatpush.msra.mxu1 %v2602_v39 }
0x117d   :  { %v2505_v19 = vmul.f32 %v3081_v48, %v2504_v42 }
0x1181   :  { %2833 = vmatmul.msk.f32.gmra.mxu1 %vm352_vm0, %v2505_v19 }
0x11f6   :  { %v2541_v44 = vpop.f32.mrf.mxu1 }
0x11f7   :  { %v2547_v2 = vmul.f32 %v2541_v44, %v4499_v40  ;;  %v2601_v40 = vld [vmem:[#allocation17 + $0x8] sm:$0xff] }
0x11f8   :  { %2625 = vmatpush.msra.mxu1 %v2601_v40 }
0x11fe   :  { %v2544_v30 = vpop.f32.mrf.mxu1 }
0x11ff   :  { %v2548_v50 = vmul.f32 %v2544_v30, %v4505_v26  ;;  %v2600_v26 = vld [vmem:[#allocation17] sm:$0xff] }
0x1200   :  { %2626 = vmatpush.msra.mxu1 %v2600_v26 }
0x1201   :  { %2563 = vmatpush.msra.mxu0 %v2548_v50 }
0x1203   :  { %2564 = vmatpush.msra.mxu0 %v2547_v2 }
0x1204   :  { %2834 = vmatmul.msk.f32.vlgmr.msra.gmra.mxu0 %vm2286_vm5, %v4526_v38  ;;  %v2940_v38 = vld [vmem:[%s4620_s3] ss:$0 sm:$0xff] }
0x1205   :  { %2592 = vmatpush.msrb.mxu0 %v2572_v17 }
0x1207   :  { %2593 = vmatpush.msrb.mxu0 %v2571_v52 }
0x1209   :  { %2594 = vmatpush.msrb.mxu0 %v2570_v41 }
0x120b   :  { %2595 = vmatpush.msrb.mxu0 %v2569_v36 }
0x1281   :  { %v2566_v3 = vpop.f32.mrf.mxu0 }
0x1282   :  { %2835 = vmatmul.msk.f32.vlgmr.msrb.gmra.mxu0 %vm352_vm0, %v2566_v3 }
0x12ff   :  { %v2597_v1 = vpop.f32.mrf.mxu0 }
0x1300   :  { %v2598_v6 = vadd.f32 %v2940_v38, %v2597_v1 }
0x1302   :  { %2836 = vmatmul.msk.f32.vlgmr.msra.gmra.mxu1 %vm352_vm0, %v2598_v6 }
0x137f   :  { %v2628_v24 = vpop.f32.mrf.mxu1 }
0x1380   :  { %v2629_v32 = vadd.f32 %v2941_v27, %v2628_v24 }
0x1382   :  { %2634 = vrot.lane.b32.xlu1 %v2629_v32, %s3492_s9  ;;  %2632 = vst.msk [vmem:[#allocation19] sm:$0xf] %vm2631_vm14, %v2629_v32 }
0x1383   :  { %3401 = shalt.err (!%p3398_p12)
}
0x1384   :  { %2649 = dma.vmem_to_hbm [thread:$0]  %s2645_s28, 64, %s2647_s11, [#allocation4]   ;;  %vm2637_vm0 = vcmask 257024  }
0x1385   :  { %s3493_s4 = smov [#allocation20]   ;;  %s2657_s5 = sshll.u32 %s3677_s19, 4  ;;  %s2658_s5 = int_to_ptr.hbm [resolvable:$true] %s2657_s5 }
0x1386   :  { %s2655_s12 = sshll.u32 %s3493_s4, 4  ;;  %s3414_s13 = sshra.s32 %s2658_s5, 4  ;;  %s2656_s12 = int_to_ptr.vmem [resolvable:$true] %s2655_s12  ;;  %s3415_s13 = int_to_ptr.hbm [resolvable:$true] %s3414_s13 }
0x1387   :  { %s3416_s8 = scalar_lea.hbm %s3415_s13, 4  ;;  %s3418_s21 = scalar_lea.hbm %s3677_s19, 4 }
0x1388   :  { %p3417_p13 = scmp.ne.s32.totalorder %s3415_s13, %s3416_s8  ;;  %p3419_p0 = scmp.lt.s32.totalorder %s3415_s13, %s3677_s19 }
0x1389   :  { %p3420_p1 = scmp.lt.s32.totalorder %s3418_s21, %s3416_s8 }
0x138b   :  { %p3421_p2 = por %p3420_p1, %p3419_p0 }
0x138d   :  { %p3422_p3 = pnand %p3421_p2, %p3417_p13 }
0x13f4   :  { %v2635_v28 = vpop.permute.xlu1 %2634 }
0x13f5   :  { %2638 = vst.msk [vmem:[#allocation20] sm:$0xf] %vm2637_vm0, %v2635_v28 }
0x13f6   :  { %3425 = shalt.err (!%p3422_p3)
}
0x13f7   :  { %2660 = dma.vmem_to_hbm [thread:$0]  %s2656_s12, 64, %s2658_s5, [#allocation21]  }
0x13f8   :  { %3438 = dma.done.wait [#allocation4], 64  }
0x13f9   :  { %3439 = vsyncadd [#allocation4], 4294967232 }
0x13fa   :  { %3440 = dma.done.wait [#allocation21], 64  }
0x13fb   :  { %3441 = vsyncadd [#allocation21], 4294967232 }
0x13fc   :  { %2669 = vsyncpa [#allocation3], 1 }
0x13fd   :  { %2670 = vsyncpa [#allocation6], 1 }
0x13fe   :  { %2671 = vsyncpa [#allocation9], 1 }
0x13ff   :  { %2672 = vsyncpa [#allocation12], 1 }
0x1400   :  { %2673 = vsyncpa [#allocation15], 1 }
0x1401   :  { %2674 = vsyncpa [#allocation18], 1 }
0x1402   :  { %2675 = vsyncpa [#allocation4], 1 }
0x1403   :  { %2676 = vsyncpa [#allocation21], 1 }

</bundles_post_ra>
